<compile_context>
chip_gen: v5e
topology: v5e:2x2
jax: 0.10.0
libtpu: 0.0.40
codegen_flags: <defaults>
</compile_context>

<pallas_src>
import jax
import jax.numpy as jnp
from jax.experimental import pallas as pl
from jax.experimental.pallas import tpu as pltpu


# ----------------------------------------------------------------------------
# Fused D2Block forward (one pallas_call for the whole block)
# ----------------------------------------------------------------------------
def d2block_forward(params, x_nchw, kernel_size):
    """x_nchw: (N, Cin, H, W) float32 -> (N, C_total, H, W)."""
    assert kernel_size % 2 == 1, "even kernel_size needs asymmetric padding"
    N, Cin, H, W = x_nchw.shape
    k = kernel_size
    c0 = (k - 1) // 2
    HW = H * W

    # ---- pack parameters into kernel-friendly matrices (wrapper glue) -------
    has_bn = params["bottleneck"] is not None
    bn_inputs = []
    if has_bn:
        wb, bb = params["bottleneck"]                 # (1,1,Cin,Cbn), (Cbn,)
        Cbn = wb.shape[-1]
        bn_inputs = [wb.reshape(Cin, Cbn).T,          # (Cbn, Cin)
                     bb.reshape(Cbn, 1)]              # (Cbn, 1)
        c_feat0 = Cbn
    else:
        c_feat0 = Cin

    layer_meta = []        # (dilations, Cin_layer, growth)
    layer_inputs = []      # [wl_0, bl_0, wl_1, bl_1, ...]
    c_cur = c_feat0
    for layer in params["layers"]:
        dil = tuple(layer["dilations"])
        g = layer["weights"][0].shape[-1]
        # (D*k*k, g, Cin): row (d_idx*k*k + kh*k + kw) holds W_d[kh, kw].T
        wl = jnp.concatenate(
            [jnp.transpose(w, (0, 1, 3, 2)).reshape(k * k, g, c_cur)
             for w in layer["weights"]], axis=0)
        bl = sum(layer["biases"]).reshape(g, 1)       # biases pre-summed once
        layer_inputs += [wl, bl]
        layer_meta.append((dil, c_cur, g))
        c_cur += g
    C_total = c_cur

    all_dil = [d for (dil, _, _) in layer_meta for d in dil]
    pmax = (max(all_dil) if all_dil else 0) * c0
    # zero margin on both sides of the flattened spatial axis so every shifted
    # tap stays in-bounds and out-of-image taps read zeros
    need = pmax * (W + 1)
    M = max(128, ((need + 127) // 128) * 128)
    Lpad = M + HW + M

    x_flat = x_nchw.reshape(N, Cin, HW)               # free reshape (NCHW)

    # ---- the fused kernel ----------------------------------------------------
    def kernel(*refs):
        idx = 0
        x_ref = refs[idx]; idx += 1
        if has_bn:
            wbn_ref, bbn_ref = refs[idx], refs[idx + 1]; idx += 2
        lw_refs = []
        for _ in layer_meta:
            lw_refs.append((refs[idx], refs[idx + 1])); idx += 2
        o_ref = refs[idx]
        feat = refs[idx + 1]                          # VMEM scratch (C_total, Lpad)

        # margins (and padding taps) must read zero
        feat[...] = jnp.zeros_like(feat)

        # column masks for horizontal taps that fall off the image row
        col = jax.lax.broadcasted_iota(jnp.int32, (1, HW), 1) % W
        masks = {}
        for (dil, _, _) in layer_meta:
            for d in dil:
                for kw in range(k):
                    dj = (kw - c0) * d
                    if dj != 0 and dj not in masks:
                        masks[dj] = ((col + dj >= 0) &
                                     (col + dj < W)).astype(jnp.float32)

        # bottleneck 1x1 conv (or identity) -> feature rows [0, c_feat0)
        xb = x_ref[0]                                  # (Cin, HW), lane-dense
        if has_bn:
            h0 = jnp.dot(wbn_ref[...], xb,
                         preferred_element_type=jnp.float32) + bbn_ref[...]
        else:
            h0 = xb
        feat[0:c_feat0, M:M + HW] = h0.astype(jnp.float32)

        # dense layers: sum of dilated convs, appended as new channel rows
        c_off = c_feat0
        for (dil, cin_li, g), (wl_ref, bl_ref) in zip(layer_meta, lw_refs):
            acc = jnp.zeros((g, HW), jnp.float32)
            widx = 0
            for d in dil:
                for kh in range(k):
                    for kw in range(k):
                        di = (kh - c0) * d
                        dj = (kw - c0) * d
                        start = M + di * W + dj        # static lane offset
                        slab = feat[0:cin_li, start:start + HW]   # (Cin, HW)
                        if dj != 0:
                            slab = slab * masks[dj]
                        acc = acc + jnp.dot(wl_ref[widx], slab,
                                            preferred_element_type=jnp.float32)
                        widx += 1
            acc = acc + bl_ref[...]                    # single bias add
            feat[c_off:c_off + g, M:M + HW] = acc
            c_off += g

        # single lane-dense writeback of the fully concatenated feature map
        o_ref[0] = feat[0:C_total, M:M + HW].astype(o_ref.dtype)

    # ---- specs ---------------------------------------------------------------
    def full(shape):
        return pl.BlockSpec(shape, lambda n: (0,) * len(shape))

    in_specs = [pl.BlockSpec((1, Cin, HW), lambda n: (n, 0, 0))]
    in_specs += [full(a.shape) for a in (bn_inputs + layer_inputs)]

    out = pl.pallas_call(
        kernel,
        grid=(N,),
        in_specs=in_specs,
        out_specs=pl.BlockSpec((1, C_total, HW), lambda n: (n, 0, 0)),
        out_shape=jax.ShapeDtypeStruct((N, C_total, HW), x_nchw.dtype),
        scratch_shapes=[pltpu.VMEM((C_total, Lpad), jnp.float32)],
        compiler_params=pltpu.CompilerParams(
            dimension_semantics=("parallel",)),   # v7x: both TCs split batch
    )(x_flat, *bn_inputs, *layer_inputs)

    return out.reshape(N, C_total, H, W)               # free reshape to NCHW


# ----------------------------------------------------------------------------
# Parameter init (HWIO weights, matches the PyTorch module's structure)
# ----------------------------------------------------------------------------
def init_d2block_params(key, in_channels, kernel_size, growth_rate,
                        bottleneck_channels, dilation_factors):
    params = {}
    keys = iter(jax.random.split(key, 64))

    if in_channels > bottleneck_channels:
        w = 0.1 * jax.random.normal(
            next(keys), (1, 1, in_channels, bottleneck_channels), jnp.float32)
        b = 0.1 * jax.random.normal(next(keys), (bottleneck_channels,), jnp.float32)
        params["bottleneck"] = (w, b)
        in_channels = bottleneck_channels
    else:
        params["bottleneck"] = None

    layers = []
    for i in range(len(dilation_factors)):
        sel = dilation_factors[:i + 1]
        ws, bs = [], []
        for _d in sel:
            w = 0.1 * jax.random.normal(
                next(keys), (kernel_size, kernel_size, in_channels, growth_rate),
                jnp.float32)
            b = 0.1 * jax.random.normal(next(keys), (growth_rate,), jnp.float32)
            ws.append(w)
            bs.append(b)
        layers.append({"dilations": sel, "weights": ws, "biases": bs})
        in_channels += growth_rate
    params["layers"] = layers
    return params


# ----------------------------------------------------------------------------
# Pure-JAX reference (correctness check only)
# ----------------------------------------------------------------------------
def _conv2d_ref(x_nhwc, w, b, dilation):
    k = w.shape[0]
    p = dilation * (k - 1) // 2
    y = jax.lax.conv_general_dilated(
        x_nhwc, w, window_strides=(1, 1), padding=((p, p), (p, p)),
        rhs_dilation=(dilation, dilation),
        dimension_numbers=("NHWC", "HWIO", "NHWC"))
    return y + b


def d2block_ref(params, x_nchw, kernel_size):
    x = jnp.transpose(x_nchw, (0, 2, 3, 1))
    if params["bottleneck"] is not None:
        w, b = params["bottleneck"]
        x = _conv2d_ref(x, w, b, 1)
    for layer in params["layers"]:
        out = None
        for w, b, d in zip(layer["weights"], layer["biases"], layer["dilations"]):
            y = _conv2d_ref(x, w, b, d)
            out = y if out is None else out + y
        x = jnp.concatenate([x, out], axis=-1)
    return jnp.transpose(x, (0, 3, 1, 2))


# ----------------------------------------------------------------------------
if __name__ == "__main__":
    key = jax.random.PRNGKey(0)
    kx, kp = jax.random.split(key)

    in_channels = 8
    kernel_size = 3
    growth_rate = 4
    bottleneck_channels = 4
    compression_rate = 0.5          # unused: D2Block.compress is always None
    dilation_factors = (1, 2, 4)

    # PyTorch-style NCHW input
    x = jax.random.normal(kx, (2, in_channels, 16, 16), jnp.float32)

    params = init_d2block_params(kp, in_channels, kernel_size, growth_rate,
                                 bottleneck_channels, dilation_factors)

    y = jax.block_until_ready(d2block_forward(params, x, kernel_size))
    y_ref = jax.block_until_ready(d2block_ref(params, x, kernel_size))

    expected_c = bottleneck_channels + growth_rate * len(dilation_factors)
    assert y.shape == (2, expected_c, 16, 16), y.shape
    assert bool(jnp.allclose(y, y_ref, rtol=1e-4, atol=1e-4)), \
        float(jnp.max(jnp.abs(y - y_ref)))
    print("KERNEL_OK")
</pallas_src>

<mosaic_0001>
module attributes {stable_mosaic.version = 11 : i64} {
  func.func @kernel(%arg0: i32, %arg1: memref<1x8x256xf32, #tpu.memory_space<vmem>>, %arg2: memref<4x8xf32, #tpu.memory_space<vmem>>, %arg3: memref<4x1xf32, #tpu.memory_space<vmem>>, %arg4: memref<9x4x4xf32, #tpu.memory_space<vmem>>, %arg5: memref<4x1xf32, #tpu.memory_space<vmem>>, %arg6: memref<18x4x8xf32, #tpu.memory_space<vmem>>, %arg7: memref<4x1xf32, #tpu.memory_space<vmem>>, %arg8: memref<27x4x12xf32, #tpu.memory_space<vmem>>, %arg9: memref<4x1xf32, #tpu.memory_space<vmem>>, %arg10: memref<1x16x256xf32, #tpu.memory_space<vmem>>, %arg11: memref<16x512xf32, #tpu.memory_space<vmem>>) attributes {dimension_semantics = [#tpu.dimension_semantics<parallel>], iteration_bounds = array<i64: 2>, scalar_prefetch = 0 : i64, scratch_operands = 1 : i64, tpu.core_type = #tpu.core_type<tc>, window_params = [{transform_indices = @transform_0, window_bounds = array<i64: 1, 8, 256>}, {pipeline_mode = #tpu.pipeline_mode<synchronous>, transform_indices = @transform_1, window_bounds = array<i64: 4, 8>}, {pipeline_mode = #tpu.pipeline_mode<synchronous>, transform_indices = @transform_2, window_bounds = array<i64: 4, 1>}, {pipeline_mode = #tpu.pipeline_mode<synchronous>, transform_indices = @transform_3, window_bounds = array<i64: 9, 4, 4>}, {pipeline_mode = #tpu.pipeline_mode<synchronous>, transform_indices = @transform_4, window_bounds = array<i64: 4, 1>}, {pipeline_mode = #tpu.pipeline_mode<synchronous>, transform_indices = @transform_5, window_bounds = array<i64: 18, 4, 8>}, {pipeline_mode = #tpu.pipeline_mode<synchronous>, transform_indices = @transform_6, window_bounds = array<i64: 4, 1>}, {pipeline_mode = #tpu.pipeline_mode<synchronous>, transform_indices = @transform_7, window_bounds = array<i64: 27, 4, 12>}, {pipeline_mode = #tpu.pipeline_mode<synchronous>, transform_indices = @transform_8, window_bounds = array<i64: 4, 1>}, {transform_indices = @transform_9, window_bounds = array<i64: 1, 16, 256>}]} {
    %cst = arith.constant 0.000000e+00 : f32
    %0 = vector.broadcast %cst : f32 to vector<16x512xf32>
    %c0 = arith.constant 0 : index
    %c0_0 = arith.constant 0 : index
    %1 = vector.load %arg11[%c0, %c0_0] : memref<16x512xf32, #tpu.memory_space<vmem>>, vector<16x512xf32>
    tpu.vector_store %arg11[%c0, %c0_0], %0 {strides = array<i32>} : memref<16x512xf32, #tpu.memory_space<vmem>>, vector<16x512xf32>,
    %2 = tpu.iota {dimensions = array<i32: 1>} : vector<1x256xi32>
    %c16_i32 = arith.constant 16 : i32
    %c0_i32 = arith.constant 0 : i32
    %3 = arith.cmpi eq, %c16_i32, %c0_i32 : i32
    %c1_i32 = arith.constant 1 : i32
    %4 = arith.select %3, %c1_i32, %c16_i32 : i32
    %5 = vector.broadcast %4 : i32 to vector<1x256xi32>
    %6 = arith.remsi %2, %5 : vector<1x256xi32>
    %c0_i32_1 = arith.constant 0 : i32
    %7 = vector.broadcast %c0_i32_1 : i32 to vector<1x256xi32>
    %8 = arith.cmpi ne, %6, %7 : vector<1x256xi32>
    %c0_i32_2 = arith.constant 0 : i32
    %9 = vector.broadcast %c0_i32_2 : i32 to vector<1x256xi32>
    %10 = arith.cmpi slt, %6, %9 : vector<1x256xi32>
    %c0_i32_3 = arith.constant 0 : i32
    %11 = arith.cmpi slt, %4, %c0_i32_3 : i32
    %12 = vector.broadcast %11 : i1 to vector<1x256xi1>
    %13 = vector.broadcast %12 : vector<1x256xi1> to vector<1x256xi1>
    %14 = arith.xori %10, %13 : vector<1x256xi1>
    %15 = arith.andi %14, %8 : vector<1x256xi1>
    %16 = vector.broadcast %4 : i32 to vector<1x256xi32>
    %17 = arith.addi %6, %16 : vector<1x256xi32>
    %18 = arith.select %15, %17, %6 : vector<1x256xi1>, vector<1x256xi32>
    %c-1_i32 = arith.constant -1 : i32
    %19 = vector.broadcast %c-1_i32 : i32 to vector<1x256xi32>
    %20 = arith.addi %18, %19 : vector<1x256xi32>
    %c0_i32_4 = arith.constant 0 : i32
    %21 = vector.broadcast %c0_i32_4 : i32 to vector<1x256xi32>
    %22 = arith.cmpi sge, %20, %21 : vector<1x256xi32>
    %c-1_i32_5 = arith.constant -1 : i32
    %23 = vector.broadcast %c-1_i32_5 : i32 to vector<1x256xi32>
    %24 = arith.addi %18, %23 : vector<1x256xi32>
    %c16_i32_6 = arith.constant 16 : i32
    %25 = vector.broadcast %c16_i32_6 : i32 to vector<1x256xi32>
    %26 = arith.cmpi slt, %24, %25 : vector<1x256xi32>
    %27 = arith.andi %22, %26 : vector<1x256xi1>
    %28 = arith.extui %27 : vector<1x256xi1> to vector<1x256xi32>
    %29 = arith.sitofp %28 : vector<1x256xi32> to vector<1x256xf32>
    %c1_i32_7 = arith.constant 1 : i32
    %30 = vector.broadcast %c1_i32_7 : i32 to vector<1x256xi32>
    %31 = arith.addi %18, %30 : vector<1x256xi32>
    %c0_i32_8 = arith.constant 0 : i32
    %32 = vector.broadcast %c0_i32_8 : i32 to vector<1x256xi32>
    %33 = arith.cmpi sge, %31, %32 : vector<1x256xi32>
    %c1_i32_9 = arith.constant 1 : i32
    %34 = vector.broadcast %c1_i32_9 : i32 to vector<1x256xi32>
    %35 = arith.addi %18, %34 : vector<1x256xi32>
    %c16_i32_10 = arith.constant 16 : i32
    %36 = vector.broadcast %c16_i32_10 : i32 to vector<1x256xi32>
    %37 = arith.cmpi slt, %35, %36 : vector<1x256xi32>
    %38 = arith.andi %33, %37 : vector<1x256xi1>
    %39 = arith.extui %38 : vector<1x256xi1> to vector<1x256xi32>
    %40 = arith.sitofp %39 : vector<1x256xi32> to vector<1x256xf32>
    %c-2_i32 = arith.constant -2 : i32
    %41 = vector.broadcast %c-2_i32 : i32 to vector<1x256xi32>
    %42 = arith.addi %18, %41 : vector<1x256xi32>
    %c0_i32_11 = arith.constant 0 : i32
    %43 = vector.broadcast %c0_i32_11 : i32 to vector<1x256xi32>
    %44 = arith.cmpi sge, %42, %43 : vector<1x256xi32>
    %c-2_i32_12 = arith.constant -2 : i32
    %45 = vector.broadcast %c-2_i32_12 : i32 to vector<1x256xi32>
    %46 = arith.addi %18, %45 : vector<1x256xi32>
    %c16_i32_13 = arith.constant 16 : i32
    %47 = vector.broadcast %c16_i32_13 : i32 to vector<1x256xi32>
    %48 = arith.cmpi slt, %46, %47 : vector<1x256xi32>
    %49 = arith.andi %44, %48 : vector<1x256xi1>
    %50 = arith.extui %49 : vector<1x256xi1> to vector<1x256xi32>
    %51 = arith.sitofp %50 : vector<1x256xi32> to vector<1x256xf32>
    %c2_i32 = arith.constant 2 : i32
    %52 = vector.broadcast %c2_i32 : i32 to vector<1x256xi32>
    %53 = arith.addi %18, %52 : vector<1x256xi32>
    %c0_i32_14 = arith.constant 0 : i32
    %54 = vector.broadcast %c0_i32_14 : i32 to vector<1x256xi32>
    %55 = arith.cmpi sge, %53, %54 : vector<1x256xi32>
    %c2_i32_15 = arith.constant 2 : i32
    %56 = vector.broadcast %c2_i32_15 : i32 to vector<1x256xi32>
    %57 = arith.addi %18, %56 : vector<1x256xi32>
    %c16_i32_16 = arith.constant 16 : i32
    %58 = vector.broadcast %c16_i32_16 : i32 to vector<1x256xi32>
    %59 = arith.cmpi slt, %57, %58 : vector<1x256xi32>
    %60 = arith.andi %55, %59 : vector<1x256xi1>
    %61 = arith.extui %60 : vector<1x256xi1> to vector<1x256xi32>
    %62 = arith.sitofp %61 : vector<1x256xi32> to vector<1x256xf32>
    %c-4_i32 = arith.constant -4 : i32
    %63 = vector.broadcast %c-4_i32 : i32 to vector<1x256xi32>
    %64 = arith.addi %18, %63 : vector<1x256xi32>
    %c0_i32_17 = arith.constant 0 : i32
    %65 = vector.broadcast %c0_i32_17 : i32 to vector<1x256xi32>
    %66 = arith.cmpi sge, %64, %65 : vector<1x256xi32>
    %c-4_i32_18 = arith.constant -4 : i32
    %67 = vector.broadcast %c-4_i32_18 : i32 to vector<1x256xi32>
    %68 = arith.addi %18, %67 : vector<1x256xi32>
    %c16_i32_19 = arith.constant 16 : i32
    %69 = vector.broadcast %c16_i32_19 : i32 to vector<1x256xi32>
    %70 = arith.cmpi slt, %68, %69 : vector<1x256xi32>
    %71 = arith.andi %66, %70 : vector<1x256xi1>
    %72 = arith.extui %71 : vector<1x256xi1> to vector<1x256xi32>
    %73 = arith.sitofp %72 : vector<1x256xi32> to vector<1x256xf32>
    %c4_i32 = arith.constant 4 : i32
    %74 = vector.broadcast %c4_i32 : i32 to vector<1x256xi32>
    %75 = arith.addi %18, %74 : vector<1x256xi32>
    %c0_i32_20 = arith.constant 0 : i32
    %76 = vector.broadcast %c0_i32_20 : i32 to vector<1x256xi32>
    %77 = arith.cmpi sge, %75, %76 : vector<1x256xi32>
    %c4_i32_21 = arith.constant 4 : i32
    %78 = vector.broadcast %c4_i32_21 : i32 to vector<1x256xi32>
    %79 = arith.addi %18, %78 : vector<1x256xi32>
    %c16_i32_22 = arith.constant 16 : i32
    %80 = vector.broadcast %c16_i32_22 : i32 to vector<1x256xi32>
    %81 = arith.cmpi slt, %79, %80 : vector<1x256xi32>
    %82 = arith.andi %77, %81 : vector<1x256xi1>
    %83 = arith.extui %82 : vector<1x256xi1> to vector<1x256xi32>
    %84 = arith.sitofp %83 : vector<1x256xi32> to vector<1x256xf32>
    %c0_23 = arith.constant 0 : index
    %c0_24 = arith.constant 0 : index
    %c0_25 = arith.constant 0 : index
    %85 = vector.load %arg1[%c0_23, %c0_24, %c0_25] : memref<1x8x256xf32, #tpu.memory_space<vmem>>, vector<1x8x256xf32>
    %86 = vector.shape_cast %85 : vector<1x8x256xf32> to vector<8x256xf32>
    %c0_26 = arith.constant 0 : index
    %c0_27 = arith.constant 0 : index
    %87 = vector.load %arg2[%c0_26, %c0_27] : memref<4x8xf32, #tpu.memory_space<vmem>>, vector<4x8xf32>
    %cst_28 = arith.constant dense<0.000000e+00> : vector<4x256xf32>
    %88 = tpu.matmul %87, %86, %cst_28 {dimension_numbers = #tpu.dot_dimension_numbers<[1], [0], [0], [1], [0, 0, 1, 1], [], []>} : vector<4x8xf32>, vector<8x256xf32>, vector<4x256xf32> -> vector<4x256xf32>
    %c0_29 = arith.constant 0 : index
    %c0_30 = arith.constant 0 : index
    %89 = vector.load %arg3[%c0_29, %c0_30] : memref<4x1xf32, #tpu.memory_space<vmem>>, vector<4x1xf32>
    %90 = vector.broadcast %89 : vector<4x1xf32> to vector<4x256xf32>
    %91 = arith.addf %88, %90 : vector<4x256xf32>
    %c0_31 = arith.constant 0 : index
    %c128 = arith.constant 128 : index
    %92 = vector.load %arg11[%c0_31, %c128] : memref<16x512xf32, #tpu.memory_space<vmem>>, vector<4x256xf32>
    tpu.vector_store %arg11[%c0_31, %c128], %91 {strides = array<i32>} : memref<16x512xf32, #tpu.memory_space<vmem>>, vector<4x256xf32>,
    %cst_32 = arith.constant 0.000000e+00 : f32
    %93 = vector.broadcast %cst_32 : f32 to vector<4x256xf32>
    %c0_33 = arith.constant 0 : index
    %c111 = arith.constant 111 : index
    %94 = vector.load %arg11[%c0_33, %c111] : memref<16x512xf32, #tpu.memory_space<vmem>>, vector<4x256xf32>
    %95 = vector.broadcast %29 : vector<1x256xf32> to vector<4x256xf32>
    %96 = arith.mulf %94, %95 : vector<4x256xf32>
    %c0_34 = arith.constant 0 : index
    %c0_35 = arith.constant 0 : index
    %c0_36 = arith.constant 0 : index
    %97 = vector.load %arg4[%c0_34, %c0_35, %c0_36] : memref<9x4x4xf32, #tpu.memory_space<vmem>>, vector<1x4x4xf32>
    %98 = vector.shape_cast %97 : vector<1x4x4xf32> to vector<4x4xf32>
    %cst_37 = arith.constant dense<0.000000e+00> : vector<4x256xf32>
    %99 = tpu.matmul %98, %96, %cst_37 {dimension_numbers = #tpu.dot_dimension_numbers<[1], [0], [0], [1], [0, 0, 1, 1], [], []>} : vector<4x4xf32>, vector<4x256xf32>, vector<4x256xf32> -> vector<4x256xf32>
    %100 = arith.addf %93, %99 : vector<4x256xf32>
    %c0_38 = arith.constant 0 : index
    %c112 = arith.constant 112 : index
    %101 = vector.load %arg11[%c0_38, %c112] : memref<16x512xf32, #tpu.memory_space<vmem>>, vector<4x256xf32>
    %c1 = arith.constant 1 : index
    %c0_39 = arith.constant 0 : index
    %c0_40 = arith.constant 0 : index
    %102 = vector.load %arg4[%c1, %c0_39, %c0_40] : memref<9x4x4xf32, #tpu.memory_space<vmem>>, vector<1x4x4xf32>
    %103 = vector.shape_cast %102 : vector<1x4x4xf32> to vector<4x4xf32>
    %cst_41 = arith.constant dense<0.000000e+00> : vector<4x256xf32>
    %104 = tpu.matmul %103, %101, %cst_41 {dimension_numbers = #tpu.dot_dimension_numbers<[1], [0], [0], [1], [0, 0, 1, 1], [], []>} : vector<4x4xf32>, vector<4x256xf32>, vector<4x256xf32> -> vector<4x256xf32>
    %105 = arith.addf %100, %104 : vector<4x256xf32>
    %c0_42 = arith.constant 0 : index
    %c113 = arith.constant 113 : index
    %106 = vector.load %arg11[%c0_42, %c113] : memref<16x512xf32, #tpu.memory_space<vmem>>, vector<4x256xf32>
    %107 = vector.broadcast %40 : vector<1x256xf32> to vector<4x256xf32>
    %108 = arith.mulf %106, %107 : vector<4x256xf32>
    %c2 = arith.constant 2 : index
    %c0_43 = arith.constant 0 : index
    %c0_44 = arith.constant 0 : index
    %109 = vector.load %arg4[%c2, %c0_43, %c0_44] : memref<9x4x4xf32, #tpu.memory_space<vmem>>, vector<1x4x4xf32>
    %110 = vector.shape_cast %109 : vector<1x4x4xf32> to vector<4x4xf32>
    %cst_45 = arith.constant dense<0.000000e+00> : vector<4x256xf32>
    %111 = tpu.matmul %110, %108, %cst_45 {dimension_numbers = #tpu.dot_dimension_numbers<[1], [0], [0], [1], [0, 0, 1, 1], [], []>} : vector<4x4xf32>, vector<4x256xf32>, vector<4x256xf32> -> vector<4x256xf32>
    %112 = arith.addf %105, %111 : vector<4x256xf32>
    %c0_46 = arith.constant 0 : index
    %c127 = arith.constant 127 : index
    %113 = vector.load %arg11[%c0_46, %c127] : memref<16x512xf32, #tpu.memory_space<vmem>>, vector<4x256xf32>
    %114 = vector.broadcast %29 : vector<1x256xf32> to vector<4x256xf32>
    %115 = arith.mulf %113, %114 : vector<4x256xf32>
    %c3 = arith.constant 3 : index
    %c0_47 = arith.constant 0 : index
    %c0_48 = arith.constant 0 : index
    %116 = vector.load %arg4[%c3, %c0_47, %c0_48] : memref<9x4x4xf32, #tpu.memory_space<vmem>>, vector<1x4x4xf32>
    %117 = vector.shape_cast %116 : vector<1x4x4xf32> to vector<4x4xf32>
    %cst_49 = arith.constant dense<0.000000e+00> : vector<4x256xf32>
    %118 = tpu.matmul %117, %115, %cst_49 {dimension_numbers = #tpu.dot_dimension_numbers<[1], [0], [0], [1], [0, 0, 1, 1], [], []>} : vector<4x4xf32>, vector<4x256xf32>, vector<4x256xf32> -> vector<4x256xf32>
    %119 = arith.addf %112, %118 : vector<4x256xf32>
    %c0_50 = arith.constant 0 : index
    %c128_51 = arith.constant 128 : index
    %120 = vector.load %arg11[%c0_50, %c128_51] : memref<16x512xf32, #tpu.memory_space<vmem>>, vector<4x256xf32>
    %c4 = arith.constant 4 : index
    %c0_52 = arith.constant 0 : index
    %c0_53 = arith.constant 0 : index
    %121 = vector.load %arg4[%c4, %c0_52, %c0_53] : memref<9x4x4xf32, #tpu.memory_space<vmem>>, vector<1x4x4xf32>
    %122 = vector.shape_cast %121 : vector<1x4x4xf32> to vector<4x4xf32>
    %cst_54 = arith.constant dense<0.000000e+00> : vector<4x256xf32>
    %123 = tpu.matmul %122, %120, %cst_54 {dimension_numbers = #tpu.dot_dimension_numbers<[1], [0], [0], [1], [0, 0, 1, 1], [], []>} : vector<4x4xf32>, vector<4x256xf32>, vector<4x256xf32> -> vector<4x256xf32>
    %124 = arith.addf %119, %123 : vector<4x256xf32>
    %c0_55 = arith.constant 0 : index
    %c129 = arith.constant 129 : index
    %125 = vector.load %arg11[%c0_55, %c129] : memref<16x512xf32, #tpu.memory_space<vmem>>, vector<4x256xf32>
    %126 = vector.broadcast %40 : vector<1x256xf32> to vector<4x256xf32>
    %127 = arith.mulf %125, %126 : vector<4x256xf32>
    %c5 = arith.constant 5 : index
    %c0_56 = arith.constant 0 : index
    %c0_57 = arith.constant 0 : index
    %128 = vector.load %arg4[%c5, %c0_56, %c0_57] : memref<9x4x4xf32, #tpu.memory_space<vmem>>, vector<1x4x4xf32>
    %129 = vector.shape_cast %128 : vector<1x4x4xf32> to vector<4x4xf32>
    %cst_58 = arith.constant dense<0.000000e+00> : vector<4x256xf32>
    %130 = tpu.matmul %129, %127, %cst_58 {dimension_numbers = #tpu.dot_dimension_numbers<[1], [0], [0], [1], [0, 0, 1, 1], [], []>} : vector<4x4xf32>, vector<4x256xf32>, vector<4x256xf32> -> vector<4x256xf32>
    %131 = arith.addf %124, %130 : vector<4x256xf32>
    %c0_59 = arith.constant 0 : index
    %c143 = arith.constant 143 : index
    %132 = vector.load %arg11[%c0_59, %c143] : memref<16x512xf32, #tpu.memory_space<vmem>>, vector<4x256xf32>
    %133 = vector.broadcast %29 : vector<1x256xf32> to vector<4x256xf32>
    %134 = arith.mulf %132, %133 : vector<4x256xf32>
    %c6 = arith.constant 6 : index
    %c0_60 = arith.constant 0 : index
    %c0_61 = arith.constant 0 : index
    %135 = vector.load %arg4[%c6, %c0_60, %c0_61] : memref<9x4x4xf32, #tpu.memory_space<vmem>>, vector<1x4x4xf32>
    %136 = vector.shape_cast %135 : vector<1x4x4xf32> to vector<4x4xf32>
    %cst_62 = arith.constant dense<0.000000e+00> : vector<4x256xf32>
    %137 = tpu.matmul %136, %134, %cst_62 {dimension_numbers = #tpu.dot_dimension_numbers<[1], [0], [0], [1], [0, 0, 1, 1], [], []>} : vector<4x4xf32>, vector<4x256xf32>, vector<4x256xf32> -> vector<4x256xf32>
    %138 = arith.addf %131, %137 : vector<4x256xf32>
    %c0_63 = arith.constant 0 : index
    %c144 = arith.constant 144 : index
    %139 = vector.load %arg11[%c0_63, %c144] : memref<16x512xf32, #tpu.memory_space<vmem>>, vector<4x256xf32>
    %c7 = arith.constant 7 : index
    %c0_64 = arith.constant 0 : index
    %c0_65 = arith.constant 0 : index
    %140 = vector.load %arg4[%c7, %c0_64, %c0_65] : memref<9x4x4xf32, #tpu.memory_space<vmem>>, vector<1x4x4xf32>
    %141 = vector.shape_cast %140 : vector<1x4x4xf32> to vector<4x4xf32>
    %cst_66 = arith.constant dense<0.000000e+00> : vector<4x256xf32>
    %142 = tpu.matmul %141, %139, %cst_66 {dimension_numbers = #tpu.dot_dimension_numbers<[1], [0], [0], [1], [0, 0, 1, 1], [], []>} : vector<4x4xf32>, vector<4x256xf32>, vector<4x256xf32> -> vector<4x256xf32>
    %143 = arith.addf %138, %142 : vector<4x256xf32>
    %c0_67 = arith.constant 0 : index
    %c145 = arith.constant 145 : index
    %144 = vector.load %arg11[%c0_67, %c145] : memref<16x512xf32, #tpu.memory_space<vmem>>, vector<4x256xf32>
    %145 = vector.broadcast %40 : vector<1x256xf32> to vector<4x256xf32>
    %146 = arith.mulf %144, %145 : vector<4x256xf32>
    %c8 = arith.constant 8 : index
    %c0_68 = arith.constant 0 : index
    %c0_69 = arith.constant 0 : index
    %147 = vector.load %arg4[%c8, %c0_68, %c0_69] : memref<9x4x4xf32, #tpu.memory_space<vmem>>, vector<1x4x4xf32>
    %148 = vector.shape_cast %147 : vector<1x4x4xf32> to vector<4x4xf32>
    %cst_70 = arith.constant dense<0.000000e+00> : vector<4x256xf32>
    %149 = tpu.matmul %148, %146, %cst_70 {dimension_numbers = #tpu.dot_dimension_numbers<[1], [0], [0], [1], [0, 0, 1, 1], [], []>} : vector<4x4xf32>, vector<4x256xf32>, vector<4x256xf32> -> vector<4x256xf32>
    %150 = arith.addf %143, %149 : vector<4x256xf32>
    %c0_71 = arith.constant 0 : index
    %c0_72 = arith.constant 0 : index
    %151 = vector.load %arg5[%c0_71, %c0_72] : memref<4x1xf32, #tpu.memory_space<vmem>>, vector<4x1xf32>
    %152 = vector.broadcast %151 : vector<4x1xf32> to vector<4x256xf32>
    %153 = arith.addf %150, %152 : vector<4x256xf32>
    %c4_73 = arith.constant 4 : index
    %c128_74 = arith.constant 128 : index
    %154 = vector.load %arg11[%c4_73, %c128_74] : memref<16x512xf32, #tpu.memory_space<vmem>>, vector<4x256xf32>
    tpu.vector_store %arg11[%c4_73, %c128_74], %153 {strides = array<i32>} : memref<16x512xf32, #tpu.memory_space<vmem>>, vector<4x256xf32>,
    %cst_75 = arith.constant 0.000000e+00 : f32
    %155 = vector.broadcast %cst_75 : f32 to vector<4x256xf32>
    %c0_76 = arith.constant 0 : index
    %c111_77 = arith.constant 111 : index
    %156 = vector.load %arg11[%c0_76, %c111_77] : memref<16x512xf32, #tpu.memory_space<vmem>>, vector<8x256xf32>
    %157 = vector.broadcast %29 : vector<1x256xf32> to vector<8x256xf32>
    %158 = arith.mulf %156, %157 : vector<8x256xf32>
    %c0_78 = arith.constant 0 : index
    %c0_79 = arith.constant 0 : index
    %c0_80 = arith.constant 0 : index
    %159 = vector.load %arg6[%c0_78, %c0_79, %c0_80] : memref<18x4x8xf32, #tpu.memory_space<vmem>>, vector<1x4x8xf32>
    %160 = vector.shape_cast %159 : vector<1x4x8xf32> to vector<4x8xf32>
    %cst_81 = arith.constant dense<0.000000e+00> : vector<4x256xf32>
    %161 = tpu.matmul %160, %158, %cst_81 {dimension_numbers = #tpu.dot_dimension_numbers<[1], [0], [0], [1], [0, 0, 1, 1], [], []>} : vector<4x8xf32>, vector<8x256xf32>, vector<4x256xf32> -> vector<4x256xf32>
    %162 = arith.addf %155, %161 : vector<4x256xf32>
    %c0_82 = arith.constant 0 : index
    %c112_83 = arith.constant 112 : index
    %163 = vector.load %arg11[%c0_82, %c112_83] : memref<16x512xf32, #tpu.memory_space<vmem>>, vector<8x256xf32>
    %c1_84 = arith.constant 1 : index
    %c0_85 = arith.constant 0 : index
    %c0_86 = arith.constant 0 : index
    %164 = vector.load %arg6[%c1_84, %c0_85, %c0_86] : memref<18x4x8xf32, #tpu.memory_space<vmem>>, vector<1x4x8xf32>
    %165 = vector.shape_cast %164 : vector<1x4x8xf32> to vector<4x8xf32>
    %cst_87 = arith.constant dense<0.000000e+00> : vector<4x256xf32>
    %166 = tpu.matmul %165, %163, %cst_87 {dimension_numbers = #tpu.dot_dimension_numbers<[1], [0], [0], [1], [0, 0, 1, 1], [], []>} : vector<4x8xf32>, vector<8x256xf32>, vector<4x256xf32> -> vector<4x256xf32>
    %167 = arith.addf %162, %166 : vector<4x256xf32>
    %c0_88 = arith.constant 0 : index
    %c113_89 = arith.constant 113 : index
    %168 = vector.load %arg11[%c0_88, %c113_89] : memref<16x512xf32, #tpu.memory_space<vmem>>, vector<8x256xf32>
    %169 = vector.broadcast %40 : vector<1x256xf32> to vector<8x256xf32>
    %170 = arith.mulf %168, %169 : vector<8x256xf32>
    %c2_90 = arith.constant 2 : index
    %c0_91 = arith.constant 0 : index
    %c0_92 = arith.constant 0 : index
    %171 = vector.load %arg6[%c2_90, %c0_91, %c0_92] : memref<18x4x8xf32, #tpu.memory_space<vmem>>, vector<1x4x8xf32>
    %172 = vector.shape_cast %171 : vector<1x4x8xf32> to vector<4x8xf32>
    %cst_93 = arith.constant dense<0.000000e+00> : vector<4x256xf32>
    %173 = tpu.matmul %172, %170, %cst_93 {dimension_numbers = #tpu.dot_dimension_numbers<[1], [0], [0], [1], [0, 0, 1, 1], [], []>} : vector<4x8xf32>, vector<8x256xf32>, vector<4x256xf32> -> vector<4x256xf32>
    %174 = arith.addf %167, %173 : vector<4x256xf32>
    %c0_94 = arith.constant 0 : index
    %c127_95 = arith.constant 127 : index
    %175 = vector.load %arg11[%c0_94, %c127_95] : memref<16x512xf32, #tpu.memory_space<vmem>>, vector<8x256xf32>
    %176 = vector.broadcast %29 : vector<1x256xf32> to vector<8x256xf32>
    %177 = arith.mulf %175, %176 : vector<8x256xf32>
    %c3_96 = arith.constant 3 : index
    %c0_97 = arith.constant 0 : index
    %c0_98 = arith.constant 0 : index
    %178 = vector.load %arg6[%c3_96, %c0_97, %c0_98] : memref<18x4x8xf32, #tpu.memory_space<vmem>>, vector<1x4x8xf32>
    %179 = vector.shape_cast %178 : vector<1x4x8xf32> to vector<4x8xf32>
    %cst_99 = arith.constant dense<0.000000e+00> : vector<4x256xf32>
    %180 = tpu.matmul %179, %177, %cst_99 {dimension_numbers = #tpu.dot_dimension_numbers<[1], [0], [0], [1], [0, 0, 1, 1], [], []>} : vector<4x8xf32>, vector<8x256xf32>, vector<4x256xf32> -> vector<4x256xf32>
    %181 = arith.addf %174, %180 : vector<4x256xf32>
    %c0_100 = arith.constant 0 : index
    %c128_101 = arith.constant 128 : index
    %182 = vector.load %arg11[%c0_100, %c128_101] : memref<16x512xf32, #tpu.memory_space<vmem>>, vector<8x256xf32>
    %c4_102 = arith.constant 4 : index
    %c0_103 = arith.constant 0 : index
    %c0_104 = arith.constant 0 : index
    %183 = vector.load %arg6[%c4_102, %c0_103, %c0_104] : memref<18x4x8xf32, #tpu.memory_space<vmem>>, vector<1x4x8xf32>
    %184 = vector.shape_cast %183 : vector<1x4x8xf32> to vector<4x8xf32>
    %cst_105 = arith.constant dense<0.000000e+00> : vector<4x256xf32>
    %185 = tpu.matmul %184, %182, %cst_105 {dimension_numbers = #tpu.dot_dimension_numbers<[1], [0], [0], [1], [0, 0, 1, 1], [], []>} : vector<4x8xf32>, vector<8x256xf32>, vector<4x256xf32> -> vector<4x256xf32>
    %186 = arith.addf %181, %185 : vector<4x256xf32>
    %c0_106 = arith.constant 0 : index
    %c129_107 = arith.constant 129 : index
    %187 = vector.load %arg11[%c0_106, %c129_107] : memref<16x512xf32, #tpu.memory_space<vmem>>, vector<8x256xf32>
    %188 = vector.broadcast %40 : vector<1x256xf32> to vector<8x256xf32>
    %189 = arith.mulf %187, %188 : vector<8x256xf32>
    %c5_108 = arith.constant 5 : index
    %c0_109 = arith.constant 0 : index
    %c0_110 = arith.constant 0 : index
    %190 = vector.load %arg6[%c5_108, %c0_109, %c0_110] : memref<18x4x8xf32, #tpu.memory_space<vmem>>, vector<1x4x8xf32>
    %191 = vector.shape_cast %190 : vector<1x4x8xf32> to vector<4x8xf32>
    %cst_111 = arith.constant dense<0.000000e+00> : vector<4x256xf32>
    %192 = tpu.matmul %191, %189, %cst_111 {dimension_numbers = #tpu.dot_dimension_numbers<[1], [0], [0], [1], [0, 0, 1, 1], [], []>} : vector<4x8xf32>, vector<8x256xf32>, vector<4x256xf32> -> vector<4x256xf32>
    %193 = arith.addf %186, %192 : vector<4x256xf32>
    %c0_112 = arith.constant 0 : index
    %c143_113 = arith.constant 143 : index
    %194 = vector.load %arg11[%c0_112, %c143_113] : memref<16x512xf32, #tpu.memory_space<vmem>>, vector<8x256xf32>
    %195 = vector.broadcast %29 : vector<1x256xf32> to vector<8x256xf32>
    %196 = arith.mulf %194, %195 : vector<8x256xf32>
    %c6_114 = arith.constant 6 : index
    %c0_115 = arith.constant 0 : index
    %c0_116 = arith.constant 0 : index
    %197 = vector.load %arg6[%c6_114, %c0_115, %c0_116] : memref<18x4x8xf32, #tpu.memory_space<vmem>>, vector<1x4x8xf32>
    %198 = vector.shape_cast %197 : vector<1x4x8xf32> to vector<4x8xf32>
    %cst_117 = arith.constant dense<0.000000e+00> : vector<4x256xf32>
    %199 = tpu.matmul %198, %196, %cst_117 {dimension_numbers = #tpu.dot_dimension_numbers<[1], [0], [0], [1], [0, 0, 1, 1], [], []>} : vector<4x8xf32>, vector<8x256xf32>, vector<4x256xf32> -> vector<4x256xf32>
    %200 = arith.addf %193, %199 : vector<4x256xf32>
    %c0_118 = arith.constant 0 : index
    %c144_119 = arith.constant 144 : index
    %201 = vector.load %arg11[%c0_118, %c144_119] : memref<16x512xf32, #tpu.memory_space<vmem>>, vector<8x256xf32>
    %c7_120 = arith.constant 7 : index
    %c0_121 = arith.constant 0 : index
    %c0_122 = arith.constant 0 : index
    %202 = vector.load %arg6[%c7_120, %c0_121, %c0_122] : memref<18x4x8xf32, #tpu.memory_space<vmem>>, vector<1x4x8xf32>
    %203 = vector.shape_cast %202 : vector<1x4x8xf32> to vector<4x8xf32>
    %cst_123 = arith.constant dense<0.000000e+00> : vector<4x256xf32>
    %204 = tpu.matmul %203, %201, %cst_123 {dimension_numbers = #tpu.dot_dimension_numbers<[1], [0], [0], [1], [0, 0, 1, 1], [], []>} : vector<4x8xf32>, vector<8x256xf32>, vector<4x256xf32> -> vector<4x256xf32>
    %205 = arith.addf %200, %204 : vector<4x256xf32>
    %c0_124 = arith.constant 0 : index
    %c145_125 = arith.constant 145 : index
    %206 = vector.load %arg11[%c0_124, %c145_125] : memref<16x512xf32, #tpu.memory_space<vmem>>, vector<8x256xf32>
    %207 = vector.broadcast %40 : vector<1x256xf32> to vector<8x256xf32>
    %208 = arith.mulf %206, %207 : vector<8x256xf32>
    %c8_126 = arith.constant 8 : index
    %c0_127 = arith.constant 0 : index
    %c0_128 = arith.constant 0 : index
    %209 = vector.load %arg6[%c8_126, %c0_127, %c0_128] : memref<18x4x8xf32, #tpu.memory_space<vmem>>, vector<1x4x8xf32>
    %210 = vector.shape_cast %209 : vector<1x4x8xf32> to vector<4x8xf32>
    %cst_129 = arith.constant dense<0.000000e+00> : vector<4x256xf32>
    %211 = tpu.matmul %210, %208, %cst_129 {dimension_numbers = #tpu.dot_dimension_numbers<[1], [0], [0], [1], [0, 0, 1, 1], [], []>} : vector<4x8xf32>, vector<8x256xf32>, vector<4x256xf32> -> vector<4x256xf32>
    %212 = arith.addf %205, %211 : vector<4x256xf32>
    %c0_130 = arith.constant 0 : index
    %c94 = arith.constant 94 : index
    %213 = vector.load %arg11[%c0_130, %c94] : memref<16x512xf32, #tpu.memory_space<vmem>>, vector<8x256xf32>
    %214 = vector.broadcast %51 : vector<1x256xf32> to vector<8x256xf32>
    %215 = arith.mulf %213, %214 : vector<8x256xf32>
    %c9 = arith.constant 9 : index
    %c0_131 = arith.constant 0 : index
    %c0_132 = arith.constant 0 : index
    %216 = vector.load %arg6[%c9, %c0_131, %c0_132] : memref<18x4x8xf32, #tpu.memory_space<vmem>>, vector<1x4x8xf32>
    %217 = vector.shape_cast %216 : vector<1x4x8xf32> to vector<4x8xf32>
    %cst_133 = arith.constant dense<0.000000e+00> : vector<4x256xf32>
    %218 = tpu.matmul %217, %215, %cst_133 {dimension_numbers = #tpu.dot_dimension_numbers<[1], [0], [0], [1], [0, 0, 1, 1], [], []>} : vector<4x8xf32>, vector<8x256xf32>, vector<4x256xf32> -> vector<4x256xf32>
    %219 = arith.addf %212, %218 : vector<4x256xf32>
    %c0_134 = arith.constant 0 : index
    %c96 = arith.constant 96 : index
    %220 = vector.load %arg11[%c0_134, %c96] : memref<16x512xf32, #tpu.memory_space<vmem>>, vector<8x256xf32>
    %c10 = arith.constant 10 : index
    %c0_135 = arith.constant 0 : index
    %c0_136 = arith.constant 0 : index
    %221 = vector.load %arg6[%c10, %c0_135, %c0_136] : memref<18x4x8xf32, #tpu.memory_space<vmem>>, vector<1x4x8xf32>
    %222 = vector.shape_cast %221 : vector<1x4x8xf32> to vector<4x8xf32>
    %cst_137 = arith.constant dense<0.000000e+00> : vector<4x256xf32>
    %223 = tpu.matmul %222, %220, %cst_137 {dimension_numbers = #tpu.dot_dimension_numbers<[1], [0], [0], [1], [0, 0, 1, 1], [], []>} : vector<4x8xf32>, vector<8x256xf32>, vector<4x256xf32> -> vector<4x256xf32>
    %224 = arith.addf %219, %223 : vector<4x256xf32>
    %c0_138 = arith.constant 0 : index
    %c98 = arith.constant 98 : index
    %225 = vector.load %arg11[%c0_138, %c98] : memref<16x512xf32, #tpu.memory_space<vmem>>, vector<8x256xf32>
    %226 = vector.broadcast %62 : vector<1x256xf32> to vector<8x256xf32>
    %227 = arith.mulf %225, %226 : vector<8x256xf32>
    %c11 = arith.constant 11 : index
    %c0_139 = arith.constant 0 : index
    %c0_140 = arith.constant 0 : index
    %228 = vector.load %arg6[%c11, %c0_139, %c0_140] : memref<18x4x8xf32, #tpu.memory_space<vmem>>, vector<1x4x8xf32>
    %229 = vector.shape_cast %228 : vector<1x4x8xf32> to vector<4x8xf32>
    %cst_141 = arith.constant dense<0.000000e+00> : vector<4x256xf32>
    %230 = tpu.matmul %229, %227, %cst_141 {dimension_numbers = #tpu.dot_dimension_numbers<[1], [0], [0], [1], [0, 0, 1, 1], [], []>} : vector<4x8xf32>, vector<8x256xf32>, vector<4x256xf32> -> vector<4x256xf32>
    %231 = arith.addf %224, %230 : vector<4x256xf32>
    %c0_142 = arith.constant 0 : index
    %c126 = arith.constant 126 : index
    %232 = vector.load %arg11[%c0_142, %c126] : memref<16x512xf32, #tpu.memory_space<vmem>>, vector<8x256xf32>
    %233 = vector.broadcast %51 : vector<1x256xf32> to vector<8x256xf32>
    %234 = arith.mulf %232, %233 : vector<8x256xf32>
    %c12 = arith.constant 12 : index
    %c0_143 = arith.constant 0 : index
    %c0_144 = arith.constant 0 : index
    %235 = vector.load %arg6[%c12, %c0_143, %c0_144] : memref<18x4x8xf32, #tpu.memory_space<vmem>>, vector<1x4x8xf32>
    %236 = vector.shape_cast %235 : vector<1x4x8xf32> to vector<4x8xf32>
    %cst_145 = arith.constant dense<0.000000e+00> : vector<4x256xf32>
    %237 = tpu.matmul %236, %234, %cst_145 {dimension_numbers = #tpu.dot_dimension_numbers<[1], [0], [0], [1], [0, 0, 1, 1], [], []>} : vector<4x8xf32>, vector<8x256xf32>, vector<4x256xf32> -> vector<4x256xf32>
    %238 = arith.addf %231, %237 : vector<4x256xf32>
    %c0_146 = arith.constant 0 : index
    %c128_147 = arith.constant 128 : index
    %239 = vector.load %arg11[%c0_146, %c128_147] : memref<16x512xf32, #tpu.memory_space<vmem>>, vector<8x256xf32>
    %c13 = arith.constant 13 : index
    %c0_148 = arith.constant 0 : index
    %c0_149 = arith.constant 0 : index
    %240 = vector.load %arg6[%c13, %c0_148, %c0_149] : memref<18x4x8xf32, #tpu.memory_space<vmem>>, vector<1x4x8xf32>
    %241 = vector.shape_cast %240 : vector<1x4x8xf32> to vector<4x8xf32>
    %cst_150 = arith.constant dense<0.000000e+00> : vector<4x256xf32>
    %242 = tpu.matmul %241, %239, %cst_150 {dimension_numbers = #tpu.dot_dimension_numbers<[1], [0], [0], [1], [0, 0, 1, 1], [], []>} : vector<4x8xf32>, vector<8x256xf32>, vector<4x256xf32> -> vector<4x256xf32>
    %243 = arith.addf %238, %242 : vector<4x256xf32>
    %c0_151 = arith.constant 0 : index
    %c130 = arith.constant 130 : index
    %244 = vector.load %arg11[%c0_151, %c130] : memref<16x512xf32, #tpu.memory_space<vmem>>, vector<8x256xf32>
    %245 = vector.broadcast %62 : vector<1x256xf32> to vector<8x256xf32>
    %246 = arith.mulf %244, %245 : vector<8x256xf32>
    %c14 = arith.constant 14 : index
    %c0_152 = arith.constant 0 : index
    %c0_153 = arith.constant 0 : index
    %247 = vector.load %arg6[%c14, %c0_152, %c0_153] : memref<18x4x8xf32, #tpu.memory_space<vmem>>, vector<1x4x8xf32>
    %248 = vector.shape_cast %247 : vector<1x4x8xf32> to vector<4x8xf32>
    %cst_154 = arith.constant dense<0.000000e+00> : vector<4x256xf32>
    %249 = tpu.matmul %248, %246, %cst_154 {dimension_numbers = #tpu.dot_dimension_numbers<[1], [0], [0], [1], [0, 0, 1, 1], [], []>} : vector<4x8xf32>, vector<8x256xf32>, vector<4x256xf32> -> vector<4x256xf32>
    %250 = arith.addf %243, %249 : vector<4x256xf32>
    %c0_155 = arith.constant 0 : index
    %c158 = arith.constant 158 : index
    %251 = vector.load %arg11[%c0_155, %c158] : memref<16x512xf32, #tpu.memory_space<vmem>>, vector<8x256xf32>
    %252 = vector.broadcast %51 : vector<1x256xf32> to vector<8x256xf32>
    %253 = arith.mulf %251, %252 : vector<8x256xf32>
    %c15 = arith.constant 15 : index
    %c0_156 = arith.constant 0 : index
    %c0_157 = arith.constant 0 : index
    %254 = vector.load %arg6[%c15, %c0_156, %c0_157] : memref<18x4x8xf32, #tpu.memory_space<vmem>>, vector<1x4x8xf32>
    %255 = vector.shape_cast %254 : vector<1x4x8xf32> to vector<4x8xf32>
    %cst_158 = arith.constant dense<0.000000e+00> : vector<4x256xf32>
    %256 = tpu.matmul %255, %253, %cst_158 {dimension_numbers = #tpu.dot_dimension_numbers<[1], [0], [0], [1], [0, 0, 1, 1], [], []>} : vector<4x8xf32>, vector<8x256xf32>, vector<4x256xf32> -> vector<4x256xf32>
    %257 = arith.addf %250, %256 : vector<4x256xf32>
    %c0_159 = arith.constant 0 : index
    %c160 = arith.constant 160 : index
    %258 = vector.load %arg11[%c0_159, %c160] : memref<16x512xf32, #tpu.memory_space<vmem>>, vector<8x256xf32>
    %c16 = arith.constant 16 : index
    %c0_160 = arith.constant 0 : index
    %c0_161 = arith.constant 0 : index
    %259 = vector.load %arg6[%c16, %c0_160, %c0_161] : memref<18x4x8xf32, #tpu.memory_space<vmem>>, vector<1x4x8xf32>
    %260 = vector.shape_cast %259 : vector<1x4x8xf32> to vector<4x8xf32>
    %cst_162 = arith.constant dense<0.000000e+00> : vector<4x256xf32>
    %261 = tpu.matmul %260, %258, %cst_162 {dimension_numbers = #tpu.dot_dimension_numbers<[1], [0], [0], [1], [0, 0, 1, 1], [], []>} : vector<4x8xf32>, vector<8x256xf32>, vector<4x256xf32> -> vector<4x256xf32>
    %262 = arith.addf %257, %261 : vector<4x256xf32>
    %c0_163 = arith.constant 0 : index
    %c162 = arith.constant 162 : index
    %263 = vector.load %arg11[%c0_163, %c162] : memref<16x512xf32, #tpu.memory_space<vmem>>, vector<8x256xf32>
    %264 = vector.broadcast %62 : vector<1x256xf32> to vector<8x256xf32>
    %265 = arith.mulf %263, %264 : vector<8x256xf32>
    %c17 = arith.constant 17 : index
    %c0_164 = arith.constant 0 : index
    %c0_165 = arith.constant 0 : index
    %266 = vector.load %arg6[%c17, %c0_164, %c0_165] : memref<18x4x8xf32, #tpu.memory_space<vmem>>, vector<1x4x8xf32>
    %267 = vector.shape_cast %266 : vector<1x4x8xf32> to vector<4x8xf32>
    %cst_166 = arith.constant dense<0.000000e+00> : vector<4x256xf32>
    %268 = tpu.matmul %267, %265, %cst_166 {dimension_numbers = #tpu.dot_dimension_numbers<[1], [0], [0], [1], [0, 0, 1, 1], [], []>} : vector<4x8xf32>, vector<8x256xf32>, vector<4x256xf32> -> vector<4x256xf32>
    %269 = arith.addf %262, %268 : vector<4x256xf32>
    %c0_167 = arith.constant 0 : index
    %c0_168 = arith.constant 0 : index
    %270 = vector.load %arg7[%c0_167, %c0_168] : memref<4x1xf32, #tpu.memory_space<vmem>>, vector<4x1xf32>
    %271 = vector.broadcast %270 : vector<4x1xf32> to vector<4x256xf32>
    %272 = arith.addf %269, %271 : vector<4x256xf32>
    %c8_169 = arith.constant 8 : index
    %c128_170 = arith.constant 128 : index
    %273 = vector.load %arg11[%c8_169, %c128_170] : memref<16x512xf32, #tpu.memory_space<vmem>>, vector<4x256xf32>
    tpu.vector_store %arg11[%c8_169, %c128_170], %272 {strides = array<i32>} : memref<16x512xf32, #tpu.memory_space<vmem>>, vector<4x256xf32>,
    %cst_171 = arith.constant 0.000000e+00 : f32
    %274 = vector.broadcast %cst_171 : f32 to vector<4x256xf32>
    %c0_172 = arith.constant 0 : index
    %c111_173 = arith.constant 111 : index
    %275 = vector.load %arg11[%c0_172, %c111_173] : memref<16x512xf32, #tpu.memory_space<vmem>>, vector<12x256xf32>
    %276 = vector.broadcast %29 : vector<1x256xf32> to vector<12x256xf32>
    %277 = arith.mulf %275, %276 : vector<12x256xf32>
    %c0_174 = arith.constant 0 : index
    %c0_175 = arith.constant 0 : index
    %c0_176 = arith.constant 0 : index
    %278 = vector.load %arg8[%c0_174, %c0_175, %c0_176] : memref<27x4x12xf32, #tpu.memory_space<vmem>>, vector<1x4x12xf32>
    %279 = vector.shape_cast %278 : vector<1x4x12xf32> to vector<4x12xf32>
    %cst_177 = arith.constant dense<0.000000e+00> : vector<4x256xf32>
    %280 = tpu.matmul %279, %277, %cst_177 {dimension_numbers = #tpu.dot_dimension_numbers<[1], [0], [0], [1], [0, 0, 1, 1], [], []>} : vector<4x12xf32>, vector<12x256xf32>, vector<4x256xf32> -> vector<4x256xf32>
    %281 = arith.addf %274, %280 : vector<4x256xf32>
    %c0_178 = arith.constant 0 : index
    %c112_179 = arith.constant 112 : index
    %282 = vector.load %arg11[%c0_178, %c112_179] : memref<16x512xf32, #tpu.memory_space<vmem>>, vector<12x256xf32>
    %c1_180 = arith.constant 1 : index
    %c0_181 = arith.constant 0 : index
    %c0_182 = arith.constant 0 : index
    %283 = vector.load %arg8[%c1_180, %c0_181, %c0_182] : memref<27x4x12xf32, #tpu.memory_space<vmem>>, vector<1x4x12xf32>
    %284 = vector.shape_cast %283 : vector<1x4x12xf32> to vector<4x12xf32>
    %cst_183 = arith.constant dense<0.000000e+00> : vector<4x256xf32>
    %285 = tpu.matmul %284, %282, %cst_183 {dimension_numbers = #tpu.dot_dimension_numbers<[1], [0], [0], [1], [0, 0, 1, 1], [], []>} : vector<4x12xf32>, vector<12x256xf32>, vector<4x256xf32> -> vector<4x256xf32>
    %286 = arith.addf %281, %285 : vector<4x256xf32>
    %c0_184 = arith.constant 0 : index
    %c113_185 = arith.constant 113 : index
    %287 = vector.load %arg11[%c0_184, %c113_185] : memref<16x512xf32, #tpu.memory_space<vmem>>, vector<12x256xf32>
    %288 = vector.broadcast %40 : vector<1x256xf32> to vector<12x256xf32>
    %289 = arith.mulf %287, %288 : vector<12x256xf32>
    %c2_186 = arith.constant 2 : index
    %c0_187 = arith.constant 0 : index
    %c0_188 = arith.constant 0 : index
    %290 = vector.load %arg8[%c2_186, %c0_187, %c0_188] : memref<27x4x12xf32, #tpu.memory_space<vmem>>, vector<1x4x12xf32>
    %291 = vector.shape_cast %290 : vector<1x4x12xf32> to vector<4x12xf32>
    %cst_189 = arith.constant dense<0.000000e+00> : vector<4x256xf32>
    %292 = tpu.matmul %291, %289, %cst_189 {dimension_numbers = #tpu.dot_dimension_numbers<[1], [0], [0], [1], [0, 0, 1, 1], [], []>} : vector<4x12xf32>, vector<12x256xf32>, vector<4x256xf32> -> vector<4x256xf32>
    %293 = arith.addf %286, %292 : vector<4x256xf32>
    %c0_190 = arith.constant 0 : index
    %c127_191 = arith.constant 127 : index
    %294 = vector.load %arg11[%c0_190, %c127_191] : memref<16x512xf32, #tpu.memory_space<vmem>>, vector<12x256xf32>
    %295 = vector.broadcast %29 : vector<1x256xf32> to vector<12x256xf32>
    %296 = arith.mulf %294, %295 : vector<12x256xf32>
    %c3_192 = arith.constant 3 : index
    %c0_193 = arith.constant 0 : index
    %c0_194 = arith.constant 0 : index
    %297 = vector.load %arg8[%c3_192, %c0_193, %c0_194] : memref<27x4x12xf32, #tpu.memory_space<vmem>>, vector<1x4x12xf32>
    %298 = vector.shape_cast %297 : vector<1x4x12xf32> to vector<4x12xf32>
    %cst_195 = arith.constant dense<0.000000e+00> : vector<4x256xf32>
    %299 = tpu.matmul %298, %296, %cst_195 {dimension_numbers = #tpu.dot_dimension_numbers<[1], [0], [0], [1], [0, 0, 1, 1], [], []>} : vector<4x12xf32>, vector<12x256xf32>, vector<4x256xf32> -> vector<4x256xf32>
    %300 = arith.addf %293, %299 : vector<4x256xf32>
    %c0_196 = arith.constant 0 : index
    %c128_197 = arith.constant 128 : index
    %301 = vector.load %arg11[%c0_196, %c128_197] : memref<16x512xf32, #tpu.memory_space<vmem>>, vector<12x256xf32>
    %c4_198 = arith.constant 4 : index
    %c0_199 = arith.constant 0 : index
    %c0_200 = arith.constant 0 : index
    %302 = vector.load %arg8[%c4_198, %c0_199, %c0_200] : memref<27x4x12xf32, #tpu.memory_space<vmem>>, vector<1x4x12xf32>
    %303 = vector.shape_cast %302 : vector<1x4x12xf32> to vector<4x12xf32>
    %cst_201 = arith.constant dense<0.000000e+00> : vector<4x256xf32>
    %304 = tpu.matmul %303, %301, %cst_201 {dimension_numbers = #tpu.dot_dimension_numbers<[1], [0], [0], [1], [0, 0, 1, 1], [], []>} : vector<4x12xf32>, vector<12x256xf32>, vector<4x256xf32> -> vector<4x256xf32>
    %305 = arith.addf %300, %304 : vector<4x256xf32>
    %c0_202 = arith.constant 0 : index
    %c129_203 = arith.constant 129 : index
    %306 = vector.load %arg11[%c0_202, %c129_203] : memref<16x512xf32, #tpu.memory_space<vmem>>, vector<12x256xf32>
    %307 = vector.broadcast %40 : vector<1x256xf32> to vector<12x256xf32>
    %308 = arith.mulf %306, %307 : vector<12x256xf32>
    %c5_204 = arith.constant 5 : index
    %c0_205 = arith.constant 0 : index
    %c0_206 = arith.constant 0 : index
    %309 = vector.load %arg8[%c5_204, %c0_205, %c0_206] : memref<27x4x12xf32, #tpu.memory_space<vmem>>, vector<1x4x12xf32>
    %310 = vector.shape_cast %309 : vector<1x4x12xf32> to vector<4x12xf32>
    %cst_207 = arith.constant dense<0.000000e+00> : vector<4x256xf32>
    %311 = tpu.matmul %310, %308, %cst_207 {dimension_numbers = #tpu.dot_dimension_numbers<[1], [0], [0], [1], [0, 0, 1, 1], [], []>} : vector<4x12xf32>, vector<12x256xf32>, vector<4x256xf32> -> vector<4x256xf32>
    %312 = arith.addf %305, %311 : vector<4x256xf32>
    %c0_208 = arith.constant 0 : index
    %c143_209 = arith.constant 143 : index
    %313 = vector.load %arg11[%c0_208, %c143_209] : memref<16x512xf32, #tpu.memory_space<vmem>>, vector<12x256xf32>
    %314 = vector.broadcast %29 : vector<1x256xf32> to vector<12x256xf32>
    %315 = arith.mulf %313, %314 : vector<12x256xf32>
    %c6_210 = arith.constant 6 : index
    %c0_211 = arith.constant 0 : index
    %c0_212 = arith.constant 0 : index
    %316 = vector.load %arg8[%c6_210, %c0_211, %c0_212] : memref<27x4x12xf32, #tpu.memory_space<vmem>>, vector<1x4x12xf32>
    %317 = vector.shape_cast %316 : vector<1x4x12xf32> to vector<4x12xf32>
    %cst_213 = arith.constant dense<0.000000e+00> : vector<4x256xf32>
    %318 = tpu.matmul %317, %315, %cst_213 {dimension_numbers = #tpu.dot_dimension_numbers<[1], [0], [0], [1], [0, 0, 1, 1], [], []>} : vector<4x12xf32>, vector<12x256xf32>, vector<4x256xf32> -> vector<4x256xf32>
    %319 = arith.addf %312, %318 : vector<4x256xf32>
    %c0_214 = arith.constant 0 : index
    %c144_215 = arith.constant 144 : index
    %320 = vector.load %arg11[%c0_214, %c144_215] : memref<16x512xf32, #tpu.memory_space<vmem>>, vector<12x256xf32>
    %c7_216 = arith.constant 7 : index
    %c0_217 = arith.constant 0 : index
    %c0_218 = arith.constant 0 : index
    %321 = vector.load %arg8[%c7_216, %c0_217, %c0_218] : memref<27x4x12xf32, #tpu.memory_space<vmem>>, vector<1x4x12xf32>
    %322 = vector.shape_cast %321 : vector<1x4x12xf32> to vector<4x12xf32>
    %cst_219 = arith.constant dense<0.000000e+00> : vector<4x256xf32>
    %323 = tpu.matmul %322, %320, %cst_219 {dimension_numbers = #tpu.dot_dimension_numbers<[1], [0], [0], [1], [0, 0, 1, 1], [], []>} : vector<4x12xf32>, vector<12x256xf32>, vector<4x256xf32> -> vector<4x256xf32>
    %324 = arith.addf %319, %323 : vector<4x256xf32>
    %c0_220 = arith.constant 0 : index
    %c145_221 = arith.constant 145 : index
    %325 = vector.load %arg11[%c0_220, %c145_221] : memref<16x512xf32, #tpu.memory_space<vmem>>, vector<12x256xf32>
    %326 = vector.broadcast %40 : vector<1x256xf32> to vector<12x256xf32>
    %327 = arith.mulf %325, %326 : vector<12x256xf32>
    %c8_222 = arith.constant 8 : index
    %c0_223 = arith.constant 0 : index
    %c0_224 = arith.constant 0 : index
    %328 = vector.load %arg8[%c8_222, %c0_223, %c0_224] : memref<27x4x12xf32, #tpu.memory_space<vmem>>, vector<1x4x12xf32>
    %329 = vector.shape_cast %328 : vector<1x4x12xf32> to vector<4x12xf32>
    %cst_225 = arith.constant dense<0.000000e+00> : vector<4x256xf32>
    %330 = tpu.matmul %329, %327, %cst_225 {dimension_numbers = #tpu.dot_dimension_numbers<[1], [0], [0], [1], [0, 0, 1, 1], [], []>} : vector<4x12xf32>, vector<12x256xf32>, vector<4x256xf32> -> vector<4x256xf32>
    %331 = arith.addf %324, %330 : vector<4x256xf32>
    %c0_226 = arith.constant 0 : index
    %c94_227 = arith.constant 94 : index
    %332 = vector.load %arg11[%c0_226, %c94_227] : memref<16x512xf32, #tpu.memory_space<vmem>>, vector<12x256xf32>
    %333 = vector.broadcast %51 : vector<1x256xf32> to vector<12x256xf32>
    %334 = arith.mulf %332, %333 : vector<12x256xf32>
    %c9_228 = arith.constant 9 : index
    %c0_229 = arith.constant 0 : index
    %c0_230 = arith.constant 0 : index
    %335 = vector.load %arg8[%c9_228, %c0_229, %c0_230] : memref<27x4x12xf32, #tpu.memory_space<vmem>>, vector<1x4x12xf32>
    %336 = vector.shape_cast %335 : vector<1x4x12xf32> to vector<4x12xf32>
    %cst_231 = arith.constant dense<0.000000e+00> : vector<4x256xf32>
    %337 = tpu.matmul %336, %334, %cst_231 {dimension_numbers = #tpu.dot_dimension_numbers<[1], [0], [0], [1], [0, 0, 1, 1], [], []>} : vector<4x12xf32>, vector<12x256xf32>, vector<4x256xf32> -> vector<4x256xf32>
    %338 = arith.addf %331, %337 : vector<4x256xf32>
    %c0_232 = arith.constant 0 : index
    %c96_233 = arith.constant 96 : index
    %339 = vector.load %arg11[%c0_232, %c96_233] : memref<16x512xf32, #tpu.memory_space<vmem>>, vector<12x256xf32>
    %c10_234 = arith.constant 10 : index
    %c0_235 = arith.constant 0 : index
    %c0_236 = arith.constant 0 : index
    %340 = vector.load %arg8[%c10_234, %c0_235, %c0_236] : memref<27x4x12xf32, #tpu.memory_space<vmem>>, vector<1x4x12xf32>
    %341 = vector.shape_cast %340 : vector<1x4x12xf32> to vector<4x12xf32>
    %cst_237 = arith.constant dense<0.000000e+00> : vector<4x256xf32>
    %342 = tpu.matmul %341, %339, %cst_237 {dimension_numbers = #tpu.dot_dimension_numbers<[1], [0], [0], [1], [0, 0, 1, 1], [], []>} : vector<4x12xf32>, vector<12x256xf32>, vector<4x256xf32> -> vector<4x256xf32>
    %343 = arith.addf %338, %342 : vector<4x256xf32>
    %c0_238 = arith.constant 0 : index
    %c98_239 = arith.constant 98 : index
    %344 = vector.load %arg11[%c0_238, %c98_239] : memref<16x512xf32, #tpu.memory_space<vmem>>, vector<12x256xf32>
    %345 = vector.broadcast %62 : vector<1x256xf32> to vector<12x256xf32>
    %346 = arith.mulf %344, %345 : vector<12x256xf32>
    %c11_240 = arith.constant 11 : index
    %c0_241 = arith.constant 0 : index
    %c0_242 = arith.constant 0 : index
    %347 = vector.load %arg8[%c11_240, %c0_241, %c0_242] : memref<27x4x12xf32, #tpu.memory_space<vmem>>, vector<1x4x12xf32>
    %348 = vector.shape_cast %347 : vector<1x4x12xf32> to vector<4x12xf32>
    %cst_243 = arith.constant dense<0.000000e+00> : vector<4x256xf32>
    %349 = tpu.matmul %348, %346, %cst_243 {dimension_numbers = #tpu.dot_dimension_numbers<[1], [0], [0], [1], [0, 0, 1, 1], [], []>} : vector<4x12xf32>, vector<12x256xf32>, vector<4x256xf32> -> vector<4x256xf32>
    %350 = arith.addf %343, %349 : vector<4x256xf32>
    %c0_244 = arith.constant 0 : index
    %c126_245 = arith.constant 126 : index
    %351 = vector.load %arg11[%c0_244, %c126_245] : memref<16x512xf32, #tpu.memory_space<vmem>>, vector<12x256xf32>
    %352 = vector.broadcast %51 : vector<1x256xf32> to vector<12x256xf32>
    %353 = arith.mulf %351, %352 : vector<12x256xf32>
    %c12_246 = arith.constant 12 : index
    %c0_247 = arith.constant 0 : index
    %c0_248 = arith.constant 0 : index
    %354 = vector.load %arg8[%c12_246, %c0_247, %c0_248] : memref<27x4x12xf32, #tpu.memory_space<vmem>>, vector<1x4x12xf32>
    %355 = vector.shape_cast %354 : vector<1x4x12xf32> to vector<4x12xf32>
    %cst_249 = arith.constant dense<0.000000e+00> : vector<4x256xf32>
    %356 = tpu.matmul %355, %353, %cst_249 {dimension_numbers = #tpu.dot_dimension_numbers<[1], [0], [0], [1], [0, 0, 1, 1], [], []>} : vector<4x12xf32>, vector<12x256xf32>, vector<4x256xf32> -> vector<4x256xf32>
    %357 = arith.addf %350, %356 : vector<4x256xf32>
    %c0_250 = arith.constant 0 : index
    %c128_251 = arith.constant 128 : index
    %358 = vector.load %arg11[%c0_250, %c128_251] : memref<16x512xf32, #tpu.memory_space<vmem>>, vector<12x256xf32>
    %c13_252 = arith.constant 13 : index
    %c0_253 = arith.constant 0 : index
    %c0_254 = arith.constant 0 : index
    %359 = vector.load %arg8[%c13_252, %c0_253, %c0_254] : memref<27x4x12xf32, #tpu.memory_space<vmem>>, vector<1x4x12xf32>
    %360 = vector.shape_cast %359 : vector<1x4x12xf32> to vector<4x12xf32>
    %cst_255 = arith.constant dense<0.000000e+00> : vector<4x256xf32>
    %361 = tpu.matmul %360, %358, %cst_255 {dimension_numbers = #tpu.dot_dimension_numbers<[1], [0], [0], [1], [0, 0, 1, 1], [], []>} : vector<4x12xf32>, vector<12x256xf32>, vector<4x256xf32> -> vector<4x256xf32>
    %362 = arith.addf %357, %361 : vector<4x256xf32>
    %c0_256 = arith.constant 0 : index
    %c130_257 = arith.constant 130 : index
    %363 = vector.load %arg11[%c0_256, %c130_257] : memref<16x512xf32, #tpu.memory_space<vmem>>, vector<12x256xf32>
    %364 = vector.broadcast %62 : vector<1x256xf32> to vector<12x256xf32>
    %365 = arith.mulf %363, %364 : vector<12x256xf32>
    %c14_258 = arith.constant 14 : index
    %c0_259 = arith.constant 0 : index
    %c0_260 = arith.constant 0 : index
    %366 = vector.load %arg8[%c14_258, %c0_259, %c0_260] : memref<27x4x12xf32, #tpu.memory_space<vmem>>, vector<1x4x12xf32>
    %367 = vector.shape_cast %366 : vector<1x4x12xf32> to vector<4x12xf32>
    %cst_261 = arith.constant dense<0.000000e+00> : vector<4x256xf32>
    %368 = tpu.matmul %367, %365, %cst_261 {dimension_numbers = #tpu.dot_dimension_numbers<[1], [0], [0], [1], [0, 0, 1, 1], [], []>} : vector<4x12xf32>, vector<12x256xf32>, vector<4x256xf32> -> vector<4x256xf32>
    %369 = arith.addf %362, %368 : vector<4x256xf32>
    %c0_262 = arith.constant 0 : index
    %c158_263 = arith.constant 158 : index
    %370 = vector.load %arg11[%c0_262, %c158_263] : memref<16x512xf32, #tpu.memory_space<vmem>>, vector<12x256xf32>
    %371 = vector.broadcast %51 : vector<1x256xf32> to vector<12x256xf32>
    %372 = arith.mulf %370, %371 : vector<12x256xf32>
    %c15_264 = arith.constant 15 : index
    %c0_265 = arith.constant 0 : index
    %c0_266 = arith.constant 0 : index
    %373 = vector.load %arg8[%c15_264, %c0_265, %c0_266] : memref<27x4x12xf32, #tpu.memory_space<vmem>>, vector<1x4x12xf32>
    %374 = vector.shape_cast %373 : vector<1x4x12xf32> to vector<4x12xf32>
    %cst_267 = arith.constant dense<0.000000e+00> : vector<4x256xf32>
    %375 = tpu.matmul %374, %372, %cst_267 {dimension_numbers = #tpu.dot_dimension_numbers<[1], [0], [0], [1], [0, 0, 1, 1], [], []>} : vector<4x12xf32>, vector<12x256xf32>, vector<4x256xf32> -> vector<4x256xf32>
    %376 = arith.addf %369, %375 : vector<4x256xf32>
    %c0_268 = arith.constant 0 : index
    %c160_269 = arith.constant 160 : index
    %377 = vector.load %arg11[%c0_268, %c160_269] : memref<16x512xf32, #tpu.memory_space<vmem>>, vector<12x256xf32>
    %c16_270 = arith.constant 16 : index
    %c0_271 = arith.constant 0 : index
    %c0_272 = arith.constant 0 : index
    %378 = vector.load %arg8[%c16_270, %c0_271, %c0_272] : memref<27x4x12xf32, #tpu.memory_space<vmem>>, vector<1x4x12xf32>
    %379 = vector.shape_cast %378 : vector<1x4x12xf32> to vector<4x12xf32>
    %cst_273 = arith.constant dense<0.000000e+00> : vector<4x256xf32>
    %380 = tpu.matmul %379, %377, %cst_273 {dimension_numbers = #tpu.dot_dimension_numbers<[1], [0], [0], [1], [0, 0, 1, 1], [], []>} : vector<4x12xf32>, vector<12x256xf32>, vector<4x256xf32> -> vector<4x256xf32>
    %381 = arith.addf %376, %380 : vector<4x256xf32>
    %c0_274 = arith.constant 0 : index
    %c162_275 = arith.constant 162 : index
    %382 = vector.load %arg11[%c0_274, %c162_275] : memref<16x512xf32, #tpu.memory_space<vmem>>, vector<12x256xf32>
    %383 = vector.broadcast %62 : vector<1x256xf32> to vector<12x256xf32>
    %384 = arith.mulf %382, %383 : vector<12x256xf32>
    %c17_276 = arith.constant 17 : index
    %c0_277 = arith.constant 0 : index
    %c0_278 = arith.constant 0 : index
    %385 = vector.load %arg8[%c17_276, %c0_277, %c0_278] : memref<27x4x12xf32, #tpu.memory_space<vmem>>, vector<1x4x12xf32>
    %386 = vector.shape_cast %385 : vector<1x4x12xf32> to vector<4x12xf32>
    %cst_279 = arith.constant dense<0.000000e+00> : vector<4x256xf32>
    %387 = tpu.matmul %386, %384, %cst_279 {dimension_numbers = #tpu.dot_dimension_numbers<[1], [0], [0], [1], [0, 0, 1, 1], [], []>} : vector<4x12xf32>, vector<12x256xf32>, vector<4x256xf32> -> vector<4x256xf32>
    %388 = arith.addf %381, %387 : vector<4x256xf32>
    %c0_280 = arith.constant 0 : index
    %c60 = arith.constant 60 : index
    %389 = vector.load %arg11[%c0_280, %c60] : memref<16x512xf32, #tpu.memory_space<vmem>>, vector<12x256xf32>
    %390 = vector.broadcast %73 : vector<1x256xf32> to vector<12x256xf32>
    %391 = arith.mulf %389, %390 : vector<12x256xf32>
    %c18 = arith.constant 18 : index
    %c0_281 = arith.constant 0 : index
    %c0_282 = arith.constant 0 : index
    %392 = vector.load %arg8[%c18, %c0_281, %c0_282] : memref<27x4x12xf32, #tpu.memory_space<vmem>>, vector<1x4x12xf32>
    %393 = vector.shape_cast %392 : vector<1x4x12xf32> to vector<4x12xf32>
    %cst_283 = arith.constant dense<0.000000e+00> : vector<4x256xf32>
    %394 = tpu.matmul %393, %391, %cst_283 {dimension_numbers = #tpu.dot_dimension_numbers<[1], [0], [0], [1], [0, 0, 1, 1], [], []>} : vector<4x12xf32>, vector<12x256xf32>, vector<4x256xf32> -> vector<4x256xf32>
    %395 = arith.addf %388, %394 : vector<4x256xf32>
    %c0_284 = arith.constant 0 : index
    %c64 = arith.constant 64 : index
    %396 = vector.load %arg11[%c0_284, %c64] : memref<16x512xf32, #tpu.memory_space<vmem>>, vector<12x256xf32>
    %c19 = arith.constant 19 : index
    %c0_285 = arith.constant 0 : index
    %c0_286 = arith.constant 0 : index
    %397 = vector.load %arg8[%c19, %c0_285, %c0_286] : memref<27x4x12xf32, #tpu.memory_space<vmem>>, vector<1x4x12xf32>
    %398 = vector.shape_cast %397 : vector<1x4x12xf32> to vector<4x12xf32>
    %cst_287 = arith.constant dense<0.000000e+00> : vector<4x256xf32>
    %399 = tpu.matmul %398, %396, %cst_287 {dimension_numbers = #tpu.dot_dimension_numbers<[1], [0], [0], [1], [0, 0, 1, 1], [], []>} : vector<4x12xf32>, vector<12x256xf32>, vector<4x256xf32> -> vector<4x256xf32>
    %400 = arith.addf %395, %399 : vector<4x256xf32>
    %c0_288 = arith.constant 0 : index
    %c68 = arith.constant 68 : index
    %401 = vector.load %arg11[%c0_288, %c68] : memref<16x512xf32, #tpu.memory_space<vmem>>, vector<12x256xf32>
    %402 = vector.broadcast %84 : vector<1x256xf32> to vector<12x256xf32>
    %403 = arith.mulf %401, %402 : vector<12x256xf32>
    %c20 = arith.constant 20 : index
    %c0_289 = arith.constant 0 : index
    %c0_290 = arith.constant 0 : index
    %404 = vector.load %arg8[%c20, %c0_289, %c0_290] : memref<27x4x12xf32, #tpu.memory_space<vmem>>, vector<1x4x12xf32>
    %405 = vector.shape_cast %404 : vector<1x4x12xf32> to vector<4x12xf32>
    %cst_291 = arith.constant dense<0.000000e+00> : vector<4x256xf32>
    %406 = tpu.matmul %405, %403, %cst_291 {dimension_numbers = #tpu.dot_dimension_numbers<[1], [0], [0], [1], [0, 0, 1, 1], [], []>} : vector<4x12xf32>, vector<12x256xf32>, vector<4x256xf32> -> vector<4x256xf32>
    %407 = arith.addf %400, %406 : vector<4x256xf32>
    %c0_292 = arith.constant 0 : index
    %c124 = arith.constant 124 : index
    %408 = vector.load %arg11[%c0_292, %c124] : memref<16x512xf32, #tpu.memory_space<vmem>>, vector<12x256xf32>
    %409 = vector.broadcast %73 : vector<1x256xf32> to vector<12x256xf32>
    %410 = arith.mulf %408, %409 : vector<12x256xf32>
    %c21 = arith.constant 21 : index
    %c0_293 = arith.constant 0 : index
    %c0_294 = arith.constant 0 : index
    %411 = vector.load %arg8[%c21, %c0_293, %c0_294] : memref<27x4x12xf32, #tpu.memory_space<vmem>>, vector<1x4x12xf32>
    %412 = vector.shape_cast %411 : vector<1x4x12xf32> to vector<4x12xf32>
    %cst_295 = arith.constant dense<0.000000e+00> : vector<4x256xf32>
    %413 = tpu.matmul %412, %410, %cst_295 {dimension_numbers = #tpu.dot_dimension_numbers<[1], [0], [0], [1], [0, 0, 1, 1], [], []>} : vector<4x12xf32>, vector<12x256xf32>, vector<4x256xf32> -> vector<4x256xf32>
    %414 = arith.addf %407, %413 : vector<4x256xf32>
    %c0_296 = arith.constant 0 : index
    %c128_297 = arith.constant 128 : index
    %415 = vector.load %arg11[%c0_296, %c128_297] : memref<16x512xf32, #tpu.memory_space<vmem>>, vector<12x256xf32>
    %c22 = arith.constant 22 : index
    %c0_298 = arith.constant 0 : index
    %c0_299 = arith.constant 0 : index
    %416 = vector.load %arg8[%c22, %c0_298, %c0_299] : memref<27x4x12xf32, #tpu.memory_space<vmem>>, vector<1x4x12xf32>
    %417 = vector.shape_cast %416 : vector<1x4x12xf32> to vector<4x12xf32>
    %cst_300 = arith.constant dense<0.000000e+00> : vector<4x256xf32>
    %418 = tpu.matmul %417, %415, %cst_300 {dimension_numbers = #tpu.dot_dimension_numbers<[1], [0], [0], [1], [0, 0, 1, 1], [], []>} : vector<4x12xf32>, vector<12x256xf32>, vector<4x256xf32> -> vector<4x256xf32>
    %419 = arith.addf %414, %418 : vector<4x256xf32>
    %c0_301 = arith.constant 0 : index
    %c132 = arith.constant 132 : index
    %420 = vector.load %arg11[%c0_301, %c132] : memref<16x512xf32, #tpu.memory_space<vmem>>, vector<12x256xf32>
    %421 = vector.broadcast %84 : vector<1x256xf32> to vector<12x256xf32>
    %422 = arith.mulf %420, %421 : vector<12x256xf32>
    %c23 = arith.constant 23 : index
    %c0_302 = arith.constant 0 : index
    %c0_303 = arith.constant 0 : index
    %423 = vector.load %arg8[%c23, %c0_302, %c0_303] : memref<27x4x12xf32, #tpu.memory_space<vmem>>, vector<1x4x12xf32>
    %424 = vector.shape_cast %423 : vector<1x4x12xf32> to vector<4x12xf32>
    %cst_304 = arith.constant dense<0.000000e+00> : vector<4x256xf32>
    %425 = tpu.matmul %424, %422, %cst_304 {dimension_numbers = #tpu.dot_dimension_numbers<[1], [0], [0], [1], [0, 0, 1, 1], [], []>} : vector<4x12xf32>, vector<12x256xf32>, vector<4x256xf32> -> vector<4x256xf32>
    %426 = arith.addf %419, %425 : vector<4x256xf32>
    %c0_305 = arith.constant 0 : index
    %c188 = arith.constant 188 : index
    %427 = vector.load %arg11[%c0_305, %c188] : memref<16x512xf32, #tpu.memory_space<vmem>>, vector<12x256xf32>
    %428 = vector.broadcast %73 : vector<1x256xf32> to vector<12x256xf32>
    %429 = arith.mulf %427, %428 : vector<12x256xf32>
    %c24 = arith.constant 24 : index
    %c0_306 = arith.constant 0 : index
    %c0_307 = arith.constant 0 : index
    %430 = vector.load %arg8[%c24, %c0_306, %c0_307] : memref<27x4x12xf32, #tpu.memory_space<vmem>>, vector<1x4x12xf32>
    %431 = vector.shape_cast %430 : vector<1x4x12xf32> to vector<4x12xf32>
    %cst_308 = arith.constant dense<0.000000e+00> : vector<4x256xf32>
    %432 = tpu.matmul %431, %429, %cst_308 {dimension_numbers = #tpu.dot_dimension_numbers<[1], [0], [0], [1], [0, 0, 1, 1], [], []>} : vector<4x12xf32>, vector<12x256xf32>, vector<4x256xf32> -> vector<4x256xf32>
    %433 = arith.addf %426, %432 : vector<4x256xf32>
    %c0_309 = arith.constant 0 : index
    %c192 = arith.constant 192 : index
    %434 = vector.load %arg11[%c0_309, %c192] : memref<16x512xf32, #tpu.memory_space<vmem>>, vector<12x256xf32>
    %c25 = arith.constant 25 : index
    %c0_310 = arith.constant 0 : index
    %c0_311 = arith.constant 0 : index
    %435 = vector.load %arg8[%c25, %c0_310, %c0_311] : memref<27x4x12xf32, #tpu.memory_space<vmem>>, vector<1x4x12xf32>
    %436 = vector.shape_cast %435 : vector<1x4x12xf32> to vector<4x12xf32>
    %cst_312 = arith.constant dense<0.000000e+00> : vector<4x256xf32>
    %437 = tpu.matmul %436, %434, %cst_312 {dimension_numbers = #tpu.dot_dimension_numbers<[1], [0], [0], [1], [0, 0, 1, 1], [], []>} : vector<4x12xf32>, vector<12x256xf32>, vector<4x256xf32> -> vector<4x256xf32>
    %438 = arith.addf %433, %437 : vector<4x256xf32>
    %c0_313 = arith.constant 0 : index
    %c196 = arith.constant 196 : index
    %439 = vector.load %arg11[%c0_313, %c196] : memref<16x512xf32, #tpu.memory_space<vmem>>, vector<12x256xf32>
    %440 = vector.broadcast %84 : vector<1x256xf32> to vector<12x256xf32>
    %441 = arith.mulf %439, %440 : vector<12x256xf32>
    %c26 = arith.constant 26 : index
    %c0_314 = arith.constant 0 : index
    %c0_315 = arith.constant 0 : index
    %442 = vector.load %arg8[%c26, %c0_314, %c0_315] : memref<27x4x12xf32, #tpu.memory_space<vmem>>, vector<1x4x12xf32>
    %443 = vector.shape_cast %442 : vector<1x4x12xf32> to vector<4x12xf32>
    %cst_316 = arith.constant dense<0.000000e+00> : vector<4x256xf32>
    %444 = tpu.matmul %443, %441, %cst_316 {dimension_numbers = #tpu.dot_dimension_numbers<[1], [0], [0], [1], [0, 0, 1, 1], [], []>} : vector<4x12xf32>, vector<12x256xf32>, vector<4x256xf32> -> vector<4x256xf32>
    %445 = arith.addf %438, %444 : vector<4x256xf32>
    %c0_317 = arith.constant 0 : index
    %c0_318 = arith.constant 0 : index
    %446 = vector.load %arg9[%c0_317, %c0_318] : memref<4x1xf32, #tpu.memory_space<vmem>>, vector<4x1xf32>
    %447 = vector.broadcast %446 : vector<4x1xf32> to vector<4x256xf32>
    %448 = arith.addf %445, %447 : vector<4x256xf32>
    %c12_319 = arith.constant 12 : index
    %c128_320 = arith.constant 128 : index
    %449 = vector.load %arg11[%c12_319, %c128_320] : memref<16x512xf32, #tpu.memory_space<vmem>>, vector<4x256xf32>
    tpu.vector_store %arg11[%c12_319, %c128_320], %448 {strides = array<i32>} : memref<16x512xf32, #tpu.memory_space<vmem>>, vector<4x256xf32>,
    %c0_321 = arith.constant 0 : index
    %c128_322 = arith.constant 128 : index
    %450 = vector.load %arg11[%c0_321, %c128_322] : memref<16x512xf32, #tpu.memory_space<vmem>>, vector<16x256xf32>
    %c0_323 = arith.constant 0 : index
    %c0_324 = arith.constant 0 : index
    %c0_325 = arith.constant 0 : index
    %451 = vector.load %arg10[%c0_323, %c0_324, %c0_325] : memref<1x16x256xf32, #tpu.memory_space<vmem>>, vector<1x16x256xf32>
    %452 = vector.shape_cast %451 : vector<1x16x256xf32> to vector<16x256xf32>
    %453 = vector.shape_cast %450 : vector<16x256xf32> to vector<1x16x256xf32>
    tpu.vector_store %arg10[%c0_323, %c0_324, %c0_325], %453 {strides = array<i32>} : memref<1x16x256xf32, #tpu.memory_space<vmem>>, vector<1x16x256xf32>,
    return
  }
  func.func @transform_0(%arg0: i32) -> (i32, i32, i32) {
    %c0_i32 = arith.constant 0 : i32
    %c0_i32_0 = arith.constant 0 : i32
    %c0_i32_1 = arith.constant 0 : i32
    return %arg0, %c0_i32, %c0_i32_0 : i32, i32, i32
  }
  func.func @transform_1(%arg0: i32) -> (i32, i32) {
    %c0_i32 = arith.constant 0 : i32
    %c0_i32_0 = arith.constant 0 : i32
    %c0_i32_1 = arith.constant 0 : i32
    return %c0_i32, %c0_i32_0 : i32, i32
  }
  func.func @transform_2(%arg0: i32) -> (i32, i32) {
    %c0_i32 = arith.constant 0 : i32
    %c0_i32_0 = arith.constant 0 : i32
    %c0_i32_1 = arith.constant 0 : i32
    return %c0_i32, %c0_i32_0 : i32, i32
  }
  func.func @transform_3(%arg0: i32) -> (i32, i32, i32) {
    %c0_i32 = arith.constant 0 : i32
    %c0_i32_0 = arith.constant 0 : i32
    %c0_i32_1 = arith.constant 0 : i32
    %c0_i32_2 = arith.constant 0 : i32
    return %c0_i32, %c0_i32_0, %c0_i32_1 : i32, i32, i32
  }
  func.func @transform_4(%arg0: i32) -> (i32, i32) {
    %c0_i32 = arith.constant 0 : i32
    %c0_i32_0 = arith.constant 0 : i32
    %c0_i32_1 = arith.constant 0 : i32
    return %c0_i32, %c0_i32_0 : i32, i32
  }
  func.func @transform_5(%arg0: i32) -> (i32, i32, i32) {
    %c0_i32 = arith.constant 0 : i32
    %c0_i32_0 = arith.constant 0 : i32
    %c0_i32_1 = arith.constant 0 : i32
    %c0_i32_2 = arith.constant 0 : i32
    return %c0_i32, %c0_i32_0, %c0_i32_1 : i32, i32, i32
  }
  func.func @transform_6(%arg0: i32) -> (i32, i32) {
    %c0_i32 = arith.constant 0 : i32
    %c0_i32_0 = arith.constant 0 : i32
    %c0_i32_1 = arith.constant 0 : i32
    return %c0_i32, %c0_i32_0 : i32, i32
  }
  func.func @transform_7(%arg0: i32) -> (i32, i32, i32) {
    %c0_i32 = arith.constant 0 : i32
    %c0_i32_0 = arith.constant 0 : i32
    %c0_i32_1 = arith.constant 0 : i32
    %c0_i32_2 = arith.constant 0 : i32
    return %c0_i32, %c0_i32_0, %c0_i32_1 : i32, i32, i32
  }
  func.func @transform_8(%arg0: i32) -> (i32, i32) {
    %c0_i32 = arith.constant 0 : i32
    %c0_i32_0 = arith.constant 0 : i32
    %c0_i32_1 = arith.constant 0 : i32
    return %c0_i32, %c0_i32_0 : i32, i32
  }
  func.func @transform_9(%arg0: i32) -> (i32, i32, i32) {
    %c0_i32 = arith.constant 0 : i32
    %c0_i32_0 = arith.constant 0 : i32
    %c0_i32_1 = arith.constant 0 : i32
    return %arg0, %c0_i32, %c0_i32_0 : i32, i32, i32
  }
}

</mosaic_0001>

<bundles_post_ra>
// kernel: tpu_custom_call.1
= control target key start
LH: loop header
LB: loop body
LE: loop exit
PB: predicated region body
PF: predicated region fallthrough
CT: control target
= control target key end

     0   :  { %s7080_s0 = inlined_call_operand.vmem [shape: f32[2,8,256], index: 0, kind: input, shape index: {}]   ;;  %s7081_s1 = inlined_call_operand.vmem [shape: f32[4,8], index: 1, kind: input, shape index: {}]   ;;  %s7082_s2 = inlined_call_operand.vmem [shape: f32[4,1], index: 2, kind: input, shape index: {}]   ;;  %s7083_s3 = inlined_call_operand.vmem [shape: f32[9,4,4], index: 3, kind: input, shape index: {}]   ;;  %s7084_s4 = inlined_call_operand.vmem [shape: f32[4,1], index: 4, kind: input, shape index: {}]   ;;  %s7085_s5 = inlined_call_operand.vmem [shape: f32[18,4,8], index: 5, kind: input, shape index: {}]   ;;  %s7086_s6 = inlined_call_operand.vmem [shape: f32[4,1], index: 6, kind: input, shape index: {}]   ;;  %s7087_s7 = inlined_call_operand.vmem [shape: f32[27,4,12], index: 7, kind: input, shape index: {}]   ;;  %s7088_s8 = inlined_call_operand.vmem [shape: f32[4,1], index: 8, kind: input, shape index: {}]   ;;  %s7089_s9 = inlined_call_operand.hbm [shape: f32[2,16,256], index: 9, kind: output, shape index: {}]  }
   0x1   :  { %7183 = sst [smem:[#allocation45_spill]] %s7080_s0 }
   0x2   :  { %7184 = sst [smem:[#allocation46_spill]] %s7081_s1 }
   0x3   :  { %7185 = sst [smem:[#allocation47_spill]] %s7082_s2 }
   0x4   :  { %7186 = sst [smem:[#allocation48_spill]] %s7083_s3 }
   0x5   :  { %7187 = sst [smem:[#allocation49_spill]] %s7084_s4 }
   0x6   :  { %7188 = sst [smem:[#allocation50_spill]] %s7085_s5 }
   0x7   :  { %7189 = sst [smem:[#allocation51_spill]] %s7086_s6 }
   0x8   :  { %14 = vsyncpa [#allocation4], 0 }
   0x9   :  { %16 = vsyncpa [#allocation4 + $0x1], 0  ;;  %s5289_s30 = smov 0   ;;  %s5291_s10 = smov 0  }
   0xa   :  { %s5293_s11 = smov 0   ;;  %s5295_s12 = smov 0  }
   0xb LB: > { %7190 = sst [smem:[#allocation6_spill]] %s5209_s11  ;;  %s5310_s13 = sadd.s32 4294967295, %s5213_s12   ;;  %s5213_s12 = sphi %s5295_s12, %s7417_s12   ;;  %s5209_s11 = sphi %s5293_s11, %s7414_s11   ;;  %s5205_s10 = sphi %s5291_s10, %s7416_s10   ;;  %s5201_s30 = sphi %s5289_s30, %s7415_s30  }
   0xc   : > { %s4471_s14 = sadd.s32 4294967294, %s5213_s12   ;;  %s5314_s15 = sadd.s32 1, %s5213_s12  }
   0xd   : > { %s223_s16 = sadd.s32 1, %s5209_s11  ;;  %s220_s17 = ssub.s32 %s5213_s12, %s5314_s15 }
   0xe   : > { %p233_p0 = scmp.ne.s32.totalorder %s5209_s11, %s5205_s10  ;;  %p221_p1 = scmp.eq.s32.totalorder %s220_s17, 0 }
   0xf   : > { %p234_p2 = scmp.eq.s32.totalorder %s5310_s13, 1  ;;  %p239_p3 = scmp.ne.s32.totalorder %s5205_s10, %s5201_s30 }
  0x10   : > { %p240_p4 = scmp.eq.s32.totalorder %s4471_s14, 1  ;;  %p4474_p7 = scmp.ge.s32.totalorder %s5213_s12, 1 }
  0x11   : > { %s5325_s18 = scalar_select %p221_p1, %s5209_s11, %s223_s16  }
  0x12   : > { %p5327_p5 = por %p234_p2, %p233_p0  ;;  %p5331_p6 = por %p240_p4, %p239_p3 }
  0x13   : > { %7191 = sst [smem:[#allocation7_spill]] %s5325_s18  ;;  %p290_p8 = scmp.lt.s32.totalorder %s5213_s12, 3 }
  0x15   : > { %p291_p9 = pnand %p4474_p7, %p290_p8 }
  0x17   : > { %294 = sbr.rel (%p291_p9) target bundleno = 1357 (0x54d), region = 56 }
  0x1c   : > { %s7194_s2 = sld [smem:[#allocation47_spill]]  ;;  %p326_p10 = scmp.lt.s32.totalorder %s5310_s13, 1  ;;  %v339_v1 = vlaneseq  ;;  %v5215_v2 = vmov 0   ;;  %v5216_v4 = vmov 0.0   ;;  %vm447_vm0 = vcmask 64512  }
  0x1d   : > { %4793 = vset.pattern.permute.xlu0 %v5215_v2  ;;  %4829 = vset.pattern.permute.xlu1 %v5215_v2  ;;  %331 = vst [vmem:[#allocation2 + $0x30] sm:$0xff] %v5216_v4  ;;  %s7195_s0 = sld [smem:[#allocation45_spill]]  ;;  %s7109_s14 = smov 113   ;;  %vm7136_vm5 = vcmask 924672   ;;  %vm7137_vm6 = vcmask 908288   ;;  %vm714_vm7 = vcmask 1039360  }
  0x1e   : > { %s327_s23 = scalar_select %p326_p10, %s5310_s13, 1  ;;  %v340_v3 = vand.u32 127, %v339_v1  ;;  %332 = vst [vmem:[#allocation2] sm:$0xff] %v5216_v4  ;;  %vm7120_vm8 = vcmask 121856   ;;  %vm733_vm9 = vcmask 7168   ;;  %vm583_vm10 = vcmask 138240  }
  0x1f   : > { %333 = vst [vmem:[#allocation2 + $0x18] sm:$0xff] %v5216_v4  ;;  %s7196_s1 = sld [smem:[#allocation46_spill]]  ;;  %s7090_s16 = smov 111   ;;  %vm522_vm11 = vcmask 130048   ;;  %vm7132_vm12 = vcmask 1043456   ;;  %vm7133_vm13 = vcmask 31744  }
  0x20   : > { %s4728_s24 = sshll.u32 %s327_s23, 4  ;;  %v341_v5 = vadd.s32 128, %v340_v3  ;;  %v5344_v6 = vand.u32 15, %v340_v3  ;;  %334 = vst [vmem:[#allocation2 + $0x10] sm:$0xff] %v5216_v4  ;;  %s7111_s17 = smov 15  }
  0x21   : > { %335 = vst [vmem:[#allocation2 + $0x8] sm:$0xff] %v5216_v4  ;;  %s7129_s21 = smov 17   ;;  %s7099_s22 = smov 127  }
  0x22   : > { %v441_v0 = vld [vmem:[%s7194_s2] sm:$0xf]  ;;  %v5354_v10 = vand.u32 15, %v341_v5  ;;  %v378_v11 = vadd.s32 1, %v5344_v6  ;;  %v366_v12 = vadd.s32 4294967295, %v5344_v6  ;;  %336 = vst [vmem:[#allocation2 + $0x20] sm:$0xff] %v5216_v4 }
  0x23   : > { %444 = vperm.xlu0 %4793, %v441_v0   ;;  %s330_s27 = scalar_lea.vmem %s7195_s0, %s4728_s24  ;;  %337 = vst [vmem:[#allocation2 + $0x28] sm:$0xff] %v5216_v4  ;;  %s7101_s23 = smov 1  }
  0x24   : > { %v438_v8 = vld [vmem:[%s330_s27] sm:$0xff]  ;;  %v439_v9 = vld [vmem:[%s330_s27 + $0x8] sm:$0xff]  ;;  %v379_v13 = vadd.s32 1, %v5354_v10  ;;  %vm382_vm1 = vcmp.lt.s32.totalorder %v378_v11, 16  ;;  %v367_v14 = vadd.s32 4294967295, %v5354_v10  ;;  %vm368_vm2 = vcmp.ge.s32.totalorder %v366_v12, 0 }
  0x25   : > { %v440_v7 = vld [vmem:[%s7196_s1] sm:$0xf]  ;;  %466 = vmatpush.msra.mxu0 %v438_v8  ;;  %486 = vmatpush.msra.mxu1 %v439_v9  ;;  %v4480_v15 = vsel %vm382_vm1, 1.0, %v5216_v4  ;;  %338 = vst [vmem:[#allocation2 + $0x38] sm:$0xff] %v5216_v4  ;;  %v4478_v16 = vsel %vm368_vm2, 1.0, %v5216_v4  ;;  %s7143_s24 = smov 16  }
  0x26   : > { %4490 = vmatmul.msk.f32.vlgmr.msra.gmra.mxu0 %vm447_vm0, %v440_v7  ;;  %4491 = vmatmul.msk.f32.vlgmr.msra.gmra.mxu1 %vm447_vm0, %v440_v7  ;;  %vm383_vm3 = vcmp.lt.s32.totalorder %v379_v13, 16  ;;  %vm369_vm4 = vcmp.ge.s32.totalorder %v367_v14, 0  ;;  %v493_v21 = vld [vmem:[#allocation2 + $0x30] sm:$0xf]  ;;  %s7107_s25 = smov 112   ;;  %s7202_s3 = sld [smem:[#allocation48_spill]] }
  0x27   : > { %v4481_v17 = vsel %vm383_vm3, 1.0, %v5216_v4  ;;  %v4479_v18 = vsel %vm369_vm4, 1.0, %v5216_v4  ;;  %v4824_v22 = vpack.i.bf16 0.0, %v493_v21  ;;  %v5377_v24 = vld [vmem:[#allocation2 + $0x10] sm:$0xf]  ;;  %s7203_s4 = sld [smem:[#allocation49_spill]] }
  0x28   : > { %v4794_v19 = vpack.i.bf16 %v4481_v17, %v4480_v15  ;;  %v4799_v20 = vpack.i.bf16 %v4479_v18, %v4478_v16  ;;  %s7092_s26 = smov 94   ;;  %s7096_s28 = smov 98   ;;  %vm996_vm3 = vcmask 916480   ;;  %vm7181_vm4 = vcmask 769024  }
  0x29   : > { %s7094_s27 = smov 126   ;;  %s7098_s29 = sand.u32 1, %s5205_s10  }
  0x2a   : > { %4800 = vrot.lane.b32.xlu1 %v4799_v20, %s7090_s16  ;;  %4810 = vrot.lane.b32.xlu2 %v4799_v20, %s7111_s17  ;;  %s7210_s5 = sld [smem:[#allocation50_spill]]  ;;  %s7145_s0 = smov 60  }
  0x2b   : > { %4795 = vrot.lane.b32.xlu0 %v4794_v19, %s7109_s14  ;;  %s7220_s6 = sld [smem:[#allocation51_spill]]  ;;  %s7226_s2 = smov 127  }
  0x2c   : > { %v4492_v17 = vld [vmem:[%s7202_s3 + $0x4] sm:$0xf]  ;;  %s7230_s1 = smov 30   ;;  %s7156_s18 = smov 64  }
  0x2d   : > { %s7261_s11 = smov 64  }
  0x32   : > { %4805 = vrot.lane.b32.xlu1 %v4799_v20, %s7099_s22  ;;  %4815 = vrot.lane.b32.xlu2 %v4794_v19, %s7101_s23 }
  0x33   : > { %4820 = vrot.lane.b32.xlu0 %v4794_v19, %s7129_s21 }
  0x3a   : > { %4825 = vrot.lane.b32.xlu1 %v4824_v22, %s7143_s24 }
  0x84   : > { %v4811_v23 = vpop.permute.xlu2 %4810 }
  0x85   : > { %v5379_v25 = vunpack.i.h.bf16 %v4811_v23  ;;  %v5423_v52 = vunpack.i.l.bf16 %v4811_v23  ;;  %v4501_v23 = vld [vmem:[%s7202_s3 + $0x8] sm:$0xf] }
  0x87   : > { %v922_v26 = vmul.f32 %v5379_v25, %v5377_v24  ;;  %7197 = vst [vmem:[#allocation8_spill] sm:$0xff] %v5423_v52  ;;  %v5467_v7 = vsel %vm7120_vm8, %v5423_v52, %v5379_v25 }
  0x88   : > { %7199 = vst [vmem:[#allocation10_spill] sm:$0xff] %v5467_v7 }
  0x89   : > { %932 = vrot.lane.b32.xlu0 %v922_v26, %s7109_s14 }
  0x8c   : > { %v4816_v27 = vpop.permute.xlu2 %4815 }
  0x8d   : > { %v5384_v28 = vunpack.i.h.bf16 %v4816_v27  ;;  %v5440_v58 = vunpack.i.l.bf16 %v4816_v27 }
  0x8f   : > { %v849_v29 = vmul.f32 %v5384_v28, %v5377_v24  ;;  %v5476_v9 = vsel %vm733_vm9, %v5440_v58, %v5384_v28 }
  0x90   : > { %7200 = vst [vmem:[#allocation11_spill] sm:$0xff] %v5476_v9 }
  0x91   : > { %859 = vrot.lane.b32.xlu0 %v849_v29, %s7099_s22  ;;  %v510_v29 = vld [vmem:[%s7202_s3] sm:$0xf] }
  0x95   : > { %v445_v30 = vpop.permute.xlu0 %444 }
  0x9c   : > { %v4801_v33 = vpop.permute.xlu1 %4800 }
  0x9d   : > { %v4796_v31 = vpop.permute.xlu0 %4795  ;;  %v5392_v35 = vunpack.i.l.bf16 %v4801_v33  ;;  %v5418_v49 = vunpack.i.h.bf16 %v4801_v33 }
  0x9e   : > { %v5389_v32 = vunpack.i.l.bf16 %v4796_v31  ;;  %v5405_v45 = vunpack.i.h.bf16 %v4796_v31  ;;  %v4511_v31 = vld [vmem:[%s7202_s3 + $0x10] sm:$0xf] }
  0x9f   : > { %v507_v40 = vmul.f32 %v5392_v35, %v493_v21  ;;  %v5430_v54 = vsel %vm7137_vm6, %v5392_v35, %v5418_v49 }
  0xa0   : > { %v644_v34 = vmul.f32 %v5389_v32, %v493_v21  ;;  %v5414_v47 = vsel %vm7136_vm5, %v5389_v32, %v5405_v45 }
  0xa2   : > { %652 = vrot.lane.b32.xlu1 %v644_v34, %s7111_s17 }
  0xa3   : > { %v468_v36 = vpop.f32.mrf.mxu0  ;;  %v488_v37 = vpop.f32.mrf.mxu1 }
  0xa4   : > { %v469_v38 = vadd.f32 %v468_v36, %v445_v30  ;;  %v489_v39 = vadd.f32 %v488_v37, %v445_v30  ;;  %v4806_v41 = vpop.permute.xlu1 %4805 }
  0xa5   : > { %v5397_v42 = vunpack.i.l.bf16 %v4806_v41  ;;  %v5435_v56 = vunpack.i.h.bf16 %v4806_v41  ;;  %v4821_v61 = vpop.permute.xlu0 %4820 }
  0xa6   : > { %491 = vst [vmem:[#allocation2] sm:$0xf] %v469_v38  ;;  %v5452_v63 = vunpack.i.l.bf16 %v4821_v61  ;;  %v5458_v1 = vunpack.i.h.bf16 %v4821_v61  ;;  %v4506_v38 = vld [vmem:[%s7202_s3 + $0xc] sm:$0xf] }
  0xa7   : > { %492 = vst [vmem:[#allocation2 + $0x18] sm:$0xf] %v489_v39  ;;  %v719_v46 = vmul.f32 %v5397_v42, %v493_v21  ;;  %v5447_v60 = vsel %vm714_vm7, %v5397_v42, %v5435_v56 }
  0xa8   : > { %7198 = vst [vmem:[#allocation9_spill] sm:$0xff] %v5452_v63  ;;  %v1058_v5 = vmul.f32 %v5458_v1, %v5377_v24  ;;  %v5485_v12 = vsel %vm583_vm10, %v5452_v63, %v5458_v1 }
  0xa9   : > { %7201 = vst [vmem:[#allocation12_spill] sm:$0xff] %v5485_v12 }
  0xaa   : > { %577 = vrot.lane.b32.xlu1 %v507_v40, %s7129_s21 }
  0xac   : > { %v5490_v14 = vpop.permute.xlu1 %4825 }
  0xad   : > { %v5399_v43 = vld [vmem:[#allocation2] sm:$0xf]  ;;  %v4827_v15 = vunpack.i.l.bf16 %v5490_v14 }
  0xae   : > { %v5401_v44 = vld [vmem:[#allocation2 + $0x18] sm:$0xf]  ;;  %518 = vrot.lane.b32.xlu2 %v5399_v43, %s7143_s24  ;;  %v645_v48 = vmul.f32 %v5414_v47, %v5399_v43  ;;  %v836_v51 = vld [vmem:[#allocation2] sm:$0xf]  ;;  %v508_v55 = vmul.f32 %v5430_v54, %v5399_v43  ;;  %v720_v62 = vmul.f32 %v5447_v60, %v5399_v43 }
  0xaf   : > { %520 = vrot.lane.b32.xlu0 %v5401_v44, %s7143_s24  ;;  %v646_v50 = vmul.f32 %v5405_v45, %v5401_v44  ;;  %v920_v53 = vmul.f32 %v5423_v52, %v836_v51  ;;  %v509_v57 = vmul.f32 %v5418_v49, %v5401_v44  ;;  %v847_v59 = vmul.f32 %v5440_v58, %v836_v51  ;;  %v837_v3 = vld [vmem:[#allocation2 + $0x18] sm:$0xf] }
  0xb0   : > { %v721_v0 = vmul.f32 %v5435_v56, %v5401_v44  ;;  %v1056_v2 = vmul.f32 %v5452_v63, %v836_v51  ;;  %v921_v8 = vmul.f32 %v5467_v7, %v837_v3  ;;  %v848_v11 = vmul.f32 %v5476_v9, %v837_v3 }
  0xb1   : > { %v1057_v13 = vmul.f32 %v5485_v12, %v837_v3 }
  0xb2   : > { %727 = vrot.lane.b32.xlu1 %v719_v46, %s7101_s23  ;;  %v1121_v46 = vld [vmem:[%s7203_s4] sm:$0xf]  ;;  %s7228_s4 = smov 96  }
  0xb6   : > { %654 = vrot.lane.b32.xlu2 %v645_v48, %s7111_s17  ;;  %v402_v48 = vadd.s32 2, %v5344_v6 }
  0xb7   : > { %656 = vrot.lane.b32.xlu0 %v646_v50, %s7111_s17  ;;  %v403_v50 = vadd.s32 2, %v5354_v10 }
  0xb8   : > { %vm406_vm14 = vcmp.lt.s32.totalorder %v402_v48, 16 }
  0xb9   : > { %vm407_vm15 = vcmp.lt.s32.totalorder %v403_v50, 16  ;;  %v5548_v61 = vsel %vm406_vm14, 1.0, %v5216_v4  ;;  %vm1766_vm14 = vcmask 261120  }
  0xba   : > { %928 = vrot.lane.b32.xlu1 %v920_v53, %s7109_s14  ;;  %v391_v53 = vadd.s32 4294967294, %v5354_v10 }
  0xbc   : > { %vm393_vm2 = vcmp.ge.s32.totalorder %v391_v53, 0 }
  0xbe   : > { %579 = vrot.lane.b32.xlu2 %v508_v55, %s7129_s21 }
  0xbf   : > { %581 = vrot.lane.b32.xlu0 %v509_v57, %s7129_s21 }
  0xc2   : > { %855 = vrot.lane.b32.xlu1 %v847_v59, %s7099_s22 }
  0xc6   : > { %729 = vrot.lane.b32.xlu2 %v720_v62, %s7101_s23  ;;  %v5551_v62 = vsel %vm407_vm15, 1.0, %v5216_v4  ;;  %vm7121_vm15 = vcmask 277504  }
  0xc7   : > { %731 = vrot.lane.b32.xlu0 %v721_v0, %s7101_s23 }
  0xca   : > { %1064 = vrot.lane.b32.xlu1 %v1056_v2, %s7090_s16  ;;  %v4483_v2 = vsel %vm393_vm2, 1.0, %v5216_v4  ;;  %vm1822_vm2 = vcmask 801792  }
  0xce   : > { %930 = vrot.lane.b32.xlu2 %v921_v8, %s7109_s14  ;;  %v5560_v8 = vpack.i.bf16 %v5551_v62, %v5548_v61 }
  0xcf   : > { %1068 = vrot.lane.b32.xlu0 %v1058_v5, %s7090_s16 }
  0xd2   : > { %990 = vrot.lane.b32.xlu1 %v836_v51, %s7107_s25  ;;  %v390_v51 = vadd.s32 4294967294, %v5344_v6 }
  0xd4   : > { %vm392_vm1 = vcmp.ge.s32.totalorder %v390_v51, 0 }
  0xd5   : > { %v5554_v0 = vsel %vm392_vm1, 1.0, %v5216_v4  ;;  %vm1914_vm1 = vcmask 15360  }
  0xd6   : > { %857 = vrot.lane.b32.xlu2 %v848_v11, %s7099_s22  ;;  %v4840_v11 = vpack.i.bf16 %v4483_v2, %v5554_v0 }
  0xd7   : > { %994 = vrot.lane.b32.xlu0 %v5377_v24, %s7107_s25 }
  0xda   : > { %1124 = vperm.xlu1 %4829, %v1121_v46  }
  0xde   : > { %1066 = vrot.lane.b32.xlu2 %v1057_v13, %s7090_s16  ;;  %s4475_s16 = sshll.u32 %s7098_s29, 5  ;;  %s7103_s29 = smov 34  }
  0xe2   : > { %4836 = vrot.lane.b32.xlu1 %v5560_v8, %s7096_s28  ;;  %s7105_s28 = smov 32  }
  0xe6   : > { %992 = vrot.lane.b32.xlu2 %v837_v3, %s7107_s25 }
  0xea   : > { %4841 = vrot.lane.b32.xlu1 %v4840_v11, %s7094_s27  ;;  %s5607_s27 = scalar_lea.vmem [#allocation3], %s4475_s16  ;;  %s7205_s16 = smov 111  }
  0xee   : > { %4831 = vrot.lane.b32.xlu2 %v4840_v11, %s7092_s26  ;;  %s7139_s26 = smov 30  }
  0xef   : > { %2084 = vrot.lane.b32.xlu0 %v4483_v2, %s7139_s26 }
  0xfb   : > { %v933_v19 = vpop.permute.xlu0 %932 }
 0x103   : > { %v5504_v24 = vpop.permute.xlu0 %859 }
 0x108   : > { %v519_v16 = vpop.permute.xlu2 %518 }
 0x109   : > { %v523_v18 = vsel %vm522_vm11, %v4827_v15, %v519_v16 }
 0x10a   : > { %4493 = vmatpush.msk.msra.mxu2 %vm7132_vm12, %v523_v18 }
 0x10b   : > { %4494 = vmatmul.msk.f32.vlgmr.msra.gmra.mxu2 %vm7133_vm13, %v4492_v17 }
 0x110   : > { %v655_v20 = vpop.permute.xlu2 %654 }
 0x114   : > { %v653_v21 = vpop.permute.xlu1 %652 }
 0x115   : > { %v659_v22 = vsel %vm7120_vm8, %v653_v21, %v655_v20 }
 0x116   : > { %4502 = vmatpush.msk.msrb.mxu2 %vm7132_vm12, %v659_v22 }
 0x117   : > { %4503 = vmatmul.msk.f32.vlgmr.msrb.gmra.mxu2 %vm7133_vm13, %v4501_v23 }
 0x118   : > { %4512 = vmatpush.msk.msra.mxu2 %vm7132_vm12, %v5399_v43  ;;  %v580_v26 = vpop.permute.xlu2 %579 }
 0x11c   : > { %v578_v27 = vpop.permute.xlu1 %577 }
 0x11d   : > { %v584_v30 = vsel %vm583_vm10, %v578_v27, %v580_v26 }
 0x11e   : > { %4497 = vmatpush.msk.msrb.mxu0 %vm7132_vm12, %v584_v30 }
 0x11f   : > { %4498 = vmatmul.msk.f32.vlgmr.msrb.gmra.mxu0 %vm7133_vm13, %v510_v29  ;;  %4513 = vmatmul.msk.f32.vlgmr.msra.gmra.mxu2 %vm7133_vm13, %v4511_v31 }
 0x120   : > { %v730_v33 = vpop.permute.xlu2 %729 }
 0x121   : > { %v521_v34 = vpop.permute.xlu0 %520 }
 0x122   : > { %v524_v36 = vsel %vm522_vm11, %v519_v16, %v521_v34  ;;  %v4516_v16 = vld [vmem:[%s7202_s3 + $0x14] sm:$0xf] }
 0x123   : > { %4495 = vmatpush.msk.msra.mxu3 %vm7132_vm12, %v524_v36 }
 0x124   : > { %4496 = vmatmul.msk.f32.vlgmr.msra.gmra.mxu3 %vm7133_vm13, %v4492_v17  ;;  %v728_v37 = vpop.permute.xlu1 %727 }
 0x125   : > { %v734_v39 = vsel %vm733_vm9, %v728_v37, %v730_v33 }
 0x126   : > { %4507 = vmatpush.msk.msra.mxu0 %vm7132_vm12, %v734_v39 }
 0x127   : > { %4508 = vmatmul.msk.f32.vlgmr.msra.gmra.mxu0 %vm7133_vm13, %v4506_v38 }
 0x128   : > { %v931_v40 = vpop.permute.xlu2 %930 }
 0x129   : > { %v657_v41 = vpop.permute.xlu0 %656  ;;  %v935_v55 = vsel %vm7136_vm5, %v931_v40, %v933_v19 }
 0x12a   : > { %v660_v43 = vsel %vm7120_vm8, %v655_v20, %v657_v41 }
 0x12b   : > { %4504 = vmatpush.msk.msrb.mxu3 %vm7132_vm12, %v660_v43 }
 0x12c   : > { %4505 = vmatmul.msk.f32.vlgmr.msrb.gmra.mxu3 %vm7133_vm13, %v4501_v23  ;;  %v929_v57 = vpop.permute.xlu1 %928  ;;  %v4531_v23 = vld [vmem:[%s7202_s3 + $0x20] sm:$0xf] }
 0x12d   : > { %4514 = vmatpush.msk.msra.mxu3 %vm7132_vm12, %v5401_v44  ;;  %v4521_v44 = vld [vmem:[%s7202_s3 + $0x18] sm:$0xf]  ;;  %v934_v59 = vsel %vm7136_vm5, %v929_v57, %v931_v40 }
 0x12e   : > { %4522 = vmatpush.msk.msrb.mxu2 %vm7132_vm12, %v934_v59 }
 0x12f   : > { %4524 = vmatpush.msk.msrb.mxu3 %vm7132_vm12, %v935_v55  ;;  %4523 = vmatmul.msk.f32.vlgmr.msrb.gmra.mxu2 %vm7133_vm13, %v4521_v44 }
 0x130   : > { %v858_v5 = vpop.permute.xlu2 %857 }
 0x131   : > { %v582_v3 = vpop.permute.xlu0 %581  ;;  %v862_v21 = vsel %vm714_vm7, %v858_v5, %v5504_v24 }
 0x132   : > { %v585_v13 = vsel %vm583_vm10, %v580_v26, %v582_v3 }
 0x133   : > { %4499 = vmatpush.msk.msrb.mxu1 %vm7132_vm12, %v585_v13 }
 0x134   : > { %4500 = vmatmul.msk.f32.vlgmr.msrb.gmra.mxu1 %vm7133_vm13, %v510_v29  ;;  %v856_v15 = vpop.permute.xlu1 %855  ;;  %4515 = vmatmul.msk.f32.vlgmr.msra.gmra.mxu3 %vm7133_vm13, %v4511_v31  ;;  %v4526_v31 = vld [vmem:[%s7202_s3 + $0x1c] sm:$0xf]  ;;  %s7227_s3 = smov 34  }
 0x135   : > { %v861_v17 = vsel %vm714_vm7, %v856_v15, %v858_v5 }
 0x136   : > { %4517 = vmatpush.msk.msrb.mxu0 %vm7132_vm12, %v861_v17 }
 0x137   : > { %4518 = vmatmul.msk.f32.vlgmr.msrb.gmra.mxu0 %vm7133_vm13, %v4516_v16 }
 0x138   : > { %v1067_v20 = vpop.permute.xlu2 %1066 }
 0x139   : > { %v732_v18 = vpop.permute.xlu0 %731 }
 0x13a   : > { %v735_v19 = vsel %vm733_vm9, %v730_v33, %v732_v18 }
 0x13b   : > { %4509 = vmatpush.msk.msra.mxu1 %vm7132_vm12, %v735_v19 }
 0x13c   : > { %4510 = vmatmul.msk.f32.vlgmr.msra.gmra.mxu1 %vm7133_vm13, %v4506_v38  ;;  %v1065_v22 = vpop.permute.xlu1 %1064  ;;  %4525 = vmatmul.msk.f32.vlgmr.msrb.gmra.mxu3 %vm7133_vm13, %v4521_v44 }
 0x13d   : > { %4519 = vmatpush.msk.msrb.mxu1 %vm7132_vm12, %v862_v21  ;;  %v1070_v26 = vsel %vm7137_vm6, %v1065_v22, %v1067_v20 }
 0x13e   : > { %4532 = vmatpush.msk.msra.mxu2 %vm7132_vm12, %v1070_v26 }
 0x13f   : > { %4533 = vmatmul.msk.f32.vlgmr.msra.gmra.mxu2 %vm7133_vm13, %v4531_v23 }
 0x140   : > { %v993_v29 = vpop.permute.xlu2 %992 }
 0x141   : > { %v1069_v24 = vpop.permute.xlu0 %1068 }
 0x142   : > { %v1071_v27 = vsel %vm7137_vm6, %v1067_v20, %v1069_v24 }
 0x143   : > { %4534 = vmatpush.msk.msra.mxu3 %vm7132_vm12, %v1071_v27 }
 0x144   : > { %4520 = vmatmul.msk.f32.vlgmr.msrb.gmra.mxu1 %vm7133_vm13, %v4516_v16  ;;  %v991_v30 = vpop.permute.xlu1 %990  ;;  %4535 = vmatmul.msk.f32.vlgmr.msra.gmra.mxu3 %vm7133_vm13, %v4531_v23 }
 0x145   : > { %v997_v33 = vsel %vm996_vm3, %v991_v30, %v993_v29 }
 0x146   : > { %4527 = vmatpush.msk.msra.mxu0 %vm7132_vm12, %v997_v33 }
 0x147   : > { %4528 = vmatmul.msk.f32.vlgmr.msra.gmra.mxu0 %vm7133_vm13, %v4526_v31 }
 0x149   : > { %v995_v34 = vpop.permute.xlu0 %994 }
 0x14a   : > { %v998_v36 = vsel %vm996_vm3, %v993_v29, %v995_v34 }
 0x14b   : > { %4529 = vmatpush.msk.msra.mxu1 %vm7132_vm12, %v998_v36 }
 0x14c   : > { %4530 = vmatmul.msk.f32.vlgmr.msra.gmra.mxu1 %vm7133_vm13, %v4526_v31  ;;  %v1125_v23 = vpop.permute.xlu1 %1124 }
 0x18e   : > { %v551_v37 = vpop.f32.mrf.mxu2 }
 0x19a   : > { %v685_v40 = vpop.f32.mrf.mxu2 }
 0x19c   : > { %v610_v39 = vpop.f32.mrf.mxu0 }
 0x19d   : > { %v611_v41 = vadd.f32 %v610_v39, %v551_v37 }
 0x19f   : > { %v708_v51 = vadd.f32 %v685_v40, %v611_v41 }
 0x1a2   : > { %v811_v50 = vpop.f32.mrf.mxu2 }
 0x1a4   : > { %v760_v48 = vpop.f32.mrf.mxu0 }
 0x1a5   : > { %v783_v53 = vadd.f32 %v760_v48, %v708_v51 }
 0x1a7   : > { %v571_v38 = vpop.f32.mrf.mxu3  ;;  %v834_v59 = vadd.f32 %v811_v50, %v783_v53 }
 0x1af   : > { %v705_v43 = vpop.f32.mrf.mxu3 }
 0x1b1   : > { %v630_v46 = vpop.f32.mrf.mxu1 }
 0x1b2   : > { %v631_v55 = vadd.f32 %v630_v46, %v571_v38  ;;  %v960_v11 = vpop.f32.mrf.mxu2 }
 0x1b4   : > { %v709_v3 = vadd.f32 %v705_v43, %v631_v55  ;;  %v887_v5 = vpop.f32.mrf.mxu0 }
 0x1b5   : > { %v910_v2 = vadd.f32 %v887_v5, %v834_v59  ;;  %v5655_v59 = vmul.f32 0.0, %v5384_v28  ;;  %v4547_v5 = vld [vmem:[%s7210_s5 + $0x10] sm:$0xf] }
 0x1b7   : > { %v831_v57 = vpop.f32.mrf.mxu3  ;;  %v983_v18 = vadd.f32 %v960_v11, %v910_v2 }
 0x1b9   : > { %v780_v44 = vpop.f32.mrf.mxu1 }
 0x1ba   : > { %v784_v13 = vadd.f32 %v780_v44, %v709_v3  ;;  %v5658_v3 = vmul.f32 0.0, %v5458_v1 }
 0x1bc   : > { %v835_v17 = vadd.f32 %v831_v57, %v784_v13  ;;  %v1140_v57 = vmul.f32 0.0, %v5392_v35  ;;  %v5664_v13 = vmul.f32 0.0, %v5379_v25 }
 0x1bf   : > { %v980_v15 = vpop.f32.mrf.mxu3 }
 0x1c1   : > { %v907_v16 = vpop.f32.mrf.mxu1 }
 0x1c2   : > { %v911_v19 = vadd.f32 %v907_v16, %v835_v17  ;;  %v1096_v21 = vpop.f32.mrf.mxu2 }
 0x1c4   : > { %v1023_v20 = vpop.f32.mrf.mxu0  ;;  %v984_v26 = vadd.f32 %v980_v15, %v911_v19 }
 0x1c5   : > { %v1046_v22 = vadd.f32 %v1023_v20, %v983_v18 }
 0x1c7   : > { %v1119_v24 = vadd.f32 %v1096_v21, %v1046_v22  ;;  %v1116_v29 = vpop.f32.mrf.mxu3  ;;  %v2450_v21 = vmul.f32 0.0, %v5389_v32 }
 0x1c9   : > { %v1043_v27 = vpop.f32.mrf.mxu1  ;;  %v1127_v30 = vadd.f32 %v1125_v23, %v1119_v24 }
 0x1ca   : > { %v1047_v31 = vadd.f32 %v1043_v27, %v984_v26 }
 0x1cb   : > { %v1131_v33 = vrot.slane %v1127_v30, 4 }
 0x1cc   : > { %v1120_v34 = vadd.f32 %v1116_v29, %v1047_v31 }
 0x1cd   : > { %1135 = vst [vmem:[#allocation2] sm:$0xf0] %v1131_v33 }
 0x1ce   : > { %v1128_v36 = vadd.f32 %v1125_v23, %v1120_v34  ;;  %v1321_v23 = vmul.f32 0.0, %v5397_v42 }
 0x1d0   : > { %v1132_v37 = vrot.slane %v1128_v36, 4 }
 0x1d2   : > { %1136 = vst [vmem:[#allocation2 + $0x18] sm:$0xf0] %v1132_v37  ;;  %v4832_v37 = vpop.permute.xlu2 %4831 }
 0x1d4   : > { %v4385_v38 = vld [vmem:[#allocation2] sm:$0xff] }
 0x1d5   : > { %4389 = vst [vmem:[%s5607_s27] sm:$0xff] %v4385_v38  ;;  %v5610_v39 = vld [vmem:[#allocation2] sm:$0xff] }
 0x1d6   : > { %v5631_v48 = vmul.f32 %v5610_v39, %v5430_v54  ;;  %v5639_v51 = vmul.f32 %v5610_v39, %v5447_v60  ;;  %v5676_v18 = vpack.i.bf16 %v5610_v39, %v5216_v4  ;;  %v1434_v24 = vmul.f32 %v5440_v58, %v5610_v39 }
 0x1d7   : > { %v5699_v27 = vmul.f32 %v5610_v39, %v5414_v47  ;;  %v2750_v33 = vmul.f32 %v5423_v52, %v5610_v39  ;;  %v2906_v34 = vmul.f32 %v5452_v63, %v5610_v39 }
 0x1d8   : > { %v4865_v11 = vpack.i.bf16 %v5631_v48, %v1140_v57  ;;  %v4885_v26 = vpack.i.bf16 %v5639_v51, %v1321_v23  ;;  %v4900_v30 = vpack.i.bf16 %v1434_v24, %v5655_v59 }
 0x1d9   : > { %v5612_v40 = vld [vmem:[#allocation2 + $0x18] sm:$0xff]  ;;  %v4875_v31 = vpack.i.bf16 %v5699_v27, %v2450_v21  ;;  %v4910_v36 = vpack.i.bf16 %v2750_v33, %v5664_v13  ;;  %v4920_v38 = vpack.i.bf16 %v2906_v34, %v5658_v3 }
 0x1da   : > { %v4386_v41 = vld [vmem:[#allocation2 + $0x18] sm:$0xff]  ;;  %1764 = vrot.lane.b32.xlu0 %v5612_v40, %s7105_s28  ;;  %v5618_v43 = vpack.i.bf16 %v5612_v40, %v5610_v39  ;;  %v5622_v46 = vmul.f32 %v5435_v56, %v5612_v40  ;;  %v5635_v50 = vmul.f32 %v5418_v49, %v5612_v40  ;;  %v5643_v53 = vmul.f32 %v5612_v40, %v5476_v9 }
 0x1db   : > { %4390 = vst [vmem:[%s5607_s27 + $0x8] sm:$0xff] %v4386_v41  ;;  %v5647_v55 = vmul.f32 %v5612_v40, %v5485_v12  ;;  %v5652_v44 = vmul.f32 %v5612_v40, %v5467_v7  ;;  %v5685_v20 = vmul.f32 %v5405_v45, %v5612_v40 }
 0x1dc   : > { %4851 = vrot.lane.b32.xlu1 %v5618_v43, %s7107_s25  ;;  %4846 = vrot.lane.b32.xlu2 %v5618_v43, %s7143_s24  ;;  %v4870_v17 = vpack.i.bf16 %v1140_v57, %v5635_v50  ;;  %v4895_v29 = vpack.i.bf16 %v5643_v53, %v1434_v24  ;;  %v4890_v41 = vpack.i.bf16 %v1321_v23, %v5622_v46  ;;  %v5715_v57 = vunpack.i.h.bf16 %v4832_v37 }
 0x1dd   : > { %v4880_v22 = vpack.i.bf16 %v2450_v21, %v5685_v20  ;;  %v4915_v21 = vpack.i.bf16 %v5647_v55, %v2906_v34  ;;  %v4905_v23 = vpack.i.bf16 %v5652_v44, %v2750_v33 }
 0x1de   : > { %7204 = vst [vmem:[#allocation13_spill] sm:$0xff] %v5715_v57 }
 0x1e2   : > { %4866 = vrot.lane.b32.xlu0 %v4865_v11, %s7129_s21  ;;  %v5719_v11 = vunpack.i.l.bf16 %v4832_v37 }
 0x1e4   : > { %4871 = vrot.lane.b32.xlu1 %v4870_v17, %s7129_s21  ;;  %4856 = vrot.lane.b32.xlu2 %v5676_v18, %s7107_s25  ;;  %v5723_v17 = vmul.f32 %v5715_v57, %v5612_v40  ;;  %v1694_v24 = vmul.f32 0.0, %v5719_v11  ;;  %s7216_s25 = smov 126  }
 0x1ea   : > { %4881 = vrot.lane.b32.xlu0 %v4880_v22, %s7111_s17  ;;  %v5729_v22 = vsel %vm7181_vm4, %v5719_v11, %v5715_v57 }
 0x1eb   : > { %7206 = vst [vmem:[#allocation14_spill] sm:$0xff] %v5729_v22 }
 0x1ec   : > { %4861 = vrot.lane.b32.xlu2 %v5676_v18, %s7105_s28  ;;  %4886 = vrot.lane.b32.xlu1 %v4885_v26, %s7101_s23  ;;  %v4930_v26 = vpack.i.bf16 %v5548_v61, %v5723_v17  ;;  %s7219_s28 = smov 94  }
 0x1f2   : > { %4896 = vrot.lane.b32.xlu0 %v4895_v29, %s7099_s22  ;;  %v5740_v29 = vmul.f32 %v5610_v39, %v5729_v22 }
 0x1f4   : > { %4901 = vrot.lane.b32.xlu1 %v4900_v30, %s7099_s22  ;;  %4876 = vrot.lane.b32.xlu2 %v4875_v31, %s7111_s17  ;;  %v4925_v30 = vpack.i.bf16 %v5740_v29, %v1694_v24  ;;  %v5743_v31 = vpop.permute.xlu1 %4836  ;;  %s7134_s22 = smov 2   ;;  %s7222_s17 = smov 113  }
 0x1f5   : > { %v5746_v33 = vunpack.i.h.bf16 %v5743_v31 }
 0x1f7   : > { %7207 = vst [vmem:[#allocation15_spill] sm:$0xff] %v5746_v33  ;;  %v5753_v61 = vmul.f32 %v5746_v33, %v5612_v40 }
 0x1f9   : > { %v4945_v34 = vpack.i.bf16 %v5554_v0, %v5753_v61 }
 0x1fa   : > { %4911 = vrot.lane.b32.xlu0 %v4910_v36, %s7109_s14 }
 0x1fc   : > { %4921 = vrot.lane.b32.xlu1 %v4920_v38, %s7205_s16  ;;  %4891 = vrot.lane.b32.xlu2 %v4890_v41, %s7101_s23  ;;  %s7141_s23 = smov 96   ;;  %v5762_v36 = vpop.permute.xlu1 %4841 }
 0x202   : > { %4916 = vrot.lane.b32.xlu0 %v4915_v21, %s7205_s16 }
 0x204   : > { %4906 = vrot.lane.b32.xlu2 %v4905_v23, %s7109_s14  ;;  %4931 = vrot.lane.b32.xlu1 %v4930_v26, %s7103_s29  ;;  %v4536_v23 = vld [vmem:[%s7210_s5 + $0x4] sm:$0xf]  ;;  %s7221_s14 = smov 15  }
 0x20a   : > { %4926 = vrot.lane.b32.xlu0 %v4925_v30, %s7103_s29 }
 0x20c   : > { %4936 = vrot.lane.b32.xlu1 %v5560_v8, %s7134_s22  ;;  %2213 = vrot.lane.b32.xlu2 %v5551_v62, %s7103_s29  ;;  %v5765_v8 = vunpack.i.h.bf16 %v5762_v36  ;;  %v5773_v62 = vpop.permute.xlu0 %2084  ;;  %s7209_s29 = smov 98  }
 0x20d   : > { %v2092_v0 = vmul.f32 0.0, %v5773_v62 }
 0x20e   : > { %7208 = vst [vmem:[#allocation16_spill] sm:$0xff] %v5765_v8  ;;  %v5769_v37 = vmul.f32 %v5765_v8, %v5612_v40 }
 0x212   : > { %4946 = vrot.lane.b32.xlu0 %v4945_v34, %s7139_s26 }
 0x214   : > { %2102 = vrot.lane.b32.xlu1 %v2092_v0, %s7209_s29 }
 0x21a   : > { %2159 = vrot.lane.b32.xlu0 %v5216_v4, %s7141_s23  ;;  %v4828_v4 = vunpack.i.h.bf16 %v5490_v14 }
 0x222   : > { %1912 = vrot.lane.b32.xlu0 %v5769_v37, %s7134_s22 }
 0x236   : > { %v4847_v38 = vpop.permute.xlu2 %4846 }
 0x237   : > { %v4849_v41 = vunpack.i.h.bf16 %v4847_v38  ;;  %v4848_v21 = vunpack.i.l.bf16 %v4847_v38 }
 0x239   : > { %v1155_v26 = vsel %vm522_vm11, %v4828_v4, %v4848_v21  ;;  %v1156_v24 = vsel %vm522_vm11, %v4848_v21, %v4849_v41  ;;  %v4541_v41 = vld [vmem:[%s7210_s5 + $0x8] sm:$0xf] }
 0x23a   : > { %1177 = vmatpush.msrb.mxu0 %v1155_v26  ;;  %1197 = vmatpush.msrb.mxu1 %v1156_v24 }
 0x23b   : > { %4537 = vmatmul.msk.f32.vlgmr.msrb.gmra.mxu0 %vm447_vm0, %v4536_v23  ;;  %4538 = vmatmul.msk.f32.vlgmr.msrb.gmra.mxu1 %vm447_vm0, %v4536_v23 }
 0x23e   : > { %v5785_v30 = vpop.permute.xlu2 %4856 }
 0x246   : > { %v5787_v34 = vpop.permute.xlu2 %4861 }
 0x24c   : > { %v5789_v14 = vpop.permute.xlu0 %1764 }
 0x24e   : > { %v5791_v0 = vpop.permute.xlu1 %4851  ;;  %v4877_v38 = vpop.permute.xlu2 %4876 }
 0x24f   : > { %v4879_v19 = vunpack.i.h.bf16 %v4877_v38  ;;  %v4878_v16 = vunpack.i.l.bf16 %v4877_v38 }
 0x251   : > { %v1272_v4 = vsel %vm7120_vm8, %v4878_v16, %v4879_v19  ;;  %v1143_v16 = vld [vmem:[%s7210_s5] sm:$0xf] }
 0x252   : > { %1294 = vmatpush.msra.mxu0 %v1272_v4 }
 0x253   : > { %4542 = vmatmul.msk.f32.vlgmr.msra.gmra.mxu0 %vm447_vm0, %v4541_v41 }
 0x254   : > { %1404 = vmatpush.msrb.mxu0 %v5610_v39  ;;  %v4867_v21 = vpop.permute.xlu0 %4866 }
 0x255   : > { %v4869_v23 = vunpack.i.h.bf16 %v4867_v21  ;;  %v4868_v26 = vunpack.i.l.bf16 %v4867_v21 }
 0x256   : > { %v5799_v24 = vpop.permute.xlu1 %4871  ;;  %v5801_v15 = vpop.permute.xlu2 %4891 }
 0x257   : > { %v4873_v38 = vunpack.i.l.bf16 %v5799_v24  ;;  %v1211_v2 = vsel %vm583_vm10, %v4868_v26, %v4869_v23  ;;  %v4893_v26 = vunpack.i.l.bf16 %v5801_v15 }
 0x258   : > { %1233 = vmatpush.msrb.mxu2 %v1211_v2 }
 0x259   : > { %v1212_v4 = vsel %vm583_vm10, %v4869_v23, %v4873_v38  ;;  %4539 = vmatmul.msk.f32.vlgmr.msrb.gmra.mxu2 %vm447_vm0, %v1143_v16 }
 0x25a   : > { %1253 = vmatpush.msrb.mxu3 %v1212_v4 }
 0x25b   : > { %4540 = vmatmul.msk.f32.vlgmr.msrb.gmra.mxu3 %vm447_vm0, %v1143_v16  ;;  %4548 = vmatmul.msk.f32.vlgmr.msrb.gmra.mxu0 %vm447_vm0, %v4547_v5 }
 0x25c   : > { %v5814_v21 = vpop.permute.xlu0 %4881 }
 0x25d   : > { %7211 = vst [vmem:[#allocation17_spill] sm:$0xff] %v5814_v21  ;;  %v4883_v57 = vunpack.i.l.bf16 %v5814_v21  ;;  %v4544_v21 = vld [vmem:[%s7210_s5 + $0xc] sm:$0xf] }
 0x25e   : > { %v4887_v2 = vpop.permute.xlu1 %4886  ;;  %v4907_v12 = vpop.permute.xlu2 %4906 }
 0x25f   : > { %v4889_v23 = vunpack.i.h.bf16 %v4887_v2  ;;  %v4888_v38 = vunpack.i.l.bf16 %v4887_v2  ;;  %v4909_v22 = vunpack.i.h.bf16 %v4907_v12  ;;  %v4908_v52 = vunpack.i.l.bf16 %v4907_v12  ;;  %v4553_v12 = vld [vmem:[%s7210_s5 + $0x18] sm:$0xf] }
 0x260   : > { %v1273_v4 = vsel %vm7120_vm8, %v4879_v19, %v4883_v57  ;;  %v4854_v19 = vunpack.i.h.bf16 %v5791_v0  ;;  %v4853_v57 = vunpack.i.l.bf16 %v5791_v0  ;;  %vm1841_vm8 = vcmask 244736  }
 0x261   : > { %1314 = vmatpush.msra.mxu1 %v1273_v4  ;;  %v1335_v63 = vsel %vm733_vm9, %v4888_v38, %v4889_v23  ;;  %v1336_v16 = vsel %vm733_vm9, %v4889_v23, %v4893_v26  ;;  %v1511_v9 = vsel %vm7136_vm5, %v4908_v52, %v4909_v22  ;;  %v4858_v38 = vunpack.i.l.bf16 %v5785_v30 }
 0x262   : > { %1357 = vmatpush.msra.mxu2 %v1335_v63  ;;  %1377 = vmatpush.msra.mxu3 %v1336_v16  ;;  %v1571_v0 = vsel %vm996_vm3, %v4853_v57, %v4854_v19 }
 0x263   : > { %1424 = vmatpush.msrb.mxu1 %v5612_v40  ;;  %1533 = vmatpush.msra.mxu0 %v1511_v9  ;;  %v1572_v4 = vsel %vm996_vm3, %v4854_v19, %v4858_v38  ;;  %v4863_v19 = vunpack.i.l.bf16 %v5787_v34 }
 0x264   : > { %v4897_v26 = vpop.permute.xlu0 %4896  ;;  %4543 = vmatmul.msk.f32.vlgmr.msra.gmra.mxu1 %vm447_vm0, %v4541_v41  ;;  %4545 = vmatmul.msk.f32.vlgmr.msra.gmra.mxu2 %vm447_vm0, %v4544_v21 }
 0x265   : > { %v4899_v52 = vunpack.i.h.bf16 %v4897_v26  ;;  %v4898_v2 = vunpack.i.l.bf16 %v4897_v26  ;;  %4546 = vmatmul.msk.f32.vlgmr.msra.gmra.mxu3 %vm447_vm0, %v4544_v21  ;;  %4554 = vmatmul.msk.f32.vlgmr.msra.gmra.mxu0 %vm447_vm0, %v4553_v12  ;;  %v4550_v21 = vld [vmem:[%s7210_s5 + $0x14] sm:$0xf] }
 0x266   : > { %v5836_v63 = vpop.permute.xlu1 %4901 }
 0x267   : > { %v4903_v23 = vunpack.i.l.bf16 %v5836_v63  ;;  %v1448_v9 = vsel %vm714_vm7, %v4898_v2, %v4899_v52  ;;  %v4864_v2 = vunpack.i.h.bf16 %v5787_v34 }
 0x268   : > { %1470 = vmatpush.msrb.mxu2 %v1448_v9 }
 0x269   : > { %v1449_v41 = vsel %vm714_vm7, %v4899_v52, %v4903_v23  ;;  %v1767_v34 = vsel %vm1766_vm14, %v4863_v19, %v4864_v2 }
 0x26a   : > { %1593 = vmatpush.msra.mxu2 %v1571_v0  ;;  %1490 = vmatpush.msrb.mxu3 %v1449_v41 }
 0x26c   : > { %1613 = vmatpush.msra.mxu3 %v1572_v4  ;;  %v5847_v16 = vpop.permute.xlu0 %4911  ;;  %4549 = vmatmul.msk.f32.vlgmr.msrb.gmra.mxu1 %vm447_vm0, %v4547_v5 }
 0x26d   : > { %7212 = vst [vmem:[#allocation18_spill] sm:$0xff] %v5847_v16  ;;  %4551 = vmatmul.msk.f32.vlgmr.msrb.gmra.mxu2 %vm447_vm0, %v4550_v21  ;;  %v4913_v26 = vunpack.i.l.bf16 %v5847_v16  ;;  %4552 = vmatmul.msk.f32.vlgmr.msrb.gmra.mxu3 %vm447_vm0, %v4550_v21 }
 0x26e   : > { %v5853_v57 = vpop.permute.xlu1 %4921 }
 0x26f   : > { %v1512_v52 = vsel %vm7136_vm5, %v4909_v22, %v4913_v26  ;;  %v4923_v5 = vunpack.i.l.bf16 %v5853_v57  ;;  %v1768_v22 = vsel %vm1766_vm14, %v4864_v2, %v5789_v14 }
 0x270   : > { %1553 = vmatpush.msra.mxu1 %v1512_v52 }
 0x274   : > { %v4917_v23 = vpop.permute.xlu0 %4916  ;;  %4555 = vmatmul.msk.f32.vlgmr.msra.gmra.mxu1 %vm447_vm0, %v4553_v12 }
 0x275   : > { %v4919_v9 = vunpack.i.h.bf16 %v4917_v23  ;;  %v4918_v38 = vunpack.i.l.bf16 %v4917_v23  ;;  %v5866_v23 = vunpack.i.l.bf16 %v5743_v31 }
 0x276   : > { %v4932_v0 = vpop.permute.xlu1 %4931 }
 0x277   : > { %v1634_v41 = vsel %vm7137_vm6, %v4918_v38, %v4919_v9  ;;  %v1635_v21 = vsel %vm7137_vm6, %v4919_v9, %v4923_v5  ;;  %v4933_v4 = vunpack.i.l.bf16 %v4932_v0  ;;  %v5874_v19 = vunpack.i.h.bf16 %v4932_v0 }
 0x278   : > { %1656 = vmatpush.msrb.mxu0 %v1634_v41  ;;  %1676 = vmatpush.msrb.mxu1 %v1635_v21  ;;  %v5891_v0 = vsel %vm1822_vm2, %v5866_v23, %v5746_v33 }
 0x279   : > { %7214 = vst [vmem:[#allocation20_spill] sm:$0xff] %v5874_v19  ;;  %v2219_v33 = vmul.f32 %v5874_v19, %v5610_v39 }
 0x27a   : > { %1789 = vmatpush.msra.mxu0 %v1767_v34  ;;  %1809 = vmatpush.msra.mxu1 %v1768_v22  ;;  %v5884_v22 = vpop.permute.xlu2 %2213 }
 0x27c   : > { %v4927_v12 = vpop.permute.xlu0 %4926 }
 0x27d   : > { %v4929_v26 = vunpack.i.h.bf16 %v4927_v12  ;;  %v4928_v52 = vunpack.i.l.bf16 %v4927_v12 }
 0x27e   : > { %v4937_v38 = vpop.permute.xlu1 %4936 }
 0x27f   : > { %v5868_v5 = vunpack.i.h.bf16 %v4937_v38  ;;  %v5870_v14 = vunpack.i.l.bf16 %v4937_v38  ;;  %v1709_v9 = vsel %vm7121_vm15, %v4928_v52, %v4929_v26  ;;  %v1710_v2 = vsel %vm7121_vm15, %v4929_v26, %v4933_v4  ;;  %v5906_v38 = vld [vmem:[#allocation2 + $0x30] sm:$0xff] }
 0x280   : > { %1731 = vmatpush.msrb.mxu2 %v1709_v9  ;;  %1751 = vmatpush.msrb.mxu3 %v1710_v2  ;;  %v5901_v26 = vsel %vm7121_vm15, %v5874_v19, %v5884_v22  ;;  %v5910_v9 = vmul.f32 %v5906_v38, %v5866_v23  ;;  %v1828_v2 = vmul.f32 %v5610_v39, %v5891_v0  ;;  %vm1895_vm15 = vcmask 1031168  }
 0x281   : > { %7213 = vst [vmem:[#allocation19_spill] sm:$0xff] %v5870_v14  ;;  %v2021_v41 = vmul.f32 0.0, %v5868_v5  ;;  %v5880_v31 = vsel %vm1914_vm1, %v5870_v14, %v5868_v5  ;;  %v2019_v21 = vmul.f32 %v5870_v14, %v5610_v39 }
 0x282   : > { %7215 = vst [vmem:[#allocation21_spill] sm:$0xff] %v5880_v31  ;;  %v2020_v34 = vmul.f32 %v5612_v40, %v5880_v31  ;;  %v4940_v14 = vpack.i.bf16 %v1828_v2, %v5910_v9 }
 0x283   : > { %2031 = vrot.lane.b32.xlu2 %v2021_v41, %s7216_s25  ;;  %7217 = vst [vmem:[#allocation22_spill] sm:$0xff] %v5901_v26  ;;  %v5915_v41 = vunpack.i.l.bf16 %v5762_v36  ;;  %v2220_v36 = vmul.f32 %v5612_v40, %v5901_v26  ;;  %v427_v26 = vadd.s32 4, %v5354_v10 }
 0x284   : > { %v5894_v12 = vpop.permute.xlu0 %4946  ;;  %v5896_v4 = vpack.i.bf16 %v2020_v34, %v2019_v21 }
 0x285   : > { %v5904_v52 = vunpack.i.h.bf16 %v5894_v12  ;;  %v5938_v7 = vsel %vm1895_vm15, %v5915_v41, %v5765_v8  ;;  %v1900_v19 = vmul.f32 %v5906_v38, %v5915_v41  ;;  %vm431_vm6 = vcmp.lt.s32.totalorder %v427_v26, 16 }
 0x286   : > { %4961 = vrot.lane.b32.xlu1 %v5896_v4, %s7216_s25  ;;  %v1901_v2 = vmul.f32 %v5610_v39, %v5938_v7 }
 0x287   : > { %v5922_v21 = vsel %vm1841_vm8, %v5904_v52, %v5773_v62  ;;  %v2090_v34 = vmul.f32 %v5904_v52, %v5610_v39 }
 0x288   : > { %7218 = vst [vmem:[#allocation23_spill] sm:$0xff] %v5922_v21  ;;  %v2091_v31 = vmul.f32 %v5612_v40, %v5922_v21  ;;  %v5943_v21 = vpack.i.bf16 %v2220_v36, %v2219_v33  ;;  %v5960_v33 = vld [vmem:[#allocation2 + $0x8] sm:$0xf]  ;;  %v5970_v36 = vld [vmem:[#allocation2 + $0x38] sm:$0xf] }
 0x28a   : > { %v5933_v16 = vpack.i.bf16 %v2091_v31, %v2090_v34  ;;  %v5951_v31 = vpack.i.bf16 %v1901_v2, %v1900_v19  ;;  %v2301_v34 = vmul.f32 %v5392_v35, %v5960_v33  ;;  %v2453_v19 = vmul.f32 %v5389_v32, %v5960_v33 }
 0x28b   : > { %4941 = vrot.lane.b32.xlu2 %v4940_v14, %s7139_s26  ;;  %v2282_v14 = vld [vmem:[%s7220_s6] sm:$0xf]  ;;  %v5974_v2 = vmul.f32 %v5906_v38, %v5884_v22  ;;  %v4985_v35 = vpack.i.bf16 %v5906_v38, %v5612_v40  ;;  %v414_v32 = vadd.s32 4294967292, %v5344_v6  ;;  %s7151_s26 = smov 68   ;;  %s7242_s6 = smov 68  }
 0x28c   : > { %4966 = vrot.lane.b32.xlu0 %v5933_v16, %s7209_s29 }
 0x28d   : > { %vm416_vm12 = vcmp.ge.s32.totalorder %v414_v32, 0  ;;  %v4489_v32 = vsel %vm431_vm6, 1.0, %v5906_v38  ;;  %vm7180_vm6 = vcmask 556032  }
 0x28e   : > { %4971 = vrot.lane.b32.xlu1 %v5943_v21, %s7219_s28 }
 0x293   : > { %4951 = vrot.lane.b32.xlu2 %v5951_v31, %s7134_s22  ;;  %s7224_s22 = smov 32  }
 0x294   : > { %2285 = vperm.xlu0 %4793, %v2282_v14   ;;  %v2755_v14 = vmul.f32 %v5379_v25, %v5970_v36  ;;  %v4980_v25 = vpack.i.bf16 %v5960_v33, %v5612_v40 }
 0x296   : > { %4976 = vrot.lane.b32.xlu1 %v5676_v18, %s7143_s24 }
 0x29b   : > { %4956 = vrot.lane.b32.xlu2 %v5618_v43, %s7141_s23  ;;  %s7149_s23 = smov 4  }
 0x29c   : > { %2391 = vrot.lane.b32.xlu0 %v2301_v34, %s7129_s21  ;;  %s7223_s21 = smov 112   ;;  %v415_v34 = vadd.s32 4294967292, %v5354_v10 }
 0x29e   : > { %2470 = vrot.lane.b32.xlu1 %v2453_v19, %s7221_s14  ;;  %v426_v19 = vadd.s32 4, %v5344_v6  ;;  %vm417_vm13 = vcmp.ge.s32.totalorder %v415_v34, 0  ;;  %v4556_v6 = vld [vmem:[%s7210_s5 + $0x1c] sm:$0xf]  ;;  %v2534_v34 = vmul.f32 %v5397_v42, %v5960_v33  ;;  %v2674_v42 = vmul.f32 %v5384_v28, %v5970_v36  ;;  %v4565_v28 = vld [vmem:[%s7210_s5 + $0x28] sm:$0xf] }
 0x29f   : > { %v4487_v8 = vsel %vm417_vm13, 1.0, %v5906_v38  ;;  %4558 = vmatmul.msk.f32.vlgmr.msra.gmra.mxu3 %vm447_vm0, %v4556_v6  ;;  %4557 = vmatmul.msk.f32.vlgmr.msra.gmra.mxu2 %vm447_vm0, %v4556_v6  ;;  %v2911_v6 = vmul.f32 %v5458_v1, %v5970_v36  ;;  %v7229_v1 = vpack.i.bf16 %v5622_v46, %v5639_v51  ;;  %v2160_v46 = vpop.permute.xlu0 %2159  ;;  %vm7182_vm13 = vcmask 523264  }
 0x2a0   : > { %vm430_vm5 = vcmp.lt.s32.totalorder %v426_v19, 16 }
 0x2a1   : > { %v4488_v10 = vsel %vm430_vm5, 1.0, %v5906_v38  ;;  %vm2161_vm5 = vcmask 785408  }
 0x2a2   : > { %v5015_v19 = vpack.i.bf16 %v4489_v32, %v4488_v10  ;;  %v3348_v10 = vmul.f32 %v5906_v38, %v5868_v5  ;;  %v3432_v32 = vmul.f32 %v5970_v36, %v5773_v62 }
 0x2a3   : > { %2231 = vrot.lane.b32.xlu2 %v5974_v2, %s7219_s28 }
 0x2a4   : > { %2774 = vrot.lane.b32.xlu0 %v2755_v14, %s7222_s17  ;;  %v4486_v14 = vsel %vm416_vm12, 1.0, %v5906_v38  ;;  %vm7259_vm12 = vcmask 908288  }
 0x2a5   : > { %v5000_v26 = vpack.i.bf16 %v4487_v8, %v4486_v14  ;;  %v4562_v8 = vld [vmem:[%s7210_s5 + $0x24] sm:$0xf]  ;;  %v3351_v14 = vmul.f32 %v5868_v5, %v5970_v36  ;;  %v3140_v5 = vmul.f32 %v5866_v23, %v5960_v33 }
 0x2a6   : > { %4986 = vrot.lane.b32.xlu1 %v4985_v35, %s7223_s21 }
 0x2a7   : > { %4564 = vmatmul.msk.f32.vlgmr.msrb.gmra.mxu3 %vm447_vm0, %v4562_v8  ;;  %4563 = vmatmul.msk.f32.vlgmr.msrb.gmra.mxu2 %vm447_vm0, %v4562_v8  ;;  %v1913_v8 = vpop.permute.xlu0 %1912 }
 0x2ab   : > { %4981 = vrot.lane.b32.xlu2 %v4980_v25, %s7143_s24  ;;  %s7225_s24 = smov 1  }
 0x2ac   : > { %4996 = vrot.lane.b32.xlu0 %v4980_v25, %s7224_s22  ;;  %v4559_v25 = vld [vmem:[%s7210_s5 + $0x20] sm:$0xf] }
 0x2ad   : > { %4561 = vmatmul.msk.f32.vlgmr.msrb.gmra.mxu1 %vm447_vm0, %v4559_v25  ;;  %4560 = vmatmul.msk.f32.vlgmr.msrb.gmra.mxu0 %vm447_vm0, %v4559_v25 }
 0x2ae   : > { %2849 = vrot.lane.b32.xlu1 %v5970_v36, %s7223_s21 }
 0x2b3   : > { %2551 = vrot.lane.b32.xlu2 %v2534_v34, %s7225_s24 }
 0x2b4   : > { %5001 = vrot.lane.b32.xlu0 %v5000_v26, %s7145_s0  ;;  %s7147_s0 = smov 124  }
 0x2b5   : > { %4567 = vmatmul.msk.f32.vlgmr.msra.gmra.mxu1 %vm447_vm0, %v4565_v28  ;;  %4566 = vmatmul.msk.f32.vlgmr.msra.gmra.mxu0 %vm447_vm0, %v4565_v28  ;;  %v2103_v28 = vpop.permute.xlu1 %2102 }
 0x2b6   : > { %5016 = vrot.lane.b32.xlu1 %v5015_v19, %s7149_s23  ;;  %s7249_s23 = smov 60  }
 0x2bb   : > { %2693 = vrot.lane.b32.xlu2 %v2674_v42, %s7226_s2 }
 0x2bc   : > { %5011 = vrot.lane.b32.xlu0 %v5000_v26, %s7147_s0  ;;  %v2990_v26 = vmul.f32 %v5719_v11, %v5960_v33  ;;  %s7231_s0 = smov 2  }
 0x2be   : > { %3370 = vrot.lane.b32.xlu1 %v3351_v14, %s7216_s25  ;;  %v4571_v14 = vld [vmem:[%s7210_s5 + $0x30] sm:$0xf] }
 0x2c3   : > { %2930 = vrot.lane.b32.xlu2 %v2911_v6, %s7205_s16 }
 0x2c4   : > { %3364 = vrot.lane.b32.xlu0 %v3348_v10, %s7216_s25  ;;  %v4574_v10 = vld [vmem:[%s7210_s5 + $0x34] sm:$0xf] }
 0x2c6   : > { %3451 = vrot.lane.b32.xlu1 %v3432_v32, %s7209_s29 }
 0x2cb   : > { %3007 = vrot.lane.b32.xlu2 %v2990_v26, %s7227_s3 }
 0x2cc   : > { %5026 = vrot.lane.b32.xlu0 %v4985_v35, %s7228_s4  ;;  %v4948_v35 = vunpack.i.l.bf16 %v5894_v12  ;;  %v3221_v12 = vmul.f32 %v5915_v41, %v5960_v33 }
 0x2ce   : > { %5051 = vrot.lane.b32.xlu1 %v7229_v1, %s7225_s24 }
 0x2d3   : > { %4991 = vrot.lane.b32.xlu2 %v5676_v18, %s7224_s22 }
 0x2d6   : > { %3005 = vrot.lane.b32.xlu1 %v5723_v17, %s7227_s3  ;;  %v4568_v17 = vld [vmem:[%s7210_s5 + $0x2c] sm:$0xf] }
 0x2db   : > { %3157 = vrot.lane.b32.xlu2 %v3140_v5, %s7230_s1 }
 0x2dd   : > { %v2032_v34 = vpop.permute.xlu2 %2031 }
 0x2de   : > { %3155 = vrot.lane.b32.xlu1 %v5753_v61, %s7230_s1 }
 0x2e3   : > { %5006 = vrot.lane.b32.xlu2 %v5015_v19, %s7151_s26  ;;  %s7235_s26 = smov 17  }
 0x2e5   : > { %v4942_v51 = vpop.permute.xlu2 %4941 }
 0x2e6   : > { %v4944_v18 = vunpack.i.h.bf16 %v4942_v51  ;;  %v4943_v25 = vunpack.i.l.bf16 %v4942_v51  ;;  %3236 = vrot.lane.b32.xlu1 %v5769_v37, %s7231_s0 }
 0x2e8   : > { %v1842_v23 = vsel %vm1841_vm8, %v4943_v25, %v4944_v18  ;;  %v1843_v61 = vsel %vm1841_vm8, %v4944_v18, %v4948_v35  ;;  %v6093_v18 = vpack.i.bf16 %v5610_v39, %v5970_v36 }
 0x2e9   : > { %1864 = vmatpush.msra.mxu2 %v1842_v23  ;;  %1884 = vmatpush.msra.mxu3 %v1843_v61 }
 0x2ea   : > { %4569 = vmatmul.msk.f32.vlgmr.msra.gmra.mxu2 %vm447_vm0, %v4568_v17  ;;  %4570 = vmatmul.msk.f32.vlgmr.msra.gmra.mxu3 %vm447_vm0, %v4568_v17 }
 0x2eb   : > { %1984 = vmatpush.msrb.mxu2 %v5610_v39  ;;  %2004 = vmatpush.msrb.mxu3 %v5612_v40 }
 0x2ec   : > { %3238 = vrot.lane.b32.xlu2 %v3221_v12, %s7231_s0 }
 0x2ed   : > { %v4952_v37 = vpop.permute.xlu2 %4951 }
 0x2ee   : > { %v4954_v19 = vunpack.i.h.bf16 %v4952_v37  ;;  %v4953_v42 = vunpack.i.l.bf16 %v4952_v37  ;;  %5091 = vrot.lane.b32.xlu1 %v5933_v16, %s7209_s29  ;;  %v3429_v16 = vmul.f32 %v5906_v38, %v5773_v62  ;;  %v4577_v62 = vld [vmem:[%s7210_s5 + $0x38] sm:$0xf] }
 0x2f0   : > { %v1915_v41 = vsel %vm1914_vm1, %v4953_v42, %v4954_v19  ;;  %v1916_v6 = vsel %vm1914_vm1, %v4954_v19, %v1913_v8  ;;  %v4580_v42 = vld [vmem:[%s7210_s5 + $0x3c] sm:$0xf] }
 0x2f1   : > { %1937 = vmatpush.msrb.mxu0 %v1915_v41  ;;  %1957 = vmatpush.msrb.mxu1 %v1916_v6 }
 0x2f2   : > { %4572 = vmatmul.msk.f32.vlgmr.msrb.gmra.mxu0 %vm447_vm0, %v4571_v14  ;;  %4573 = vmatmul.msk.f32.vlgmr.msrb.gmra.mxu1 %vm447_vm0, %v4571_v14 }
 0x2f3   : > { %4575 = vmatmul.msk.f32.vlgmr.msrb.gmra.mxu2 %vm447_vm0, %v4574_v10  ;;  %4576 = vmatmul.msk.f32.vlgmr.msrb.gmra.mxu3 %vm447_vm0, %v4574_v10  ;;  %v4583_v10 = vld [vmem:[%s7210_s5 + $0x40] sm:$0xf] }
 0x2f4   : > { %3445 = vrot.lane.b32.xlu2 %v3429_v16, %s7209_s29 }
 0x2f5   : > { %v4957_v32 = vpop.permute.xlu2 %4956 }
 0x2f6   : > { %5096 = vrot.lane.b32.xlu1 %v5943_v21, %s7219_s28  ;;  %v4959_v1 = vunpack.i.h.bf16 %v4957_v32  ;;  %v4958_v5 = vunpack.i.l.bf16 %v4957_v32 }
 0x2f8   : > { %v4962_v26 = vpop.permute.xlu1 %4961  ;;  %v2162_v23 = vsel %vm2161_vm5, %v4958_v5, %v4959_v1  ;;  %v2163_v61 = vsel %vm2161_vm5, %v4959_v1, %v2160_v46  ;;  %v3582_v46 = vmul.f32 %v5970_v36, %v5884_v22  ;;  %v4586_v1 = vld [vmem:[%s7210_s5 + $0x44] sm:$0xf]  ;;  %s7260_s5 = smov 16  }
 0x2f9   : > { %v4964_v51 = vunpack.i.h.bf16 %v4962_v26  ;;  %v4963_v35 = vunpack.i.l.bf16 %v4962_v26 }
 0x2fb   : > { %v2033_v25 = vsel %vm1895_vm15, %v4963_v35, %v4964_v51  ;;  %v2034_v17 = vsel %vm1895_vm15, %v4964_v51, %v2032_v34 }
 0x2fc   : > { %5021 = vrot.lane.b32.xlu2 %v6093_v18, %s7228_s4  ;;  %2055 = vmatpush.msra.mxu0 %v2033_v25 }
 0x2fd   : > { %2075 = vmatpush.msra.mxu1 %v2034_v17  ;;  %v2232_v21 = vpop.permute.xlu2 %2231  ;;  %4578 = vmatmul.msk.f32.vlgmr.msra.gmra.mxu0 %vm447_vm0, %v4577_v62 }
 0x2fe   : > { %4579 = vmatmul.msk.f32.vlgmr.msra.gmra.mxu1 %vm447_vm0, %v4577_v62  ;;  %2184 = vmatpush.msrb.mxu0 %v2162_v23  ;;  %v4967_v12 = vpop.permute.xlu0 %4966 }
 0x2ff   : > { %2204 = vmatpush.msrb.mxu1 %v2163_v61  ;;  %v4969_v37 = vunpack.i.h.bf16 %v4967_v12  ;;  %v4968_v19 = vunpack.i.l.bf16 %v4967_v12  ;;  %v4859_v12 = vunpack.i.h.bf16 %v5785_v30  ;;  %v7240_v30 = vpack.i.bf16 %v5655_v59, %v5643_v53 }
 0x300   : > { %v4972_v34 = vpop.permute.xlu1 %4971  ;;  %v7243_v53 = vpack.i.bf16 %v5658_v3, %v5647_v55 }
 0x301   : > { %v4974_v8 = vunpack.i.h.bf16 %v4972_v34  ;;  %v4973_v14 = vunpack.i.l.bf16 %v4972_v34  ;;  %v2104_v41 = vsel %vm1822_vm2, %v4968_v19, %v4969_v37  ;;  %v2105_v6 = vsel %vm1822_vm2, %v4969_v37, %v2103_v28 }
 0x302   : > { %2126 = vmatpush.msra.mxu2 %v2104_v41  ;;  %2146 = vmatpush.msra.mxu3 %v2105_v6  ;;  %v7236_v19 = vpack.i.bf16 %v5635_v50, %v5631_v48 }
 0x303   : > { %4581 = vmatmul.msk.f32.vlgmr.msra.gmra.mxu2 %vm447_vm0, %v4580_v42  ;;  %4582 = vmatmul.msk.f32.vlgmr.msra.gmra.mxu3 %vm447_vm0, %v4580_v42  ;;  %v2233_v16 = vsel %vm7181_vm4, %v4973_v14, %v4974_v8  ;;  %v2234_v32 = vsel %vm7181_vm4, %v4974_v8, %v2232_v21 }
 0x304   : > { %3601 = vrot.lane.b32.xlu2 %v3582_v46, %s7219_s28  ;;  %2255 = vmatpush.msrb.mxu2 %v2233_v16 }
 0x305   : > { %2275 = vmatpush.msrb.mxu3 %v2234_v32  ;;  %v6121_v28 = vpop.permute.xlu2 %4981  ;;  %4584 = vmatmul.msk.f32.vlgmr.msrb.gmra.mxu0 %vm447_vm0, %v4583_v10 }
 0x306   : > { %v6124_v22 = vpop.permute.xlu0 %2285  ;;  %4585 = vmatmul.msk.f32.vlgmr.msrb.gmra.mxu1 %vm447_vm0, %v4583_v10  ;;  %v4983_v5 = vunpack.i.l.bf16 %v6121_v28 }
 0x308   : > { %v6127_v26 = vpop.permute.xlu1 %4976 }
 0x309   : > { %v7155_v51 = vunpack.i.h.bf16 %v6127_v26 }
 0x30b   : > { %4587 = vmatmul.msk.f32.vlgmr.msrb.gmra.mxu2 %vm447_vm0, %v4586_v1  ;;  %4588 = vmatmul.msk.f32.vlgmr.msrb.gmra.mxu3 %vm447_vm0, %v4586_v1  ;;  %v6139_v35 = vsel %vm522_vm11, %v7155_v51, %v4983_v5  ;;  %v5030_v5 = vpack.i.bf16 %v5906_v38, %v5960_v33  ;;  %vm7179_vm0 = vcmask 490496  }
 0x30c   : > { %3595 = vrot.lane.b32.xlu2 %v5974_v2, %s7219_s28 }
 0x30d   : > { %v6143_v62 = vpop.permute.xlu2 %2551 }
 0x30e   : > { %v6145_v25 = vpop.permute.xlu0 %2391 }
 0x310   : > { %v6147_v17 = vpop.permute.xlu1 %2470 }
 0x314   : > { %5036 = vrot.lane.b32.xlu2 %v5618_v43, %s7156_s18 }
 0x315   : > { %v6151_v21 = vpop.permute.xlu2 %2693 }
 0x316   : > { %7232 = vst [vmem:[#allocation24_spill] sm:$0xff] %v6151_v21  ;;  %v6153_v23 = vpop.permute.xlu0 %2774 }
 0x318   : > { %v6155_v61 = vpop.permute.xlu1 %4986 }
 0x319   : > { %7233 = vst [vmem:[#allocation25_spill] sm:$0xff] %v6155_v61  ;;  %v7154_v2 = vunpack.i.l.bf16 %v6155_v61 }
 0x31b   : > { %v6162_v37 = vsel %vm996_vm3, %v4859_v12, %v7154_v2 }
 0x31c   : > { %7234 = vst [vmem:[#allocation26_spill] sm:$0xff] %v6162_v37  ;;  %5041 = vrot.lane.b32.xlu2 %v7236_v19, %s7235_s26 }
 0x31d   : > { %v6168_v43 = vpop.permute.xlu2 %2930 }
 0x31e   : > { %7237 = vst [vmem:[#allocation27_spill] sm:$0xff] %v6168_v43  ;;  %v6170_v34 = vpop.permute.xlu0 %4996 }
 0x31f   : > { %7238 = vst [vmem:[#allocation28_spill] sm:$0xff] %v6170_v34  ;;  %v4998_v32 = vunpack.i.l.bf16 %v6170_v34 }
 0x320   : > { %v6172_v42 = vpop.permute.xlu1 %2849 }
 0x321   : > { %7239 = vst [vmem:[#allocation29_spill] sm:$0xff] %v6172_v42 }
 0x324   : > { %5056 = vrot.lane.b32.xlu2 %v7240_v30, %s7226_s2 }
 0x325   : > { %v6178_v8 = vpop.permute.xlu2 %3007 }
 0x326   : > { %7241 = vst [vmem:[#allocation30_spill] sm:$0xff] %v6178_v8  ;;  %v5002_v14 = vpop.permute.xlu0 %5001  ;;  %v7254_v8 = vpack.i.bf16 %v5664_v13, %v5652_v44 }
 0x327   : > { %v6180_v41 = vunpack.i.h.bf16 %v5002_v14  ;;  %v6182_v6 = vunpack.i.l.bf16 %v5002_v14 }
 0x328   : > { %v6184_v48 = vpop.permute.xlu1 %5016 }
 0x329   : > { %v3672_v50 = vmul.f32 %v6182_v6, %v5960_v33  ;;  %v3671_v46 = vmul.f32 %v6180_v41, %v5612_v40  ;;  %v4138_v10 = vmul.f32 %v6182_v6, %v5610_v39 }
 0x32b   : > { %3689 = vrot.lane.b32.xlu0 %v3672_v50, %s7242_s6  ;;  %v5105_v59 = vpack.i.bf16 %v4138_v10, %v3671_v46  ;;  %v1179_v50 = vpop.f32.mrf.mxu0 }
 0x32c   : > { %5066 = vrot.lane.b32.xlu2 %v7243_v53, %s7205_s16  ;;  %v4894_v53 = vunpack.i.h.bf16 %v5801_v15 }
 0x32d   : > { %v6197_v16 = vpop.permute.xlu2 %4991  ;;  %5106 = vrot.lane.b32.xlu1 %v5105_v59, %s7242_s6 }
 0x32e   : > { %7244 = vst [vmem:[#allocation31_spill] sm:$0xff] %v6197_v16  ;;  %v7153_v1 = vunpack.i.h.bf16 %v6197_v16  ;;  %v6231_v59 = vpop.permute.xlu0 %5011 }
 0x330   : > { %v6204_v39 = vpop.permute.xlu1 %3370  ;;  %v6209_v12 = vsel %vm1766_vm14, %v7153_v1, %v4998_v32  ;;  %v1199_v32 = vpop.f32.mrf.mxu1 }
 0x331   : > { %7245 = vst [vmem:[#allocation32_spill] sm:$0xff] %v6204_v39  ;;  %v1255_v1 = vpop.f32.mrf.mxu3 }
 0x332   : > { %7246 = vst [vmem:[#allocation33_spill] sm:$0xff] %v6209_v12  ;;  %v1256_v43 = vadd.f32 %v1255_v1, %v1199_v32 }
 0x333   : > { %5031 = vrot.lane.b32.xlu0 %v5030_v5, %s7156_s18  ;;  %v1235_v5 = vpop.f32.mrf.mxu2  ;;  %v1296_v51 = vpop.f32.mrf.mxu0  ;;  %s7252_s18 = smov 4  }
 0x334   : > { %5081 = vrot.lane.b32.xlu2 %v5951_v31, %s7231_s0 }
 0x335   : > { %v6214_v55 = vpop.permute.xlu2 %3157 }
 0x336   : > { %7247 = vst [vmem:[#allocation34_spill] sm:$0xff] %v6214_v55 }
 0x338   : > { %v6216_v3 = vpop.permute.xlu1 %3451 }
 0x339   : > { %7248 = vst [vmem:[#allocation35_spill] sm:$0xff] %v6216_v3  ;;  %v1379_v55 = vpop.f32.mrf.mxu3 }
 0x33b   : > { %v1406_v12 = vpop.f32.mrf.mxu0 }
 0x33c   : > { %5086 = vrot.lane.b32.xlu2 %v5896_v4, %s7216_s25 }
 0x33d   : > { %v5007_v19 = vpop.permute.xlu2 %5006 }
 0x33e   : > { %v6220_v30 = vunpack.i.h.bf16 %v5007_v19  ;;  %v6222_v14 = vunpack.i.l.bf16 %v5007_v19 }
 0x340   : > { %v6224_v46 = vpop.permute.xlu1 %5051  ;;  %v3833_v10 = vmul.f32 %v6220_v30, %v5612_v40  ;;  %v3834_v31 = vmul.f32 %v6222_v14, %v5960_v33  ;;  %v6242_v40 = vunpack.i.l.bf16 %v6231_v59 }
 0x341   : > { %v7158_v4 = vunpack.i.l.bf16 %v6224_v46 }
 0x342   : > { %3849 = vrot.lane.b32.xlu1 %v3833_v10, %s7249_s23  ;;  %3851 = vrot.lane.b32.xlu0 %v3834_v31, %s7249_s23  ;;  %v3924_v2 = vmul.f32 %v6242_v40, %v5960_v33  ;;  %v1316_v10 = vpop.f32.mrf.mxu1  ;;  %v1359_v31 = vpop.f32.mrf.mxu2 }
 0x343   : > { %v6239_v19 = vsel %vm733_vm9, %v4894_v53, %v7158_v4  ;;  %v5045_v4 = vpack.i.bf16 %v5685_v20, %v5699_v27  ;;  %v2987_v20 = vmul.f32 %v5906_v38, %v5719_v11  ;;  %v6278_v11 = vld [vmem:[#allocation2] sm:$0xff] }
 0x346   : > { %v6244_v15 = vpop.permute.xlu2 %3238 }
 0x347   : > { %7250 = vst [vmem:[#allocation36_spill] sm:$0xff] %v6244_v15 }
 0x348   : > { %v6248_v3 = vpop.permute.xlu1 %3005 }
 0x349   : > { %7251 = vst [vmem:[#allocation37_spill] sm:$0xff] %v6248_v3  ;;  %v1236_v3 = vadd.f32 %v1235_v5, %v1179_v50  ;;  %v5070_v50 = vpack.i.bf16 %v5740_v29, %v2987_v20 }
 0x34a   : > { %3941 = vrot.lane.b32.xlu0 %v3924_v2, %s7252_s18  ;;  %v1426_v15 = vpop.f32.mrf.mxu1  ;;  %v1472_v16 = vpop.f32.mrf.mxu2 }
 0x34b   : > { %v1492_v2 = vpop.f32.mrf.mxu3  ;;  %v1319_v27 = vadd.f32 %v1296_v51, %v1236_v3  ;;  %v3138_v51 = vmul.f32 %v6278_v11, %v5891_v0 }
 0x34d   : > { %v1382_v1 = vadd.f32 %v1359_v31, %v1319_v27 }
 0x34e   : > { %v3446_v39 = vpop.permute.xlu2 %3445 }
 0x350   : > { %v6251_v53 = vpop.permute.xlu1 %3155 }
 0x351   : > { %7253 = vst [vmem:[#allocation38_spill] sm:$0xff] %v6251_v53  ;;  %v1535_v53 = vpop.f32.mrf.mxu0 }
 0x352   : > { %5046 = vrot.lane.b32.xlu0 %v5045_v4, %s7221_s14  ;;  %v1320_v4 = vadd.f32 %v1316_v10, %v1256_v43  ;;  %v1555_v42 = vpop.f32.mrf.mxu1  ;;  %v1595_v61 = vpop.f32.mrf.mxu2  ;;  %v1429_v43 = vadd.f32 %v1406_v12, %v1382_v1 }
 0x353   : > { %v1615_v44 = vpop.f32.mrf.mxu3 }
 0x354   : > { %v1383_v5 = vadd.f32 %v1379_v55, %v1320_v4  ;;  %v5075_v55 = vpack.i.bf16 %v3138_v51, %v5910_v9  ;;  %v1495_v31 = vadd.f32 %v1472_v16, %v1429_v43  ;;  %v3669_v9 = vmul.f32 %v5906_v38, %v6182_v6 }
 0x356   : > { %v6256_v33 = vpop.permute.xlu2 %5021 }
 0x358   : > { %v6258_v34 = vpop.permute.xlu1 %3236 }
 0x359   : > { %v1658_v29 = vpop.f32.mrf.mxu0 }
 0x35a   : > { %5061 = vrot.lane.b32.xlu0 %v7254_v8, %s7222_s17  ;;  %v1430_v8 = vadd.f32 %v1426_v15, %v1383_v5  ;;  %v1678_v20 = vpop.f32.mrf.mxu1  ;;  %v1558_v15 = vadd.f32 %v1535_v53, %v1495_v31  ;;  %v3831_v53 = vmul.f32 %v5906_v38, %v6222_v14 }
 0x35b   : > { %v1753_v1 = vpop.f32.mrf.mxu3 }
 0x35c   : > { %v1496_v4 = vadd.f32 %v1492_v2, %v1430_v8  ;;  %v1618_v8 = vadd.f32 %v1595_v61, %v1558_v15 }
 0x35e   : > { %v6266_v37 = vpop.permute.xlu2 %3601  ;;  %v1559_v5 = vadd.f32 %v1555_v42, %v1496_v4  ;;  %v1681_v31 = vadd.f32 %v1658_v29, %v1618_v8 }
 0x35f   : > { %7255 = vst [vmem:[#allocation39_spill] sm:$0xff] %v6266_v37 }
 0x360   : > { %v6268_v21 = vpop.permute.xlu1 %5091 }
 0x361   : > { %v7165_v32 = vunpack.i.h.bf16 %v6268_v21  ;;  %v1791_v2 = vpop.f32.mrf.mxu0 }
 0x362   : > { %5071 = vrot.lane.b32.xlu0 %v5070_v50, %s7227_s3  ;;  %v1733_v50 = vpop.f32.mrf.mxu2 }
 0x363   : > { %v6276_v13 = vsel %vm1822_vm2, %v7165_v32, %v3446_v39  ;;  %v6289_v39 = vsel %vm7179_vm0, %v6182_v6, %v6180_v41 }
 0x364   : > { %7256 = vst [vmem:[#allocation40_spill] sm:$0xff] %v6276_v13  ;;  %v3670_v16 = vmul.f32 %v6278_v11, %v6289_v39 }
 0x366   : > { %v3596_v3 = vpop.permute.xlu2 %3595  ;;  %v5100_v43 = vpack.i.bf16 %v3670_v16, %v3669_v9  ;;  %v4874_v16 = vunpack.i.h.bf16 %v5799_v24  ;;  %v4904_v24 = vunpack.i.h.bf16 %v5836_v63  ;;  %v4924_v63 = vunpack.i.h.bf16 %v5853_v57 }
 0x368   : > { %v6282_v10 = vpop.permute.xlu1 %5096 }
 0x369   : > { %7257 = vst [vmem:[#allocation41_spill] sm:$0xff] %v6282_v10  ;;  %v7164_v27 = vunpack.i.h.bf16 %v6282_v10 }
 0x36a   : > { %5076 = vrot.lane.b32.xlu0 %v5075_v55, %s7230_s1  ;;  %v1619_v55 = vadd.f32 %v1615_v44, %v1559_v5  ;;  %v1756_v5 = vadd.f32 %v1733_v50, %v1681_v31 }
 0x36b   : > { %v6295_v12 = vsel %vm7181_vm4, %v7164_v27, %v3596_v3  ;;  %v6306_v3 = vsel %vm7180_vm6, %v6222_v14, %v6220_v30  ;;  %v1811_v27 = vpop.f32.mrf.mxu1 }
 0x36c   : > { %7258 = vst [vmem:[#allocation42_spill] sm:$0xff] %v6295_v12  ;;  %v3832_v42 = vmul.f32 %v6278_v11, %v6306_v3  ;;  %v1682_v9 = vadd.f32 %v1678_v20, %v1619_v55  ;;  %v1814_v8 = vadd.f32 %v1791_v2, %v1756_v5 }
 0x36d   : > { %v1866_v32 = vpop.f32.mrf.mxu2  ;;  %v1886_v4 = vpop.f32.mrf.mxu3 }
 0x36e   : > { %v6301_v51 = vpop.permute.xlu2 %5036  ;;  %v5110_v44 = vpack.i.bf16 %v3832_v42, %v3831_v53  ;;  %v1757_v12 = vadd.f32 %v1753_v1, %v1682_v9  ;;  %v1889_v13 = vadd.f32 %v1866_v32, %v1814_v8 }
 0x36f   : > { %v1939_v37 = vpop.f32.mrf.mxu0 }
 0x370   : > { %v1815_v20 = vadd.f32 %v1811_v27, %v1757_v12  ;;  %v1962_v9 = vadd.f32 %v1939_v37, %v1889_v13 }
 0x372   : > { %5101 = vrot.lane.b32.xlu0 %v5100_v43, %s7242_s6  ;;  %v1890_v42 = vadd.f32 %v1886_v4, %v1815_v20 }
 0x373   : > { %v1959_v29 = vpop.f32.mrf.mxu1 }
 0x374   : > { %v1963_v2 = vadd.f32 %v1959_v29, %v1890_v42  ;;  %v6341_v29 = vpop.permute.xlu0 %3364 }
 0x376   : > { %v6313_v61 = vpop.permute.xlu2 %5041  ;;  %v1986_v55 = vpop.f32.mrf.mxu2 }
 0x377   : > { %v7168_v15 = vunpack.i.l.bf16 %v6313_v61  ;;  %v2006_v53 = vpop.f32.mrf.mxu3  ;;  %v2009_v27 = vadd.f32 %v1986_v55, %v1962_v9 }
 0x378   : > { %v2010_v12 = vadd.f32 %v2006_v53, %v1963_v2 }
 0x379   : > { %v6320_v43 = vsel %vm583_vm10, %v4874_v16, %v7168_v15 }
 0x37a   : > { %5111 = vrot.lane.b32.xlu0 %v5110_v44, %s7249_s23  ;;  %v2057_v31 = vpop.f32.mrf.mxu0 }
 0x37b   : > { %v2077_v16 = vpop.f32.mrf.mxu1  ;;  %v2080_v32 = vadd.f32 %v2057_v31, %v2009_v27 }
 0x37c   : > { %v2081_v20 = vadd.f32 %v2077_v16, %v2010_v12 }
 0x37e   : > { %v6323_v10 = vpop.permute.xlu2 %5056 }
 0x37f   : > { %v7175_v50 = vunpack.i.l.bf16 %v6323_v10 }
 0x381   : > { %v6330_v1 = vsel %vm714_vm7, %v4904_v24, %v7175_v50  ;;  %v7279_v50 = vld [vmem:[#allocation16_spill] sm:$0xff] }
 0x382   : > { %v2186_v13 = vpop.f32.mrf.mxu0 }
 0x383   : > { %v2206_v55 = vpop.f32.mrf.mxu1 }
 0x386   : > { %v6332_v44 = vpop.permute.xlu2 %5066  ;;  %v2128_v5 = vpop.f32.mrf.mxu2 }
 0x387   : > { %v7173_v8 = vunpack.i.l.bf16 %v6332_v44  ;;  %v2148_v4 = vpop.f32.mrf.mxu3  ;;  %v2151_v15 = vadd.f32 %v2128_v5, %v2080_v32 }
 0x388   : > { %v2152_v37 = vadd.f32 %v2148_v4, %v2081_v20 }
 0x389   : > { %v6339_v24 = vsel %vm7259_vm12, %v4924_v63, %v7173_v8  ;;  %v2209_v53 = vadd.f32 %v2186_v13, %v2151_v15  ;;  %v6354_v15 = vpop.permute.xlu0 %5026  ;;  %v7170_v13 = vunpack.i.l.bf16 %v6301_v51  ;;  %vm7171_vm12 = vcmask 1014784  }
 0x38a   : > { %v2210_v42 = vadd.f32 %v2206_v55, %v2152_v37 }
 0x38e   : > { %v6343_v9 = vpop.permute.xlu2 %5081  ;;  %v2257_v57 = vpop.f32.mrf.mxu2 }
 0x38f   : > { %v7172_v31 = vunpack.i.h.bf16 %v6343_v9  ;;  %v2280_v2 = vadd.f32 %v2257_v57, %v2209_v53  ;;  %v2277_v16 = vpop.f32.mrf.mxu3 }
 0x390   : > { %v2281_v27 = vadd.f32 %v2277_v16, %v2210_v42  ;;  %v6394_v42 = vunpack.i.h.bf16 %v6231_v59 }
 0x391   : > { %v2288_v12 = vadd.f32 %v6124_v22, %v2280_v2  ;;  %v6351_v5 = vsel %vm1914_vm1, %v7172_v31, %v6258_v34  ;;  %v6398_v2 = vld [vmem:[#allocation2 + $0x18] sm:$0xff]  ;;  %v7272_v31 = vld [vmem:[#allocation12_spill] sm:$0xff] }
 0x392   : > { %v2289_v63 = vadd.f32 %v6124_v22, %v2281_v27  ;;  %v3923_v16 = vmul.f32 %v6398_v2, %v6394_v42 }
 0x393   : > { %2290 = vst [vmem:[#allocation2 + $0x20] sm:$0xf] %v2288_v12  ;;  %v6415_v12 = vsel %vm7171_vm12, %v6242_v40, %v6394_v42  ;;  %vm7267_vm12 = vcmask 924672  }
 0x394   : > { %2291 = vst [vmem:[#allocation2 + $0x28] sm:$0xf] %v2289_v63 }
 0x396   : > { %v6508_v8 = vpop.permute.xlu2 %5086 }
 0x39a   : > { %v6356_v32 = vld [vmem:[#allocation2 + $0x20] sm:$0xf] }
 0x39b   : > { %v6358_v4 = vld [vmem:[#allocation2 + $0x20] sm:$0xf]  ;;  %v6360_v20 = vld [vmem:[#allocation2 + $0x28] sm:$0xf]  ;;  %2321 = vrot.lane.b32.xlu0 %v6356_v32, %s7260_s5  ;;  %v2302_v63 = vmul.f32 %v6356_v32, %v5430_v54 }
 0x39c   : > { %2845 = vrot.lane.b32.xlu2 %v6358_v4, %s7223_s21  ;;  %2323 = vrot.lane.b32.xlu1 %v6360_v20, %s7260_s5  ;;  %v6370_v34 = vld [vmem:[#allocation2 + $0x28] sm:$0xf]  ;;  %v2303_v57 = vmul.f32 %v5418_v49, %v6360_v20  ;;  %v2455_v59 = vmul.f32 %v5405_v45, %v6360_v20  ;;  %v2454_v49 = vmul.f32 %v6356_v32, %v5414_v47 }
 0x39d   : > { %v6368_v22 = vpop.permute.xlu0 %3689  ;;  %v3921_v45 = vmul.f32 %v5906_v38, %v6242_v40  ;;  %v3922_v47 = vmul.f32 %v6278_v11, %v6415_v12  ;;  %v2536_v54 = vmul.f32 %v5435_v56, %v6360_v20  ;;  %v2672_v40 = vmul.f32 %v5440_v58, %v6358_v4 }
 0x3a3   : > { %2847 = vrot.lane.b32.xlu0 %v6370_v34, %s7223_s21 }
 0x3a4   : > { %3080 = vrot.lane.b32.xlu2 %v6360_v20, %s7224_s22  ;;  %3078 = vrot.lane.b32.xlu1 %v6356_v32, %s7224_s22 }
 0x3a5   : > { %v6378_v37 = vpop.permute.xlu0 %5031 }
 0x3a6   : > { %v5034_v55 = vunpack.i.h.bf16 %v6378_v37 }
 0x3a8   : > { %v6385_v53 = vsel %vm7182_vm13, %v5034_v55, %v7170_v13  ;;  %v7265_v13 = vld [vmem:[#allocation11_spill] sm:$0xff] }
 0x3ab   : > { %3516 = vrot.lane.b32.xlu0 %v6358_v4, %s7228_s4 }
 0x3ac   : > { %3763 = vrot.lane.b32.xlu2 %v6360_v20, %s7261_s11  ;;  %3518 = vrot.lane.b32.xlu1 %v6370_v34, %s7228_s4 }
 0x3b3   : > { %3939 = vrot.lane.b32.xlu0 %v3923_v16, %s7252_s18  ;;  %v5115_v16 = vpack.i.bf16 %v3922_v47, %v3921_v45  ;;  %v7266_v45 = vld [vmem:[#allocation18_spill] sm:$0xff] }
 0x3b4   : > { %2395 = vrot.lane.b32.xlu2 %v2303_v57, %s7235_s26  ;;  %3761 = vrot.lane.b32.xlu1 %v6356_v32, %s7261_s11  ;;  %v6406_v27 = vpop.permute.xlu0 %3851  ;;  %v2535_v57 = vmul.f32 %v6356_v32, %v5447_v60  ;;  %v2673_v60 = vmul.f32 %v6370_v34, %v7265_v13  ;;  %v4914_v47 = vunpack.i.h.bf16 %v7266_v45  ;;  %v7271_v45 = vld [vmem:[#allocation14_spill] sm:$0xff] }
 0x3b5   : > { %7262 = vst [vmem:[#allocation43_spill] sm:$0xff] %v6406_v27  ;;  %v3926_v27 = vmul.f32 %v6394_v42, %v6360_v20  ;;  %v4984_v42 = vunpack.i.h.bf16 %v6121_v28  ;;  %v7286_v28 = vunpack.i.h.bf16 %v6127_v26 }
 0x3bb   : > { %2474 = vrot.lane.b32.xlu0 %v2455_v59, %s7221_s14 }
 0x3bc   : > { %2472 = vrot.lane.b32.xlu2 %v2454_v49, %s7221_s14  ;;  %2393 = vrot.lane.b32.xlu1 %v2302_v63, %s7235_s26  ;;  %v6422_v55 = vpop.permute.xlu0 %3941  ;;  %v7264_v49 = vld [vmem:[#allocation10_spill] sm:$0xff] }
 0x3bd   : > { %7263 = vst [vmem:[#allocation44_spill] sm:$0xff] %v6422_v55  ;;  %v2754_v63 = vmul.f32 %v6370_v34, %v7264_v49  ;;  %v7270_v49 = vld [vmem:[#allocation8_spill] sm:$0xff] }
 0x3c3   : > { %2553 = vrot.lane.b32.xlu0 %v2535_v57, %s7225_s24 }
 0x3c4   : > { %5116 = vrot.lane.b32.xlu2 %v5115_v16, %s7252_s18  ;;  %2555 = vrot.lane.b32.xlu1 %v2536_v54, %s7225_s24  ;;  %v6435_v59 = vpop.permute.xlu0 %5046  ;;  %v7268_v16 = vld [vmem:[#allocation9_spill] sm:$0xff]  ;;  %v7269_v54 = vld [vmem:[#allocation19_spill] sm:$0xff]  ;;  %s4406_s24 = sshll.u32 %s5607_s27, 4  ;;  %s4407_s24 = int_to_ptr.vmem [resolvable:$true] %s4406_s24 }
 0x3c5   : > { %v2909_v13 = vmul.f32 %v7268_v16, %v6358_v4  ;;  %v3430_v16 = vmul.f32 %v5904_v52, %v6358_v4  ;;  %v7274_v52 = vld [vmem:[#allocation13_spill] sm:$0xff] }
 0x3cb   : > { %2689 = vrot.lane.b32.xlu0 %v2672_v40, %s7226_s2  ;;  %v3349_v40 = vmul.f32 %v7269_v54, %v6358_v4  ;;  %v2910_v54 = vmul.f32 %v6370_v34, %v7272_v31  ;;  %v2992_v31 = vmul.f32 %v7274_v52, %v6360_v20 }
 0x3cc   : > { %2772 = vrot.lane.b32.xlu2 %v2754_v63, %s7222_s17  ;;  %2691 = vrot.lane.b32.xlu1 %v2673_v60, %s7226_s2  ;;  %v6446_v56 = vpop.permute.xlu0 %5061  ;;  %v2753_v63 = vmul.f32 %v7270_v49, %v6358_v4  ;;  %s7275_s2 = smov 124  }
 0x3cd   : > { %v7176_v57 = vunpack.i.l.bf16 %v6446_v56 }
 0x3cf   : > { %v6453_v58 = vsel %vm7267_vm12, %v4914_v47, %v7176_v57  ;;  %v2991_v47 = vmul.f32 %v6356_v32, %v7271_v45  ;;  %v6481_v45 = vpop.permute.xlu1 %5106  ;;  %v3223_v57 = vmul.f32 %v7279_v50, %v6360_v20  ;;  %vm7280_vm12 = vcmask 31744  }
 0x3d0   : > { %7273 = vst [vmem:[#allocation10_spill] sm:$0xff] %v6481_v45  ;;  %v3836_v50 = vmul.f32 %v6220_v30, %v6360_v20 }
 0x3d3   : > { %2926 = vrot.lane.b32.xlu0 %v2909_v13, %s7205_s16 }
 0x3d4   : > { %3366 = vrot.lane.b32.xlu2 %v3349_v40, %s7216_s25  ;;  %2770 = vrot.lane.b32.xlu1 %v2753_v63, %s7222_s17  ;;  %v6464_v60 = vpop.permute.xlu0 %5071  ;;  %v5019_v40 = vunpack.i.h.bf16 %v6184_v48  ;;  %v3141_v63 = vmul.f32 %v6356_v32, %v5891_v0  ;;  %s5171_s17 = scalar_lea.hbm %s7089_s9, 64 }
 0x3d6   : > { %v4059_v49 = vmul.f32 %v5906_v38, %v5019_v40 }
 0x3db   : > { %3009 = vrot.lane.b32.xlu0 %v2991_v47, %s7227_s3 }
 0x3dc   : > { %3447 = vrot.lane.b32.xlu2 %v3430_v16, %s7209_s29  ;;  %2928 = vrot.lane.b32.xlu1 %v2910_v54, %s7205_s16  ;;  %v6475_v13 = vpop.permute.xlu0 %5076  ;;  %v5108_v16 = vunpack.i.l.bf16 %v6481_v45  ;;  %v3222_v54 = vmul.f32 %v6356_v32, %v5938_v7  ;;  %v6512_v7 = vunpack.i.l.bf16 %v6184_v48  ;;  %s7412_s16 = sand.u32 1, %s5205_s10  }
 0x3de   : > { %v4053_v45 = vsel %vm7280_vm12, %v6512_v7, %v5019_v40  ;;  %vm7284_vm12 = vcmask 1043456  }
 0x3e3   : > { %3159 = vrot.lane.b32.xlu0 %v3141_v63, %s7230_s1  ;;  %v4143_v63 = vmul.f32 %v6180_v41, %v5970_v36 }
 0x3e4   : > { %4075 = vrot.lane.b32.xlu2 %v4059_v49, %s7275_s2  ;;  %3011 = vrot.lane.b32.xlu1 %v2992_v31, %s7227_s3  ;;  %v6488_v47 = vpop.permute.xlu0 %5101  ;;  %v7276_v49 = vld [vmem:[#allocation15_spill] sm:$0xff] }
 0x3e5   : > { %v7174_v38 = vunpack.i.h.bf16 %v6488_v47  ;;  %v3142_v52 = vmul.f32 %v7276_v49, %v6360_v20 }
 0x3e7   : > { %v6495_v0 = vsel %vm7180_vm6, %v7174_v38, %v5108_v16  ;;  %v3850_v38 = vpop.permute.xlu1 %3849  ;;  %vm7285_vm6 = vmmov %vm7284_vm12 }
 0x3e8   : > { %vm7290_vm4 = vmmov %vm7285_vm6 }
 0x3eb   : > { %3240 = vrot.lane.b32.xlu0 %v3222_v54, %s7231_s0  ;;  %v7278_v54 = vld [vmem:[#allocation21_spill] sm:$0xff] }
 0x3ec   : > { %4162 = vrot.lane.b32.xlu2 %v4143_v63, %s7242_s6  ;;  %3161 = vrot.lane.b32.xlu1 %v3142_v52, %s7230_s1  ;;  %v6506_v31 = vpop.permute.xlu0 %5111  ;;  %v3350_v63 = vmul.f32 %v6370_v34, %v7278_v54  ;;  %v3674_v52 = vmul.f32 %v6180_v41, %v6360_v20  ;;  %v4058_v54 = vmul.f32 %v6398_v2, %v4053_v45 }
 0x3ed   : > { %v7178_v16 = vunpack.i.h.bf16 %v6506_v31 }
 0x3ef   : > { %v6517_v49 = vsel %vm7179_vm0, %v7178_v16, %v3850_v38  ;;  %v4057_v38 = vmul.f32 %v6278_v11, %v6512_v7  ;;  %v7281_v16 = vld [vmem:[#allocation23_spill] sm:$0xff]  ;;  %vm2331_vm0 = vcmask 97280  }
 0x3f0   : > { %7277 = vst [vmem:[#allocation11_spill] sm:$0xff] %v6517_v49  ;;  %v3431_v55 = vmul.f32 %v6370_v34, %v7281_v16  ;;  %v4062_v16 = vmul.f32 %v5019_v40, %v5970_v36 }
 0x3f1   : > { %v5120_v49 = vpack.i.bf16 %v4058_v54, %v4057_v38  ;;  %v7283_v38 = vld [vmem:[#allocation22_spill] sm:$0xff] }
 0x3f2   : > { %v3581_v54 = vmul.f32 %v6370_v34, %v7283_v38  ;;  %v5048_v38 = vunpack.i.l.bf16 %v6435_v59 }
 0x3f3   : > { %3368 = vrot.lane.b32.xlu0 %v3350_v63, %s7216_s25  ;;  %v7282_v63 = vld [vmem:[#allocation20_spill] sm:$0xff]  ;;  %s4394_s25 = scalar_lea.sflag [#allocation4], %s7412_s16 }
 0x3f4   : > { %3693 = vrot.lane.b32.xlu2 %v3674_v52, %s7242_s6  ;;  %3242 = vrot.lane.b32.xlu1 %v3223_v57, %s7231_s0  ;;  %v3580_v52 = vmul.f32 %v7282_v63, %v6358_v4 }
 0x3f6   : > { %v6530_v48 = vpop.permute.xlu2 %2845 }
 0x3fb   : > { %3449 = vrot.lane.b32.xlu0 %v3431_v55, %s7209_s29 }
 0x3fc   : > { %3855 = vrot.lane.b32.xlu2 %v3836_v50, %s7249_s23  ;;  %5121 = vrot.lane.b32.xlu1 %v5120_v49, %s7275_s2  ;;  %v4061_v49 = vmul.f32 %v4053_v45, %v6370_v34  ;;  %v4589_v45 = vld [vmem:[%s7087_s7 + $0x4] sm:$0xf] }
 0x3fe   : > { %v6542_v57 = vpop.permute.xlu2 %3080 }
 0x403   : > { %3597 = vrot.lane.b32.xlu0 %v3580_v52, %s7219_s28 }
 0x404   : > { %3945 = vrot.lane.b32.xlu2 %v3926_v27, %s7252_s18  ;;  %4229 = vrot.lane.b32.xlu1 %v6370_v34, %s7261_s11  ;;  %v4978_v27 = vunpack.i.l.bf16 %v6127_v26 }
 0x406   : > { %v6552_v55 = vpop.permute.xlu2 %3763 }
 0x40b   : > { %4081 = vrot.lane.b32.xlu0 %v4062_v16, %s7275_s2  ;;  %v2325_v16 = vsel %vm522_vm11, %v4978_v27, %v7286_v28  ;;  %v4291_v28 = vmul.f32 %v6222_v14, %v6358_v4 }
 0x40c   : > { %4079 = vrot.lane.b32.xlu2 %v4061_v49, %s7275_s2  ;;  %3599 = vrot.lane.b32.xlu1 %v3581_v54, %s7219_s28  ;;  %v3673_v49 = vmul.f32 %v6289_v39, %v6356_v32  ;;  %v4139_v54 = vmul.f32 %v6398_v2, %v6289_v39 }
 0x40d   : > { %v2322_v63 = vpop.permute.xlu0 %2321 }
 0x40e   : > { %v6563_v50 = vpop.permute.xlu2 %2395  ;;  %v2324_v52 = vpop.permute.xlu1 %2323  ;;  %v2327_v36 = vsel %vm522_vm11, %v4984_v42, %v2322_v63  ;;  %v6590_v42 = vld [vmem:[#allocation2 + $0x30] sm:$0xff] }
 0x40f   : > { %v2328_v40 = vsel %vm522_vm11, %v2322_v63, %v2324_v52  ;;  %4590 = vmatpush.msk.msra.mxu0 %vm7284_vm12, %v2327_v36  ;;  %v4140_v27 = vmul.f32 %v6590_v42, %v6180_v41  ;;  %v7287_v63 = vld [vmem:[#allocation17_spill] sm:$0xff]  ;;  %vm7288_vm11 = vcmask 121856   ;;  %v3835_v41 = vmul.f32 %v6306_v3, %v6356_v32 }
 0x410   : > { %4592 = vmatpush.msk.msra.mxu1 %vm7285_vm6, %v2328_v40  ;;  %v4884_v52 = vunpack.i.h.bf16 %v7287_v63  ;;  %vm7289_vm12 = vmmov %vm7288_vm11 }
 0x411   : > { %2354 = vmatpush.msra.mxu0 %v2325_v16  ;;  %v5023_v16 = vunpack.i.l.bf16 %v6256_v33 }
 0x412   : > { %2374 = vmatpush.msra.mxu1 %v6139_v35  ;;  %4591 = vmatmul.msk.f32.vlgmr.msra.gmra.mxu0 %vm2331_vm0, %v4589_v45  ;;  %v2476_v40 = vsel %vm7289_vm12, %v4884_v52, %v5048_v38  ;;  %vm7292_vm12 = vmmov %vm7285_vm6 }
 0x413   : > { %4227 = vrot.lane.b32.xlu0 %v6358_v4, %s7261_s11  ;;  %4593 = vmatmul.msk.f32.vlgmr.msra.gmra.mxu1 %vm2331_vm0, %v4589_v45  ;;  %v5130_v45 = vpack.i.bf16 %v4140_v27, %v4139_v54  ;;  %v4288_v54 = vmul.f32 %v6278_v11, %v6222_v14  ;;  %v4289_v27 = vmul.f32 %v6398_v2, %v6306_v3 }
 0x414   : > { %5126 = vrot.lane.b32.xlu2 %v6093_v18, %s7261_s11  ;;  %3691 = vrot.lane.b32.xlu1 %v3673_v49, %s7242_s6  ;;  %v3925_v14 = vmul.f32 %v6415_v12, %v6356_v32 }
 0x415   : > { %v6586_v26 = vpop.permute.xlu0 %2847 }
 0x416   : > { %v2473_v35 = vpop.permute.xlu2 %2472  ;;  %v6595_v18 = vpop.permute.xlu1 %3078 }
 0x417   : > { %v2478_v36 = vsel %vm7288_vm11, %v6147_v17, %v2473_v35  ;;  %v4598_v17 = vld [vmem:[%s7087_s7 + $0x8] sm:$0xf] }
 0x418   : > { %4599 = vmatpush.msk.msrb.mxu0 %vm7285_vm6, %v2478_v36 }
 0x41a   : > { %2504 = vmatpush.msrb.mxu0 %v2476_v40 }
 0x41b   : > { %5131 = vrot.lane.b32.xlu0 %v5130_v45, %s7242_s6  ;;  %4600 = vmatmul.msk.f32.vlgmr.msrb.gmra.mxu0 %vm2331_vm0, %v4598_v17  ;;  %v4141_v45 = vmul.f32 %v6182_v6, %v6358_v4 }
 0x41c   : > { %4609 = vmatpush.msk.msra.mxu0 %vm7290_vm4, %v6356_v32  ;;  %4308 = vrot.lane.b32.xlu2 %v4291_v28, %s7249_s23  ;;  %v5140_v28 = vpack.i.bf16 %v4289_v27, %v4288_v54  ;;  %vm7291_vm4 = vcmask 31744   ;;  %v4292_v27 = vmul.f32 %v6306_v3, %v6370_v34 }
 0x41d   : > { %3853 = vrot.lane.b32.xlu1 %v3835_v41, %s7249_s23  ;;  %v3517_v49 = vpop.permute.xlu0 %3516 }
 0x41e   : > { %2636 = vmatpush.msra.mxu0 %v6278_v11  ;;  %v3519_v63 = vpop.permute.xlu1 %3518  ;;  %v6626_v40 = vpop.permute.xlu2 %5116 }
 0x41f   : > { %v6621_v52 = vsel %vm2161_vm5, %v3519_v63, %v5023_v16  ;;  %v6624_v36 = vsel %vm2161_vm5, %v3517_v49, %v3519_v63  ;;  %v5119_v41 = vunpack.i.h.bf16 %v6626_v40  ;;  %v5033_v16 = vunpack.i.l.bf16 %v6378_v37 }
 0x420   : > { %v4060_v37 = vmul.f32 %v6512_v7, %v6358_v4 }
 0x423   : > { %4158 = vrot.lane.b32.xlu0 %v4141_v45, %s7242_s6  ;;  %v4608_v45 = vld [vmem:[%s7087_s7 + $0x10] sm:$0xf] }
 0x424   : > { %5141 = vrot.lane.b32.xlu2 %v5140_v28, %s7249_s23  ;;  %4610 = vmatmul.msk.f32.vlgmr.msra.gmra.mxu0 %vm2331_vm0, %v4608_v45  ;;  %v5049_v28 = vunpack.i.h.bf16 %v6435_v59 }
 0x425   : > { %3943 = vrot.lane.b32.xlu1 %v3925_v14, %s7252_s18  ;;  %v3940_v49 = vpop.permute.xlu0 %3939 }
 0x426   : > { %v3762_v63 = vpop.permute.xlu1 %3761  ;;  %v6640_v6 = vsel %vm7291_vm4, %v5119_v41, %v3940_v49  ;;  %vm7293_vm4 = vmmov %vm7285_vm6  ;;  %v7295_v49 = vunpack.i.l.bf16 %v6313_v61 }
 0x427   : > { %v6643_v54 = vsel %vm7182_vm13, %v5033_v16, %v3762_v63  ;;  %v6647_v12 = vsel %vm7182_vm13, %v3762_v63, %v6552_v55  ;;  %v5044_v55 = vunpack.i.h.bf16 %v6313_v61  ;;  %vm7294_vm13 = vmmov %vm7288_vm11  ;;  %v5054_v61 = vunpack.i.h.bf16 %v6224_v46 }
 0x428   : > { %v2477_v59 = vsel %vm7294_vm13, %v5048_v38, %v5049_v28  ;;  %v5064_v38 = vunpack.i.h.bf16 %v6446_v56  ;;  %vm7296_vm13 = vmmov %vm7293_vm4 }
 0x429   : > { %v2398_v63 = vsel %vm583_vm10, %v7295_v49, %v5044_v55  ;;  %v7300_v55 = vunpack.i.l.bf16 %v6446_v56  ;;  %v5059_v56 = vunpack.i.h.bf16 %v6323_v10 }
 0x42b   : > { %4310 = vrot.lane.b32.xlu0 %v4292_v27, %s7249_s23  ;;  %v2304_v27 = vld [vmem:[%s7087_s7] sm:$0xf] }
 0x42d   : > { %4077 = vrot.lane.b32.xlu1 %v4060_v37, %s7275_s2  ;;  %v2475_v14 = vpop.permute.xlu0 %2474  ;;  %s4729_s2 = sshll.u32 %s5310_s13, 5 }
 0x42e   : > { %v2479_v3 = vsel %vm7288_vm11, %v2473_v35, %v2475_v14  ;;  %v2394_v16 = vpop.permute.xlu1 %2393  ;;  %v4290_v35 = vmul.f32 %v6590_v42, %v6220_v30  ;;  %vm7298_vm11 = vmmov %vm7293_vm4  ;;  %s4405_s22 = scalar_lea.hbm %s7089_s9, %s4729_s2 }
 0x42f   : > { %v2399_v4 = vsel %vm583_vm10, %v6145_v25, %v2394_v16  ;;  %v2400_v7 = vsel %vm583_vm10, %v2394_v16, %v6563_v50  ;;  %4601 = vmatpush.msk.msrb.mxu1 %vm7285_vm6, %v2479_v3  ;;  %v2773_v25 = vpop.permute.xlu2 %2772  ;;  %v5135_v50 = vpack.i.bf16 %v6590_v42, %v6398_v2  ;;  %vm7297_vm10 = vcmask 924672   ;;  %vm7299_vm6 = vmmov %vm7293_vm4  ;;  %v4603_v16 = vld [vmem:[%s7087_s7 + $0xc] sm:$0xf]  ;;  %s4408_s29 = sshll.u32 %s4405_s22, 4  ;;  %s4409_s29 = int_to_ptr.hbm [resolvable:$true] %s4408_s29 }
 0x430   : > { %4594 = vmatpush.msk.msra.mxu2 %vm7292_vm12, %v2399_v4  ;;  %4596 = vmatpush.msk.msra.mxu3 %vm7293_vm4, %v2400_v7  ;;  %vm7301_vm12 = vmmov %vm7297_vm10  ;;  %v4142_v3 = vmul.f32 %v6289_v39, %v6370_v34  ;;  %v7303_v7 = vld [vmem:[#allocation24_spill] sm:$0xff]  ;;  %v7304_v34 = vld [vmem:[#allocation25_spill] sm:$0xff]  ;;  %s5165_s28 = sshra.s32 %s4409_s29, 4  ;;  %s5166_s28 = int_to_ptr.hbm [resolvable:$true] %s5165_s28 }
 0x431   : > { %2524 = vmatpush.msrb.mxu1 %v2477_v59  ;;  %v4989_v59 = vunpack.i.h.bf16 %v7304_v34  ;;  %s5167_s13 = scalar_lea.hbm %s5166_s28, 32  ;;  %p5172_p0 = scmp.lt.s32.totalorder %s5166_s28, %s7089_s9 }
 0x432   : > { %2425 = vmatpush.msra.mxu2 %v6320_v43  ;;  %2445 = vmatpush.msra.mxu3 %v2398_v63  ;;  %v2779_v43 = vsel %vm7297_vm10, %v2773_v25, %v6153_v23  ;;  %v2777_v23 = vsel %vm7301_vm12, %v7300_v55, %v5064_v38  ;;  %v2853_v63 = vsel %vm996_vm3, %v6530_v48, %v6586_v26  ;;  %vm7309_vm10 = vmmov %vm7293_vm4  ;;  %v4618_v48 = vld [vmem:[%s7087_s7 + $0x18] sm:$0xf]  ;;  %v5074_v55 = vunpack.i.h.bf16 %v6464_v60  ;;  %p5168_p11 = scmp.ne.s32.totalorder %s5166_s28, %s5167_s13  ;;  %p5173_p1 = scmp.lt.s32.totalorder %s5171_s17, %s5167_s13 }
 0x433   : > { %4611 = vmatpush.msk.msra.mxu1 %vm7296_vm13, %v6360_v20  ;;  %4306 = vrot.lane.b32.xlu0 %v4290_v35, %s7249_s23  ;;  %vm7306_vm13 = vmmov %vm7293_vm4  ;;  %v7308_v35 = vld [vmem:[#allocation29_spill] sm:$0xff] }
 0x434   : > { %4602 = vmatmul.msk.f32.vlgmr.msrb.gmra.mxu1 %vm2331_vm0, %v4598_v17  ;;  %4595 = vmatmul.msk.f32.vlgmr.msra.gmra.mxu2 %vm2331_vm0, %v2304_v27  ;;  %p5169_p12 = pnand %p5168_p11, %p5327_p5  ;;  %p5174_p2 = por %p5173_p1, %p5172_p0 }
 0x435   : > { %5136 = vrot.lane.b32.xlu1 %v5135_v50, %s7261_s11  ;;  %2656 = vmatpush.msra.mxu1 %v6398_v2  ;;  %v2554_v42 = vpop.permute.xlu0 %2553  ;;  %v2854_v50 = vsel %vm996_vm3, %v6586_v26, %v7308_v35 }
 0x436   : > { %v2559_v37 = vsel %vm733_vm9, %v6143_v62, %v2554_v42  ;;  %v2556_v28 = vpop.permute.xlu1 %2555  ;;  %4597 = vmatmul.msk.f32.vlgmr.msra.gmra.mxu3 %vm2331_vm0, %v2304_v27  ;;  %v7302_v62 = vunpack.i.l.bf16 %v6224_v46  ;;  %v5149_v27 = vld [vmem:[#allocation2 + $0x38] sm:$0xf]  ;;  %p5170_p13 = pneg %p5169_p12 }
 0x437   : > { %4621 = vmatpush.msk.msrb.mxu1 %vm7298_vm11, %v2779_v43  ;;  %v2560_v17 = vsel %vm733_vm9, %v2554_v42, %v2556_v28  ;;  %4604 = vmatpush.msk.msrb.mxu2 %vm7299_vm6, %v2559_v37  ;;  %v4293_v38 = vmul.f32 %v5149_v27, %v6220_v30  ;;  %vm7310_vm11 = vmmov %vm7293_vm4  ;;  %v7312_v30 = vld [vmem:[#allocation26_spill] sm:$0xff]  ;;  %v6751_v37 = vpop.permute.xlu2 %3366  ;;  %v4369_v28 = vld [vmem:[%s7088_s8] sm:$0xf]  ;;  %v5078_v27 = vunpack.i.l.bf16 %v6475_v13 }
 0x438   : > { %4606 = vmatpush.msk.msrb.mxu3 %vm7293_vm4, %v2560_v17  ;;  %v2558_v14 = vsel %vm733_vm9, %v7302_v62, %v5054_v61  ;;  %vm7305_vm9 = vmmov %vm7293_vm4  ;;  %v4623_v17 = vld [vmem:[%s7087_s7 + $0x1c] sm:$0xf]  ;;  %p5175_p3 = pnand %p5174_p2, %p5170_p13 }
 0x439   : > { %2824 = vmatpush.msrb.mxu1 %v2777_v23  ;;  %2585 = vmatpush.msrb.mxu2 %v6239_v19  ;;  %vm7314_vm6 = vmmov %vm7293_vm4  ;;  %v5069_v23 = vunpack.i.h.bf16 %v6332_v44 }
 0x43a   : > { %2605 = vmatpush.msrb.mxu3 %v2558_v14  ;;  %v7315_v14 = vld [vmem:[#allocation30_spill] sm:$0xff] }
 0x43c   : > { %4612 = vmatmul.msk.f32.vlgmr.msra.gmra.mxu1 %vm2331_vm0, %v4608_v45  ;;  %4605 = vmatmul.msk.f32.vlgmr.msrb.gmra.mxu2 %vm2331_vm0, %v4603_v16  ;;  %v7307_v45 = vunpack.i.l.bf16 %v6323_v10  ;;  %v4613_v10 = vld [vmem:[%s7087_s7 + $0x14] sm:$0xf] }
 0x43d   : > { %4160 = vrot.lane.b32.xlu1 %v4142_v3, %s7242_s6  ;;  %v2690_v4 = vpop.permute.xlu0 %2689 }
 0x43e   : > { %v2692_v46 = vpop.permute.xlu1 %2691  ;;  %4607 = vmatmul.msk.f32.vlgmr.msrb.gmra.mxu3 %vm2331_vm0, %v4603_v16  ;;  %v2696_v49 = vsel %vm714_vm7, %v7307_v45, %v5059_v56  ;;  %v7318_v56 = vld [vmem:[#allocation27_spill] sm:$0xff]  ;;  %v4628_v45 = vld [vmem:[%s7087_s7 + $0x20] sm:$0xf] }
 0x43f   : > { %v2697_v19 = vsel %vm714_vm7, %v2690_v4, %v2692_v46  ;;  %v2698_v39 = vsel %vm714_vm7, %v2692_v46, %v7303_v7  ;;  %vm7313_vm7 = vmmov %vm7301_vm12  ;;  %vm7317_vm12 = vcmask 908288   ;;  %v6789_v35 = vpop.permute.xlu2 %3447 }
 0x440   : > { %4614 = vmatpush.msk.msra.mxu2 %vm7305_vm9, %v2697_v19  ;;  %4616 = vmatpush.msk.msra.mxu3 %vm7306_vm13, %v2698_v39  ;;  %vm7319_vm4 = vmmov %vm7317_vm12  ;;  %v7322_v19 = vld [vmem:[#allocation31_spill] sm:$0xff] }
 0x441   : > { %vm7320_vm9 = vmmov %vm7314_vm6  ;;  %v4993_v7 = vunpack.i.l.bf16 %v7322_v19 }
 0x442   : > { %2723 = vmatpush.msra.mxu2 %v6330_v1  ;;  %2743 = vmatpush.msra.mxu3 %v2696_v49  ;;  %v7311_v1 = vunpack.i.l.bf16 %v7304_v34  ;;  %vm7323_vm13 = vmmov %vm7314_vm6  ;;  %v7326_v34 = vunpack.i.l.bf16 %v6332_v44  ;;  %v4633_v44 = vld [vmem:[%s7087_s7 + $0x24] sm:$0xf] }
 0x444   : > { %4624 = vmatpush.msk.msrb.mxu2 %vm7309_vm10, %v2853_v63  ;;  %4626 = vmatpush.msk.msrb.mxu3 %vm7310_vm11, %v2854_v50  ;;  %v2852_v26 = vsel %vm996_vm3, %v7311_v1, %v4989_v59  ;;  %vm7316_vm3 = vcmask 277504   ;;  %vm7324_vm10 = vmmov %vm7314_vm6  ;;  %v3085_v63 = vsel %vm1766_vm14, %v6595_v18, %v6542_v57  ;;  %v5079_v50 = vunpack.i.h.bf16 %v6475_v13 }
 0x445   : > { %4312 = vrot.lane.b32.xlu1 %v4293_v38, %s7249_s23  ;;  %4622 = vmatmul.msk.f32.vlgmr.msrb.gmra.mxu1 %vm2331_vm0, %v4618_v48  ;;  %v2927_v61 = vpop.permute.xlu0 %2926  ;;  %vm7325_vm11 = vmmov %vm7316_vm3  ;;  %v7329_v38 = vunpack.i.h.bf16 %v7322_v19 }
 0x446   : > { %2879 = vmatpush.msrb.mxu2 %v7312_v30  ;;  %2899 = vmatpush.msrb.mxu3 %v2852_v26  ;;  %v2771_v43 = vpop.permute.xlu1 %2770  ;;  %v3163_v26 = vsel %vm1841_vm8, %v5078_v27, %v5079_v50  ;;  %v7335_v30 = vld [vmem:[#allocation37_spill] sm:$0xff] }
 0x447   : > { %4615 = vmatmul.msk.f32.vlgmr.msra.gmra.mxu2 %vm2331_vm0, %v4613_v10  ;;  %4617 = vmatmul.msk.f32.vlgmr.msra.gmra.mxu3 %vm2331_vm0, %v4613_v10  ;;  %v2778_v42 = vsel %vm7313_vm7, %v2771_v43, %v2773_v25  ;;  %v5073_v25 = vunpack.i.l.bf16 %v6464_v60  ;;  %v7321_v60 = vld [vmem:[#allocation28_spill] sm:$0xff]  ;;  %vm7327_vm7 = vmmov %vm7319_vm4  ;;  %v3082_v57 = vsel %vm1766_vm14, %v4993_v7, %v7329_v38  ;;  %v7331_v10 = vld [vmem:[#allocation34_spill] sm:$0xff] }
 0x448   : > { %4619 = vmatpush.msk.msrb.mxu0 %vm7314_vm6, %v2778_v42  ;;  %v4999_v46 = vunpack.i.h.bf16 %v7321_v60  ;;  %v2933_v59 = vsel %vm7327_vm7, %v7326_v34, %v5069_v23  ;;  %v4638_v43 = vld [vmem:[%s7087_s7 + $0x28] sm:$0xf]  ;;  %v4643_v42 = vld [vmem:[%s7087_s7 + $0x2c] sm:$0xf]  ;;  %v5089_v60 = vunpack.i.h.bf16 %v6508_v8  ;;  %v7348_v38 = vld [vmem:[#allocation35_spill] sm:$0xff] }
 0x449   : > { %v3013_v39 = vsel %vm7325_vm11, %v5073_v25, %v5074_v55  ;;  %v7338_v25 = vld [vmem:[#allocation36_spill] sm:$0xff] }
 0x44a   : > { %2804 = vmatpush.msrb.mxu0 %v6453_v58  ;;  %v3084_v49 = vsel %vm1766_vm14, %v4999_v46, %v6595_v18  ;;  %vm7336_vm14 = vmmov %vm7325_vm11 }
 0x44b   : > { %4620 = vmatmul.msk.f32.vlgmr.msrb.gmra.mxu0 %vm2331_vm0, %v4618_v48 }
 0x44d   : > { %4372 = vperm.xlu1 %4829, %v4369_v28   ;;  %v3010_v62 = vpop.permute.xlu0 %3009  ;;  %v5083_v28 = vunpack.i.l.bf16 %v6343_v9 }
 0x44e   : > { %v3015_v3 = vsel %vm7316_vm3, %v7315_v14, %v3010_v62  ;;  %v2929_v16 = vpop.permute.xlu1 %2928  ;;  %vm7328_vm3 = vmmov %vm7314_vm6 }
 0x44f   : > { %4625 = vmatmul.msk.f32.vlgmr.msrb.gmra.mxu2 %vm2331_vm0, %v4623_v17  ;;  %4627 = vmatmul.msk.f32.vlgmr.msrb.gmra.mxu3 %vm2331_vm0, %v4623_v17  ;;  %v2934_v58 = vsel %vm7317_vm12, %v2927_v61, %v2929_v16  ;;  %v2935_v4 = vsel %vm7319_vm4, %v2929_v16, %v7318_v56  ;;  %vm7332_vm12 = vmmov %vm7325_vm11  ;;  %v3014_v61 = vsel %vm7336_vm14, %v5074_v55, %v7335_v30  ;;  %v6825_v17 = vpop.permute.xlu2 %4075  ;;  %v7342_v16 = vld [vmem:[#allocation38_spill] sm:$0xff] }
 0x450   : > { %4634 = vmatpush.msk.msra.mxu2 %vm7320_vm9, %v3015_v3  ;;  %4629 = vmatpush.msk.msra.mxu0 %vm7323_vm13, %v2934_v58  ;;  %vm7333_vm4 = vmmov %vm7328_vm3  ;;  %v3164_v58 = vsel %vm1841_vm8, %v5079_v50, %v7342_v16  ;;  %v4648_v56 = vld [vmem:[%s7087_s7 + $0x30] sm:$0xf] }
 0x451   : > { %4631 = vmatpush.msk.msra.mxu1 %vm7324_vm10, %v2935_v4  ;;  %vm7334_vm9 = vmmov %vm7328_vm3  ;;  %v4653_v4 = vld [vmem:[%s7087_s7 + $0x34] sm:$0xf] }
 0x452   : > { %3041 = vmatpush.msra.mxu2 %v3013_v39  ;;  %2960 = vmatpush.msra.mxu0 %v6339_v24  ;;  %v7330_v24 = vld [vmem:[#allocation33_spill] sm:$0xff]  ;;  %vm7337_vm13 = vmmov %vm7328_vm3  ;;  %v5024_v39 = vunpack.i.h.bf16 %v6256_v33  ;;  %v4658_v33 = vld [vmem:[%s7087_s7 + $0x38] sm:$0xf] }
 0x453   : > { %2980 = vmatpush.msra.mxu1 %v2933_v59  ;;  %4630 = vmatmul.msk.f32.vlgmr.msra.gmra.mxu0 %vm2331_vm0, %v4628_v45  ;;  %vm7339_vm10 = vmmov %vm7328_vm3 }
 0x454   : > { %4639 = vmatpush.msk.msrb.mxu0 %vm7314_vm6, %v3084_v49  ;;  %4632 = vmatmul.msk.f32.vlgmr.msra.gmra.mxu1 %vm2331_vm0, %v4628_v45  ;;  %vm7340_vm11 = vmmov %vm7328_vm3  ;;  %v5028_v45 = vunpack.i.l.bf16 %v6354_v15 }
 0x455   : > { %4641 = vmatpush.msk.msrb.mxu1 %vm7328_vm3, %v3085_v63  ;;  %v3160_v18 = vpop.permute.xlu0 %3159  ;;  %vm7343_vm7 = vmmov %vm7328_vm3 }
 0x456   : > { %3110 = vmatpush.msrb.mxu0 %v3082_v57  ;;  %v3165_v48 = vsel %vm1841_vm8, %v7331_v10, %v3160_v18  ;;  %v3012_v1 = vpop.permute.xlu1 %3011  ;;  %vm7345_vm6 = vmmov %vm7328_vm3  ;;  %v3522_v63 = vsel %vm2161_vm5, %v5024_v39, %v5028_v45 }
 0x457   : > { %3130 = vmatpush.msrb.mxu1 %v7330_v24  ;;  %4635 = vmatmul.msk.f32.vlgmr.msra.gmra.mxu2 %vm2331_vm0, %v4633_v44  ;;  %v3016_v13 = vsel %vm7332_vm12, %v3010_v62, %v3012_v1  ;;  %v6856_v34 = vpop.permute.xlu2 %4162 }
 0x458   : > { %4644 = vmatpush.msk.msrb.mxu2 %vm7333_vm4, %v3165_v48  ;;  %4636 = vmatpush.msk.msra.mxu3 %vm7334_vm9, %v3016_v13  ;;  %v7353_v48 = vld [vmem:[#allocation40_spill] sm:$0xff] }
 0x45a   : > { %3191 = vmatpush.msrb.mxu2 %v3163_v26  ;;  %3061 = vmatpush.msra.mxu3 %v3014_v61  ;;  %v7354_v26 = vld [vmem:[#allocation41_spill] sm:$0xff] }
 0x45b   : > { %4637 = vmatmul.msk.f32.vlgmr.msra.gmra.mxu3 %vm2331_vm0, %v4633_v44  ;;  %4640 = vmatmul.msk.f32.vlgmr.msrb.gmra.mxu0 %vm2331_vm0, %v4638_v43  ;;  %v5029_v44 = vunpack.i.h.bf16 %v6354_v15  ;;  %v5098_v30 = vunpack.i.l.bf16 %v7354_v26 }
 0x45c   : > { %4654 = vmatpush.msk.msra.mxu2 %vm7337_vm13, %v6356_v32  ;;  %4642 = vmatmul.msk.f32.vlgmr.msrb.gmra.mxu1 %vm2331_vm0, %v4638_v43 }
 0x45d   : > { %v3241_v55 = vpop.permute.xlu0 %3240  ;;  %v3523_v15 = vsel %vm2161_vm5, %v5028_v45, %v5029_v44 }
 0x45e   : > { %3319 = vmatpush.msra.mxu2 %v6278_v11  ;;  %v3246_v23 = vsel %vm1914_vm1, %v7338_v25, %v3241_v55  ;;  %v3162_v62 = vpop.permute.xlu1 %3161  ;;  %v7341_v11 = vunpack.i.h.bf16 %v6343_v9  ;;  %v5088_v9 = vunpack.i.l.bf16 %v6508_v8  ;;  %v5039_v25 = vunpack.i.h.bf16 %v6301_v51 }
 0x45f   : > { %4645 = vmatmul.msk.f32.vlgmr.msrb.gmra.mxu2 %vm2331_vm0, %v4643_v42  ;;  %v3166_v14 = vsel %vm1841_vm8, %v3160_v18, %v3162_v62  ;;  %4649 = vmatpush.msk.msra.mxu0 %vm7339_vm10, %v3246_v23  ;;  %vm7344_vm8 = vmmov %vm7328_vm3  ;;  %v3694_v10 = vpop.permute.xlu2 %3693  ;;  %v7360_v23 = vunpack.i.h.bf16 %v7354_v26  ;;  %v4713_v26 = vld [vmem:[%s7087_s7 + $0x64] sm:$0xf] }
 0x460   : > { %4646 = vmatpush.msk.msrb.mxu3 %vm7340_vm11, %v3166_v14  ;;  %v3244_v3 = vsel %vm1914_vm1, %v5083_v28, %v7341_v11  ;;  %v3372_v59 = vsel %vm1895_vm15, %v5088_v9, %v5089_v60  ;;  %v7362_v14 = vld [vmem:[#allocation42_spill] sm:$0xff] }
 0x461   : > { %3272 = vmatpush.msra.mxu0 %v3244_v3  ;;  %v5103_v3 = vunpack.i.l.bf16 %v6488_v47 }
 0x462   : > { %3211 = vmatpush.msrb.mxu3 %v3164_v58  ;;  %v7365_v58 = vunpack.i.l.bf16 %v6301_v51  ;;  %v7370_v51 = vunpack.i.h.bf16 %v6488_v47 }
 0x463   : > { %4647 = vmatmul.msk.f32.vlgmr.msrb.gmra.mxu3 %vm2331_vm0, %v4643_v42  ;;  %4650 = vmatmul.msk.f32.vlgmr.msra.gmra.mxu0 %vm2331_vm0, %v4648_v56  ;;  %v7356_v42 = vld [vmem:[#allocation39_spill] sm:$0xff] }
 0x464   : > { %4656 = vmatpush.msk.msra.mxu3 %vm7343_vm7, %v6360_v20  ;;  %vm7366_vm7 = vcmask 523264  }
 0x465   : > { %v3369_v46 = vpop.permute.xlu0 %3368 }
 0x466   : > { %3339 = vmatpush.msra.mxu3 %v6398_v2  ;;  %v3374_v19 = vsel %vm1895_vm15, %v6751_v37, %v3369_v46  ;;  %v3243_v7 = vpop.permute.xlu1 %3242  ;;  %v7346_v37 = vld [vmem:[#allocation32_spill] sm:$0xff] }
 0x467   : > { %4655 = vmatmul.msk.f32.vlgmr.msra.gmra.mxu2 %vm2331_vm0, %v4653_v4  ;;  %v3247_v8 = vsel %vm1914_vm1, %v3241_v55, %v3243_v7  ;;  %4659 = vmatpush.msk.msrb.mxu0 %vm7344_vm8, %v3374_v19  ;;  %v3375_v49 = vsel %vm1895_vm15, %v3369_v46, %v7346_v37  ;;  %vm7347_vm1 = vmmov %vm7328_vm3  ;;  %v3856_v13 = vpop.permute.xlu2 %3855  ;;  %v4673_v55 = vld [vmem:[%s7087_s7 + $0x44] sm:$0xf]  ;;  %vm7367_vm8 = vcmask 556032   ;;  %v7372_v7 = vld [vmem:[#allocation43_spill] sm:$0xff]  ;;  %v5118_v37 = vunpack.i.l.bf16 %v6626_v40 }
 0x468   : > { %4651 = vmatpush.msk.msra.mxu1 %vm7345_vm6, %v3247_v8  ;;  %vm7349_vm12 = vmmov %vm7347_vm1 }
 0x469   : > { %3400 = vmatpush.msrb.mxu0 %v3372_v59  ;;  %vm7350_vm4 = vmmov %vm7347_vm1  ;;  %v7377_v59 = vunpack.i.h.bf16 %v6506_v31 }
 0x46a   : > { %3292 = vmatpush.msra.mxu1 %v6351_v5  ;;  %v5093_v5 = vunpack.i.l.bf16 %v6268_v21  ;;  %vm7358_vm9 = vmmov %vm7347_vm1 }
 0x46b   : > { %4669 = vmatpush.msk.msra.mxu0 %vm7328_vm3, %v6624_v36  ;;  %4652 = vmatmul.msk.f32.vlgmr.msra.gmra.mxu1 %vm2331_vm0, %v4648_v56  ;;  %v3373_v36 = vsel %vm1895_vm15, %v5089_v60, %v6341_v29  ;;  %v4663_v29 = vld [vmem:[%s7087_s7 + $0x3c] sm:$0xf]  ;;  %vm7351_vm15 = vmmov %vm7347_vm1  ;;  %v3767_v56 = vsel %vm7366_vm7, %v7365_v58, %v5039_v25  ;;  %v7399_v25 = vld [vmem:[#allocation10_spill] sm:$0xff] }
 0x46c   : > { %4657 = vmatmul.msk.f32.vlgmr.msra.gmra.mxu3 %vm2331_vm0, %v4653_v4  ;;  %4661 = vmatpush.msk.msrb.mxu1 %vm7347_vm1, %v3375_v49  ;;  %vm7359_vm14 = vmmov %vm7347_vm1  ;;  %v5150_v49 = vld [vmem:[#allocation2] sm:$0xff] }
 0x46d   : > { %3550 = vmatpush.msra.mxu0 %v3522_v63  ;;  %v3450_v50 = vpop.permute.xlu0 %3449  ;;  %vm7363_vm10 = vmmov %vm7347_vm1  ;;  %v7382_v63 = vld [vmem:[#allocation44_spill] sm:$0xff] }
 0x46e   : > { %4660 = vmatmul.msk.f32.vlgmr.msrb.gmra.mxu0 %vm2331_vm0, %v4658_v33  ;;  %3420 = vmatpush.msrb.mxu1 %v3373_v36  ;;  %v3455_v27 = vsel %vm1822_vm2, %v6789_v35, %v3450_v50  ;;  %v3456_v57 = vsel %vm1822_vm2, %v3450_v50, %v7348_v38  ;;  %v6884_v24 = vpop.permute.xlu1 %5121  ;;  %v7352_v35 = vunpack.i.h.bf16 %v6268_v21  ;;  %vm7364_vm11 = vmmov %vm7347_vm1 }
 0x46f   : > { %4664 = vmatpush.msk.msrb.mxu2 %vm7350_vm4, %v3455_v27  ;;  %4666 = vmatpush.msk.msrb.mxu3 %vm7351_vm15, %v3456_v57  ;;  %v3946_v16 = vpop.permute.xlu2 %3945  ;;  %vm7368_vm6 = vmmov %vm7367_vm8  ;;  %vm7373_vm4 = vcmask 490496   ;;  %v5124_v50 = vunpack.i.h.bf16 %v6884_v24  ;;  %v4698_v27 = vld [vmem:[%s7087_s7 + $0x58] sm:$0xf]  ;;  %v5123_v40 = vunpack.i.l.bf16 %v6884_v24  ;;  %v4703_v24 = vld [vmem:[%s7087_s7 + $0x5c] sm:$0xf] }
 0x470   : > { %4671 = vmatpush.msk.msra.mxu1 %vm7349_vm12, %v6621_v52  ;;  %v3453_v18 = vsel %vm1822_vm2, %v5093_v5, %v7352_v35  ;;  %v4668_v52 = vld [vmem:[%s7087_s7 + $0x40] sm:$0xf]  ;;  %vm7355_vm2 = vcmask 769024   ;;  %vm7369_vm3 = vmmov %vm7347_vm1 }
 0x471   : > { %3481 = vmatpush.msrb.mxu2 %v3453_v18  ;;  %3501 = vmatpush.msrb.mxu3 %v7353_v48  ;;  %vm7357_vm5 = vmmov %vm7355_vm2 }
 0x472   : > { %3570 = vmatpush.msra.mxu1 %v3523_v15  ;;  %4665 = vmatmul.msk.f32.vlgmr.msrb.gmra.mxu2 %vm2331_vm0, %v4663_v29  ;;  %vm7361_vm13 = vmmov %vm7355_vm2 }
 0x473   : > { %4662 = vmatmul.msk.f32.vlgmr.msrb.gmra.mxu1 %vm2331_vm0, %v4658_v33  ;;  %v3603_v62 = vsel %vm7361_vm13, %v5098_v30, %v7360_v23  ;;  %vm7371_vm12 = vmmov %vm7368_vm6  ;;  %v7379_v33 = vld [vmem:[#allocation11_spill] sm:$0xff]  ;;  %v5109_v23 = vunpack.i.h.bf16 %v7399_v25 }
 0x474   : > { %4667 = vmatmul.msk.f32.vlgmr.msrb.gmra.mxu3 %vm2331_vm0, %v4663_v29  ;;  %vm7374_vm15 = vmmov %vm7373_vm4 }
 0x475   : > { %v3598_v1 = vpop.permute.xlu0 %3597  ;;  %vm7381_vm13 = vmmov %vm7347_vm1 }
 0x476   : > { %4670 = vmatmul.msk.f32.vlgmr.msra.gmra.mxu0 %vm2331_vm0, %v4668_v52  ;;  %v6905_v21 = vpop.permute.xlu1 %4229  ;;  %vm7385_vm7 = vmmov %vm7347_vm1 }
 0x477   : > { %v4080_v19 = vpop.permute.xlu2 %4079 }
 0x47b   : > { %4672 = vmatmul.msk.f32.vlgmr.msra.gmra.mxu1 %vm2331_vm0, %v4668_v52 }
 0x47d   : > { %v4082_v11 = vpop.permute.xlu0 %4081 }
 0x47e   : > { %v3600_v61 = vpop.permute.xlu1 %3599 }
 0x47f   : > { %v3605_v43 = vsel %vm7355_vm2, %v3598_v1, %v3600_v61  ;;  %v3606_v28 = vsel %vm7357_vm5, %v3600_v61, %v7356_v42  ;;  %vm7375_vm2 = vmmov %vm7347_vm1 }
 0x480   : > { %4674 = vmatpush.msk.msra.mxu2 %vm7358_vm9, %v3605_v43  ;;  %4676 = vmatpush.msk.msra.mxu3 %vm7359_vm14, %v3606_v28  ;;  %vm7376_vm5 = vmmov %vm7347_vm1 }
 0x481   : > { %vm7378_vm9 = vmmov %vm7373_vm4 }
 0x482   : > { %3631 = vmatpush.msra.mxu2 %v3603_v62  ;;  %3651 = vmatpush.msra.mxu3 %v7362_v14  ;;  %vm7380_vm14 = vmmov %vm7347_vm1 }
 0x483   : > { %4675 = vmatmul.msk.f32.vlgmr.msra.gmra.mxu2 %vm2331_vm0, %v4673_v55  ;;  %4677 = vmatmul.msk.f32.vlgmr.msra.gmra.mxu3 %vm2331_vm0, %v4673_v55 }
 0x484   : > { %4684 = vmatpush.msk.msrb.mxu2 %vm7363_vm10, %v6643_v54  ;;  %4686 = vmatpush.msk.msrb.mxu3 %vm7364_vm11, %v6647_v12  ;;  %v4678_v54 = vld [vmem:[%s7087_s7 + $0x48] sm:$0xf]  ;;  %v3696_v12 = vsel %vm7371_vm12, %v5103_v3, %v7370_v51  ;;  %vm7383_vm10 = vcmask 31744  }
 0x485   : > { %v4228_v47 = vpop.permute.xlu0 %4227  ;;  %vm7384_vm11 = vmmov %vm7383_vm10  ;;  %v4718_v51 = vld [vmem:[%s7087_s7 + $0x68] sm:$0xf] }
 0x486   : > { %3794 = vmatpush.msrb.mxu2 %v6385_v53  ;;  %3814 = vmatpush.msrb.mxu3 %v3767_v56  ;;  %v3692_v4 = vpop.permute.xlu1 %3691  ;;  %v4683_v53 = vld [vmem:[%s7087_s7 + $0x4c] sm:$0xf] }
 0x487   : > { %v3698_v60 = vsel %vm7367_vm8, %v6368_v22, %v3692_v4  ;;  %v3699_v9 = vsel %vm7368_vm6, %v3692_v4, %v3694_v10  ;;  %v5113_v22 = vunpack.i.l.bf16 %v6506_v31  ;;  %vm7386_vm8 = vmmov %vm7347_vm1 }
 0x488   : > { %4679 = vmatpush.msk.msrb.mxu0 %vm7369_vm3, %v3698_v60  ;;  %4681 = vmatpush.msk.msrb.mxu1 %vm7347_vm1, %v3699_v9  ;;  %vm7387_vm6 = vmmov %vm7383_vm10  ;;  %vm7388_vm3 = vcmask 1014784  }
 0x489   : > { %v3857_v45 = vsel %vm7378_vm9, %v5113_v22, %v7377_v59  ;;  %v4086_v38 = vsel %vm7388_vm3, %v4080_v19, %v4082_v11  ;;  %vm7389_vm12 = vmmov %vm7388_vm3  ;;  %v4708_v11 = vld [vmem:[%s7087_s7 + $0x60] sm:$0xf] }
 0x48a   : > { %3724 = vmatpush.msrb.mxu0 %v3696_v12  ;;  %3744 = vmatpush.msrb.mxu1 %v6495_v0  ;;  %v4688_v0 = vld [vmem:[%s7087_s7 + $0x50] sm:$0xf]  ;;  %vm7394_vm9 = vmmov %vm7388_vm3 }
 0x48b   : > { %4680 = vmatmul.msk.f32.vlgmr.msrb.gmra.mxu0 %vm2331_vm0, %v4678_v54  ;;  %4682 = vmatmul.msk.f32.vlgmr.msrb.gmra.mxu1 %vm2331_vm0, %v4678_v54  ;;  %v4083_v35 = vsel %vm7394_vm9, %v5123_v40, %v5124_v50 }
 0x48c   : > { %4685 = vmatmul.msk.f32.vlgmr.msrb.gmra.mxu2 %vm2331_vm0, %v4683_v53  ;;  %4687 = vmatmul.msk.f32.vlgmr.msrb.gmra.mxu3 %vm2331_vm0, %v4683_v53 }
 0x48d   : > { %v5132_v36 = vpop.permute.xlu0 %5131 }
 0x48e   : > { %v5134_v43 = vunpack.i.h.bf16 %v5132_v36  ;;  %v5133_v42 = vunpack.i.l.bf16 %v5132_v36 }
 0x48f   : > { %v3854_v46 = vpop.permute.xlu1 %3853  ;;  %v2356_v22 = vpop.f32.mrf.mxu0 }
 0x490   : > { %v3859_v39 = vsel %vm7373_vm4, %v7372_v7, %v3854_v46  ;;  %v3860_v8 = vsel %vm7374_vm15, %v3854_v46, %v3856_v13  ;;  %vm7390_vm4 = vcmask 523264   ;;  %vm7391_vm15 = vmmov %vm7388_vm3  ;;  %v2376_v53 = vpop.f32.mrf.mxu1 }
 0x491   : > { %4689 = vmatpush.msk.msra.mxu0 %vm7375_vm2, %v3859_v39  ;;  %4691 = vmatpush.msk.msra.mxu1 %vm7376_vm5, %v3860_v8  ;;  %vm7392_vm2 = vmmov %vm7347_vm1 }
 0x492   : > { %vm7393_vm5 = vmmov %vm7347_vm1 }
 0x493   : > { %3885 = vmatpush.msra.mxu0 %v3857_v45  ;;  %3905 = vmatpush.msra.mxu1 %v7379_v33  ;;  %vm7403_vm3 = vmmov %vm7347_vm1 }
 0x494   : > { %4690 = vmatmul.msk.f32.vlgmr.msra.gmra.mxu0 %vm2331_vm0, %v4688_v0  ;;  %4692 = vmatmul.msk.f32.vlgmr.msra.gmra.mxu1 %vm2331_vm0, %v4688_v0  ;;  %vm7410_vm9 = vmmov %vm7403_vm3 }
 0x495   : > { %4699 = vmatpush.msk.msrb.mxu0 %vm7380_vm14, %v6356_v32  ;;  %4701 = vmatpush.msk.msrb.mxu1 %vm7381_vm13, %v6360_v20  ;;  %v4693_v32 = vld [vmem:[%s7087_s7 + $0x54] sm:$0xf]  ;;  %v5127_v20 = vpop.permute.xlu2 %5126  ;;  %vm7395_vm14 = vmmov %vm7390_vm4 }
 0x496   : > { %v5128_v57 = vunpack.i.l.bf16 %v5127_v20  ;;  %v4235_v18 = vsel %vm7395_vm14, %v4228_v47, %v6905_v21  ;;  %vm7396_vm13 = vmmov %vm7347_vm1  ;;  %v5129_v52 = vunpack.i.h.bf16 %v5127_v20 }
 0x497   : > { %4022 = vmatpush.msrb.mxu0 %v5150_v49  ;;  %4042 = vmatpush.msrb.mxu1 %v6398_v2  ;;  %v3944_v31 = vpop.permute.xlu1 %3943  ;;  %v3947_v2 = vsel %vm7387_vm6, %v5118_v37, %v5119_v41  ;;  %v4084_v41 = vsel %vm7389_vm12, %v5124_v50, %v6825_v17  ;;  %v4159_v17 = vpop.permute.xlu0 %4158  ;;  %vm7402_vm6 = vmmov %vm7347_vm1 }
 0x498   : > { %v3949_v44 = vsel %vm7383_vm10, %v7382_v63, %v3944_v31  ;;  %v3950_v5 = vsel %vm7384_vm11, %v3944_v31, %v3946_v16  ;;  %vm7397_vm10 = vmmov %vm7390_vm4  ;;  %v2506_v7 = vpop.f32.mrf.mxu0 }
 0x499   : > { %4694 = vmatpush.msk.msra.mxu2 %vm7385_vm7, %v3949_v44  ;;  %4696 = vmatpush.msk.msra.mxu3 %vm7386_vm8, %v3950_v5  ;;  %vm7398_vm11 = vmmov %vm7390_vm4  ;;  %vm7400_vm7 = vcmask 556032  }
 0x49a   : > { %vm7401_vm8 = vmmov %vm7400_vm7 }
 0x49b   : > { %3975 = vmatpush.msra.mxu2 %v3947_v2  ;;  %3995 = vmatpush.msra.mxu3 %v6640_v6  ;;  %v4236_v6 = vsel %vm7390_vm4, %v6905_v21, %v5128_v57  ;;  %vm7406_vm4 = vcmask 490496  }
 0x49c   : > { %4695 = vmatmul.msk.f32.vlgmr.msra.gmra.mxu2 %vm2331_vm0, %v4693_v32  ;;  %4697 = vmatmul.msk.f32.vlgmr.msra.gmra.mxu3 %vm2331_vm0, %v4693_v32 }
 0x49d   : > { %4706 = vmatpush.msk.msrb.mxu3 %vm7347_vm1, %v4086_v38  ;;  %4700 = vmatmul.msk.f32.vlgmr.msrb.gmra.mxu0 %vm2331_vm0, %v4698_v27  ;;  %v4309_v10 = vpop.permute.xlu2 %4308  ;;  %vm7404_vm1 = vmmov %vm7400_vm7 }
 0x49e   : > { %4702 = vmatmul.msk.f32.vlgmr.msrb.gmra.mxu1 %vm2331_vm0, %v4698_v27  ;;  %v4164_v58 = vsel %vm7404_vm1, %v5109_v23, %v5133_v42  ;;  %vm7405_vm12 = vmmov %vm7404_vm1 }
 0x49f   : > { %4131 = vmatpush.msrb.mxu3 %v4084_v41  ;;  %v4078_v29 = vpop.permute.xlu1 %4077  ;;  %v4311_v21 = vpop.permute.xlu0 %4310  ;;  %v4165_v56 = vsel %vm7405_vm12, %v5133_v42, %v5134_v43 }
 0x4a0   : > { %v4085_v15 = vsel %vm7391_vm15, %v4078_v29, %v4080_v19  ;;  %v4316_v4 = vsel %vm7406_vm4, %v4309_v10, %v4311_v21  ;;  %vm7407_vm15 = vmmov %vm7392_vm2 }
 0x4a1   : > { %4716 = vmatpush.msk.msra.mxu3 %vm7392_vm2, %v4236_v6  ;;  %4704 = vmatpush.msk.msrb.mxu2 %vm7393_vm5, %v4085_v15  ;;  %vm7408_vm2 = vmmov %vm7406_vm4  ;;  %v2638_v59 = vpop.f32.mrf.mxu0 }
 0x4a2   : > { %vm7409_vm5 = vmmov %vm7408_vm2 }
 0x4a3   : > { %4111 = vmatpush.msrb.mxu2 %v4083_v35  ;;  %vm7411_vm14 = vmmov %vm7408_vm2 }
 0x4a4   : > { %4705 = vmatmul.msk.f32.vlgmr.msrb.gmra.mxu2 %vm2331_vm0, %v4703_v24  ;;  %4707 = vmatmul.msk.f32.vlgmr.msrb.gmra.mxu3 %vm2331_vm0, %v4703_v24 }
 0x4a5   : > { %4714 = vmatpush.msk.msra.mxu2 %vm7396_vm13, %v4235_v18  ;;  %v5142_v28 = vpop.permute.xlu2 %5141 }
 0x4a6   : > { %v5144_v3 = vunpack.i.h.bf16 %v5142_v28  ;;  %v5143_v16 = vunpack.i.l.bf16 %v5142_v28 }
 0x4a7   : > { %v5137_v48 = vpop.permute.xlu1 %5136  ;;  %v4307_v60 = vpop.permute.xlu0 %4306 }
 0x4a8   : > { %v5139_v1 = vunpack.i.h.bf16 %v5137_v48  ;;  %v5138_v13 = vunpack.i.l.bf16 %v5137_v48  ;;  %v4315_v12 = vsel %vm7411_vm14, %v5144_v3, %v4307_v60 }
 0x4aa   : > { %v4233_v30 = vsel %vm7397_vm10, %v5129_v52, %v5138_v13  ;;  %v4234_v61 = vsel %vm7398_vm11, %v5138_v13, %v5139_v1 }
 0x4ab   : > { %4261 = vmatpush.msra.mxu2 %v4233_v30  ;;  %4281 = vmatpush.msra.mxu3 %v4234_v61 }
 0x4ac   : > { %4715 = vmatmul.msk.f32.vlgmr.msra.gmra.mxu2 %vm2331_vm0, %v4713_v26  ;;  %4717 = vmatmul.msk.f32.vlgmr.msra.gmra.mxu3 %vm2331_vm0, %v4713_v26 }
 0x4af   : > { %v4161_v55 = vpop.permute.xlu1 %4160 }
 0x4b0   : > { %v4166_v62 = vsel %vm7400_vm7, %v4159_v17, %v4161_v55  ;;  %v4167_v14 = vsel %vm7401_vm8, %v4161_v55, %v6856_v34  ;;  %v4314_v34 = vsel %vm7408_vm2, %v5143_v16, %v5144_v3 }
 0x4b1   : > { %4709 = vmatpush.msk.msra.mxu0 %vm7402_vm6, %v4166_v62  ;;  %4711 = vmatpush.msk.msra.mxu1 %vm7403_vm3, %v4167_v14  ;;  %v2526_v19 = vpop.f32.mrf.mxu1 }
 0x4b3   : > { %4192 = vmatpush.msra.mxu0 %v4164_v58  ;;  %4212 = vmatpush.msra.mxu1 %v4165_v56 }
 0x4b4   : > { %4710 = vmatmul.msk.f32.vlgmr.msra.gmra.mxu0 %vm2331_vm0, %v4708_v11  ;;  %4712 = vmatmul.msk.f32.vlgmr.msra.gmra.mxu1 %vm2331_vm0, %v4708_v11 }
 0x4b5   : > { %4719 = vmatpush.msk.msrb.mxu0 %vm7407_vm15, %v4316_v4 }
 0x4b7   : > { %4342 = vmatpush.msrb.mxu0 %v4314_v34  ;;  %v4313_v9 = vpop.permute.xlu1 %4312  ;;  %v2427_v46 = vpop.f32.mrf.mxu2 }
 0x4b8   : > { %v4317_v54 = vsel %vm7409_vm5, %v4311_v21, %v4313_v9  ;;  %v2428_v44 = vadd.f32 %v2427_v46, %v2356_v22 }
 0x4b9   : > { %4721 = vmatpush.msk.msrb.mxu1 %vm7410_vm9, %v4317_v54  ;;  %v2447_v47 = vpop.f32.mrf.mxu3  ;;  %v2658_v0 = vpop.f32.mrf.mxu1 }
 0x4ba   : > { %v2448_v36 = vadd.f32 %v2447_v47, %v2376_v53  ;;  %v2529_v32 = vadd.f32 %v2506_v7, %v2428_v44 }
 0x4bb   : > { %4362 = vmatpush.msrb.mxu1 %v4315_v12 }
 0x4bc   : > { %4720 = vmatmul.msk.f32.vlgmr.msrb.gmra.mxu0 %vm2331_vm0, %v4718_v51  ;;  %4722 = vmatmul.msk.f32.vlgmr.msrb.gmra.mxu1 %vm2331_vm0, %v4718_v51  ;;  %v2530_v2 = vadd.f32 %v2526_v19, %v2448_v36 }
 0x4bf   : > { %v2587_v8 = vpop.f32.mrf.mxu2 }
 0x4c0   : > { %v2610_v27 = vadd.f32 %v2587_v8, %v2529_v32 }
 0x4c1   : > { %v2607_v39 = vpop.f32.mrf.mxu3 }
 0x4c2   : > { %v2826_v37 = vpop.f32.mrf.mxu1  ;;  %v2611_v57 = vadd.f32 %v2607_v39, %v2530_v2  ;;  %v2661_v40 = vadd.f32 %v2638_v59, %v2610_v27 }
 0x4c4   : > { %v2662_v29 = vadd.f32 %v2658_v0, %v2611_v57 }
 0x4c8   : > { %v2806_v49 = vpop.f32.mrf.mxu0 }
 0x4ca   : > { %v2745_v45 = vpop.f32.mrf.mxu3  ;;  %v2725_v33 = vpop.f32.mrf.mxu2 }
 0x4cb   : > { %v2748_v15 = vadd.f32 %v2725_v33, %v2661_v40  ;;  %v2749_v17 = vadd.f32 %v2745_v45, %v2662_v29 }
 0x4cd   : > { %v2829_v18 = vadd.f32 %v2806_v49, %v2748_v15  ;;  %v2830_v48 = vadd.f32 %v2826_v37, %v2749_v17 }
 0x4d0   : > { %v2962_v20 = vpop.f32.mrf.mxu0 }
 0x4d1   : > { %v2982_v5 = vpop.f32.mrf.mxu1 }
 0x4d2   : > { %v2901_v31 = vpop.f32.mrf.mxu3  ;;  %v2881_v63 = vpop.f32.mrf.mxu2 }
 0x4d3   : > { %v2904_v52 = vadd.f32 %v2881_v63, %v2829_v18  ;;  %v2905_v26 = vadd.f32 %v2901_v31, %v2830_v48 }
 0x4d5   : > { %v2985_v30 = vadd.f32 %v2962_v20, %v2904_v52  ;;  %v2986_v21 = vadd.f32 %v2982_v5, %v2905_v26 }
 0x4d8   : > { %v3112_v6 = vpop.f32.mrf.mxu0 }
 0x4d9   : > { %v3132_v41 = vpop.f32.mrf.mxu1 }
 0x4da   : > { %v3043_v38 = vpop.f32.mrf.mxu2 }
 0x4db   : > { %v3066_v43 = vadd.f32 %v3043_v38, %v2985_v30 }
 0x4dd   : > { %v3135_v25 = vadd.f32 %v3112_v6, %v3066_v43 }
 0x4de   : > { %v3063_v50 = vpop.f32.mrf.mxu3 }
 0x4df   : > { %v3067_v55 = vadd.f32 %v3063_v50, %v2986_v21 }
 0x4e0   : > { %v3274_v1 = vpop.f32.mrf.mxu0 }
 0x4e1   : > { %v3136_v14 = vadd.f32 %v3132_v41, %v3067_v55 }
 0x4e2   : > { %v3193_v35 = vpop.f32.mrf.mxu2 }
 0x4e3   : > { %v3216_v11 = vadd.f32 %v3193_v35, %v3135_v25 }
 0x4e5   : > { %v3297_v56 = vadd.f32 %v3274_v1, %v3216_v11 }
 0x4e6   : > { %v3213_v24 = vpop.f32.mrf.mxu3 }
 0x4e7   : > { %v3217_v3 = vadd.f32 %v3213_v24, %v3136_v14 }
 0x4e8   : > { %v3294_v10 = vpop.f32.mrf.mxu1 }
 0x4e9   : > { %v3298_v60 = vadd.f32 %v3294_v10, %v3217_v3 }
 0x4ea   : > { %v3321_v61 = vpop.f32.mrf.mxu2 }
 0x4eb   : > { %v3402_v28 = vpop.f32.mrf.mxu0  ;;  %v3344_v9 = vadd.f32 %v3321_v61, %v3297_v56  ;;  %v4373_v61 = vpop.permute.xlu1 %4372 }
 0x4ed   : > { %v3425_v53 = vadd.f32 %v3402_v28, %v3344_v9 }
 0x4ef   : > { %v3341_v13 = vpop.f32.mrf.mxu3 }
 0x4f0   : > { %v3422_v42 = vpop.f32.mrf.mxu1  ;;  %v3345_v54 = vadd.f32 %v3341_v13, %v3298_v60 }
 0x4f2   : > { %v3426_v22 = vadd.f32 %v3422_v42, %v3345_v54 }
 0x4f3   : > { %v3552_v16 = vpop.f32.mrf.mxu0 }
 0x4f5   : > { %v3483_v23 = vpop.f32.mrf.mxu2 }
 0x4f6   : > { %v3506_v47 = vadd.f32 %v3483_v23, %v3425_v53 }
 0x4f7   : > { %v3503_v62 = vpop.f32.mrf.mxu3 }
 0x4f8   : > { %v3572_v58 = vpop.f32.mrf.mxu1  ;;  %v3507_v46 = vadd.f32 %v3503_v62, %v3426_v22  ;;  %v3575_v39 = vadd.f32 %v3552_v16, %v3506_v47 }
 0x4fa   : > { %v3576_v8 = vadd.f32 %v3572_v58, %v3507_v46 }
 0x506   : > { %v3633_v4 = vpop.f32.mrf.mxu2  ;;  %v3653_v34 = vpop.f32.mrf.mxu3 }
 0x507   : > { %v3656_v0 = vadd.f32 %v3633_v4, %v3575_v39  ;;  %v3657_v59 = vadd.f32 %v3653_v34, %v3576_v8 }
 0x508   : > { %v3726_v51 = vpop.f32.mrf.mxu0  ;;  %v3746_v12 = vpop.f32.mrf.mxu1 }
 0x509   : > { %v3749_v31 = vadd.f32 %v3726_v51, %v3656_v0  ;;  %v3750_v63 = vadd.f32 %v3746_v12, %v3657_v59 }
 0x50f   : > { %v3796_v19 = vpop.f32.mrf.mxu2  ;;  %v3816_v7 = vpop.f32.mrf.mxu3 }
 0x510   : > { %v3819_v44 = vadd.f32 %v3796_v19, %v3749_v31  ;;  %v3820_v5 = vadd.f32 %v3816_v7, %v3750_v63 }
 0x511   : > { %v3887_v45 = vpop.f32.mrf.mxu0  ;;  %v3907_v33 = vpop.f32.mrf.mxu1 }
 0x512   : > { %v3910_v20 = vadd.f32 %v3887_v45, %v3819_v44  ;;  %v3911_v50 = vadd.f32 %v3907_v33, %v3820_v5 }
 0x51a   : > { %v4024_v36 = vpop.f32.mrf.mxu0 }
 0x51b   : > { %v4044_v32 = vpop.f32.mrf.mxu1 }
 0x51f   : > { %v3977_v37 = vpop.f32.mrf.mxu2  ;;  %v3997_v49 = vpop.f32.mrf.mxu3 }
 0x520   : > { %v4000_v2 = vadd.f32 %v3977_v37, %v3910_v20  ;;  %v4001_v27 = vadd.f32 %v3997_v49, %v3911_v50 }
 0x522   : > { %v4047_v40 = vadd.f32 %v4024_v36, %v4000_v2  ;;  %v4048_v41 = vadd.f32 %v4044_v32, %v4001_v27 }
 0x527   : > { %v4113_v38 = vpop.f32.mrf.mxu2  ;;  %v4133_v57 = vpop.f32.mrf.mxu3 }
 0x528   : > { %v4136_v15 = vadd.f32 %v4113_v38, %v4047_v40  ;;  %v4137_v24 = vadd.f32 %v4133_v57, %v4048_v41 }
 0x52f   : > { %v4263_v18 = vpop.f32.mrf.mxu2  ;;  %v4283_v10 = vpop.f32.mrf.mxu3 }
 0x531   : > { %v4194_v6 = vpop.f32.mrf.mxu0  ;;  %v4214_v29 = vpop.f32.mrf.mxu1 }
 0x532   : > { %v4217_v35 = vadd.f32 %v4194_v6, %v4136_v15  ;;  %v4218_v17 = vadd.f32 %v4214_v29, %v4137_v24 }
 0x534   : > { %v4286_v48 = vadd.f32 %v4263_v18, %v4217_v35  ;;  %v4287_v52 = vadd.f32 %v4283_v10, %v4218_v17 }
 0x539   : > { %v4344_v1 = vpop.f32.mrf.mxu0  ;;  %v4364_v13 = vpop.f32.mrf.mxu1 }
 0x53a   : > { %v4367_v26 = vadd.f32 %v4344_v1, %v4286_v48  ;;  %v4368_v30 = vadd.f32 %v4364_v13, %v4287_v52 }
 0x53c   : > { %v4375_v21 = vadd.f32 %v4373_v61, %v4367_v26  ;;  %v4376_v43 = vadd.f32 %v4373_v61, %v4368_v30 }
 0x53e   : > { %v4379_v42 = vrot.slane %v4375_v21, 4  ;;  %v4380_v28 = vrot.slane %v4376_v43, 4 }
 0x540   : > { %4383 = vst [vmem:[#allocation2 + $0x20] sm:$0xf0] %v4379_v42 }
 0x541   : > { %4384 = vst [vmem:[#allocation2 + $0x28] sm:$0xf0] %v4380_v28 }
 0x547   : > { %v4387_v55 = vld [vmem:[#allocation2 + $0x20] sm:$0xff] }
 0x548   : > { %v4388_v25 = vld [vmem:[#allocation2 + $0x28] sm:$0xff]  ;;  %4391 = vst [vmem:[%s5607_s27 + $0x10] sm:$0xff] %v4387_v55 }
 0x549   : > { %4392 = vst [vmem:[%s5607_s27 + $0x18] sm:$0xff] %v4388_v25 }
 0x54a   : > { %5178 = shalt.err (!%p5175_p3)
}
 0x54b   : > { %s5238_s27 = smov 256  }
 0x54c   : > { %4730 = dma.vmem_to_hbm [thread:$0]  (%p5327_p5), %s4407_s24, 512, %s4409_s29, %s4394_s25, %s5238_s27, %s5238_s27, %s7260_s5  }
 0x54d PF: > { %p4736_p4 = scmp.ge.s32.totalorder %s5213_s12, 2  ;;  %s4423_s1 = sand.u32 1, %s5201_s30  }
 0x54e   : > { %s4424_s18 = scalar_lea.sflag [#allocation4], %s4423_s1 }
 0x54f   : > { %p4733_p7 = pnand %p4736_p4, %p5331_p6 }
 0x551   : > { %p4734_p8 = pneg %p4733_p7 }
 0x553   : > { %5196 = dma.done.wait (%p4734_p8), %s4424_s18, 512  }
 0x554   : > { %5198 = vsyncadd (%p4734_p8), %s4424_s18, 4294966784  ;;  %s7413_s26 = sld [smem:[#allocation6_spill]]  ;;  %p19_p9 = scmp.ge.s32.totalorder %s5314_s15, 4  }
 0x555   : > { %s7414_s11 = sld [smem:[#allocation7_spill]]  ;;  %s7415_s30 = smov %s5205_s10 }
 0x556   : > { %s7417_s12 = smov %s5314_s15  ;;  %21 = sbr.rel (!%p19_p9) target bundleno = 11 (0xb), region = 142 }
 0x55a   : > { %s7416_s10 = smov %s7413_s26 }
 0x55b   :  { %4430 = vsyncpa [#allocation4], 1 }
 0x55c   :  { %4432 = vsyncpa [#allocation4 + $0x1], 1 }

</bundles_post_ra>
